<compile_context>
chip_gen: v5e
topology: v5e:2x2
jax: 0.10.0
libtpu: 0.0.40
codegen_flags: <defaults>
</compile_context>

<pallas_src>
import functools

import jax
import jax.numpy as jnp
from jax.experimental import pallas as pl
from jax.experimental.pallas import tpu as pltpu


# ----------------------------------------------------------------------------
# Fused Pallas kernel (gathers + all six losses, one invocation)
# ----------------------------------------------------------------------------
def _fused_elbox_kernel(cls_idx_ref, rel_idx_ref, cls_tab_ref, rel_tab_ref,
                        out_ref, *, dim, margin1, batch):
    """One-hot MXU gathers + all six ELBox losses in one kernel.

    Inputs (whole arrays, VMEM):
      cls_idx_ref : (1, 13*B) int32  -- 13 class-index vectors, lane-stacked
      rel_idx_ref : (1,  3*B) int32  -- 3 relation-index vectors
      cls_tab_ref : (2*dim, class_num) f32  -- transposed class table
      rel_tab_ref : (dim, relation_num) f32 -- transposed relation table
    Output: (1, 1) f32 in SMEM -- total loss (sum of the six MSE losses).

    Class-gather order (lane blocks of width B):
      0:nf1.c 1:nf1.d 2:dis.c 3:dis.d 4:nf3.c 5:nf3.d 6:nf4.c 7:nf4.d
      8:neg.c 9:neg.d 10:nf2.c 11:nf2.d 12:nf2.e
    Relation-gather order: 0:nf3.r 1:nf4.r 2:neg.r
    """
    m = margin1
    B = batch
    C = cls_tab_ref.shape[1]
    R = rel_tab_ref.shape[1]
    nbc = cls_idx_ref.shape[1]        # 13 * B
    nbr = rel_idx_ref.shape[1]        # 3 * B

    # ---- all embedding gathers as two one-hot matmuls on the idle MXU ------
    c_iota = jax.lax.broadcasted_iota(jnp.int32, (C, nbc), 0)
    onehot_c = (c_iota == cls_idx_ref[...]).astype(jnp.float32)       # (C, 13B)
    gath_c = jnp.dot(cls_tab_ref[...], onehot_c,
                     preferred_element_type=jnp.float32,
                     precision=jax.lax.Precision.HIGHEST)             # (2d, 13B)

    r_iota = jax.lax.broadcasted_iota(jnp.int32, (R, nbr), 0)
    onehot_r = (r_iota == rel_idx_ref[...]).astype(jnp.float32)       # (R, 3B)
    gath_r = jnp.dot(rel_tab_ref[...], onehot_r,
                     preferred_element_type=jnp.float32,
                     precision=jax.lax.Precision.HIGHEST)             # (d, 3B)

    # Lane offsets are multiples of B (multiple of 128) and sublane offsets
    # are multiples of dim (multiple of 8), so all slices below are free.
    def chalf(g):
        lo = g * B
        return gath_c[:dim, lo:lo + B], gath_c[dim:, lo:lo + B]

    def rblk(g):
        lo = g * B
        return gath_r[:, lo:lo + B]

    def pair_sq(cg, dg, rg, r_sign, s_euc, s_cr, s_dr, s_m):
        # val = max(s_euc*|cen1 - d1| + s_cr*|c2| + s_dr*|d2| + s_m*m, 0)
        # returns per-sample sum of squares (== ||val||_2^2), shape (1, B)
        c1, c2 = chalf(cg)
        d1, d2 = chalf(dg)
        if r_sign == 0:
            cen1 = c1
        elif r_sign > 0:
            cen1 = c1 + rblk(rg)
        else:
            cen1 = c1 - rblk(rg)
        euc = jnp.abs(cen1 - d1)
        expr = s_euc * euc + s_cr * jnp.abs(c2) + s_dr * jnp.abs(d2) + s_m * m
        val = jnp.maximum(expr, 0.0)
        return jnp.sum(val * val, axis=0, keepdims=True)              # (1, B)

    # nf1:      max(|c1-d1| + |c2| - |d2| + m, 0),   MSE vs 0 (sqrt elided)
    sq1 = pair_sq(0, 1, None, 0, 1.0, 1.0, -1.0, 1.0)
    # disjoint: max(-|c1-d1| + |c2| + |d2| + m, 0),  MSE vs 0
    sqd = pair_sq(2, 3, None, 0, -1.0, 1.0, 1.0, 1.0)
    # nf3:      max(|c1+r-d1| + |c2| - |d2| + m, 0), MSE vs 0
    sq3 = pair_sq(4, 5, 0, +1, 1.0, 1.0, -1.0, 1.0)
    # nf4:      max(|c1-r-d1| - |c2| - |d2| + m, 0), MSE vs 0
    sq4 = pair_sq(6, 7, 1, -1, 1.0, -1.0, -1.0, 1.0)
    # neg:      dst = ||max(|c1+r-d1| - |c2| - |d2| - m, 0)||_2, MSE vs 2
    sqn = pair_sq(8, 9, 2, +1, 1.0, -1.0, -1.0, -1.0)
    negd = jnp.sqrt(sqn) - 2.0
    neg_row = negd * negd                                             # (1, B)

    # nf2 (three-class intersection constraint)
    c1, c2 = chalf(10)
    d1, d2 = chalf(11)
    e1, e2 = chalf(12)
    c2 = jnp.abs(c2)
    d2 = jnp.abs(d2)
    e2 = jnp.abs(e2)
    start_all = jnp.maximum(c1 - c2, d1 - d2)
    end_all = jnp.minimum(c1 + c2, d1 + d2)
    new_r = jnp.maximum((end_all - start_all) * 0.5, 0.0)
    r_big = new_r * 10000.0
    cen1 = (start_all + end_all) * 0.5
    euc = jnp.abs(cen1 - e1)
    inner = jnp.minimum(r_big, jnp.maximum(euc + new_r - e2 + m, 0.0))
    a_sq = jnp.sum(inner * inner, axis=0, keepdims=True)              # (1, B)
    viol = jnp.maximum(start_all - end_all, 0.0)
    b_sq = jnp.sum(viol * viol, axis=0, keepdims=True)                # (1, B)
    a_row = jnp.sqrt(a_sq)
    b_row = jnp.sqrt(b_sq)

    # ---- consolidated lane reductions (3 trees instead of ~10) -------------
    # All equal-weight "mean of this row" terms are first summed on the VPU:
    #   total = mean(row0) + 2*mean(a)*mean(b)
    # where loss2 = mean(a^2) + 2*mean(a)*mean(b) + mean(b^2) reproduces the
    # PyTorch (B,1)+(B,) -> (B,B) broadcast quirk in closed form (O(B)).
    row0 = sq1 + sqd + sq3 + sq4 + neg_row + a_sq + b_sq              # (1, B)
    s0 = jnp.sum(row0)
    sa = jnp.sum(a_row)
    sb = jnp.sum(b_row)
    inv_b = 1.0 / float(B)
    total = s0 * inv_b + 2.0 * (sa * inv_b) * (sb * inv_b)

    out_ref[0, 0] = total


def fused_elbox_loss(cls_idx, rel_idx, class_emb_T, rel_emb_T, *,
                     dim, margin1, batch):
    if dim % 8 != 0:
        # TODO(synk): for production dims like 50, pad the feature axis to a
        # multiple of 8 and mask the margin term on pad rows.
        raise ValueError("embedding_dim must be a multiple of 8")
    if batch % 128 != 0:
        raise ValueError("sample_batch must be a multiple of 128 (lane-dense)")

    two_dim, cnum = class_emb_T.shape
    _, rnum = rel_emb_T.shape
    nbc = cls_idx.shape[1]
    nbr = rel_idx.shape[1]
    flops = int(2 * two_dim * cnum * nbc + 2 * dim * rnum * nbr
                + 70 * dim * batch)
    bytes_accessed = int(4 * (class_emb_T.size + rel_emb_T.size
                              + cls_idx.size + rel_idx.size) + 4)

    kernel = functools.partial(_fused_elbox_kernel, dim=dim,
                               margin1=float(margin1), batch=batch)
    out = pl.pallas_call(
        kernel,
        out_shape=jax.ShapeDtypeStruct((1, 1), jnp.float32),
        in_specs=[pl.BlockSpec(memory_space=pltpu.MemorySpace.VMEM)] * 4,
        out_specs=pl.BlockSpec(memory_space=pltpu.MemorySpace.SMEM),
        cost_estimate=pl.CostEstimate(flops=flops,
                                      transcendentals=int(3 * batch),
                                      bytes_accessed=bytes_accessed),
    )(cls_idx, rel_idx, class_emb_T, rel_emb_T)
    return out[0, 0]


# ----------------------------------------------------------------------------
# JAX glue: index stacking + sampling (tiny int32 work outside the kernel)
# ----------------------------------------------------------------------------
@functools.partial(jax.jit, static_argnames=("dim", "margin1"))
def _loss_from_samples(class_emb_T, rel_emb_T, sampled, *, dim, margin1):
    s = sampled
    cls_cols = jnp.stack([
        s['nf1'][:, 0], s['nf1'][:, 1],
        s['disjoint'][:, 0], s['disjoint'][:, 1],
        s['nf3'][:, 0], s['nf3'][:, 2],
        s['nf4'][:, 1], s['nf4'][:, 2],
        s['nf3_neg'][:, 0], s['nf3_neg'][:, 2],
        s['nf2'][:, 0], s['nf2'][:, 1], s['nf2'][:, 2],
    ], axis=0).astype(jnp.int32)                      # (13, B)
    rel_cols = jnp.stack([
        s['nf3'][:, 1], s['nf4'][:, 0], s['nf3_neg'][:, 1],
    ], axis=0).astype(jnp.int32)                      # (3, B)
    batch = cls_cols.shape[1]
    cls_idx = cls_cols.reshape(1, -1)                 # (1, 13*B)
    rel_idx = rel_cols.reshape(1, -1)                 # (1, 3*B)
    return fused_elbox_loss(cls_idx, rel_idx, class_emb_T, rel_emb_T,
                            dim=dim, margin1=margin1, batch=batch)


# ----------------------------------------------------------------------------
# ELBoxModel (JAX / Pallas)
# ----------------------------------------------------------------------------
class ELBoxModelPallas:
    def __init__(self, class_num, relation_num, embedding_dim,
                 sample_batch, margin1=0.0, seed=0):
        self.class_num = class_num
        self.relation_num = relation_num
        self.embedding_dim = embedding_dim
        self.sample_batch = sample_batch
        self.margin1 = float(margin1)

        key = jax.random.PRNGKey(seed)
        k1, k2 = jax.random.split(key)

        # xavier_normal_ on (num, feat) tables, then row L2 normalization
        # (matches the PyTorch __init__; no eps, same as the reference code).
        std_c = (2.0 / (class_num + embedding_dim * 2)) ** 0.5
        w_c = std_c * jax.random.normal(
            k1, (class_num, embedding_dim * 2), dtype=jnp.float32)
        w_c = w_c / jnp.linalg.norm(w_c, axis=1, keepdims=True)

        std_r = (2.0 / (relation_num + embedding_dim)) ** 0.5
        w_r = std_r * jax.random.normal(
            k2, (relation_num, embedding_dim), dtype=jnp.float32)
        w_r = w_r / jnp.linalg.norm(w_r, axis=1, keepdims=True)

        self.class_emb = w_c
        self.rel_emb = w_r
        # Transposed once at init so the kernel's one-hot matmul is a plain
        # (2*dim, C) @ (C, 13*B) contraction with zero per-step cost.
        self.class_emb_T = jnp.asarray(w_c.T)          # (2*dim, class_num)
        self.rel_emb_T = jnp.asarray(w_r.T)            # (dim, relation_num)

    # np.random.choice(len(x), size=batch) -> uniform sampling w/ replacement
    def sample_axioms(self, inputs, rng_key):
        keys = jax.random.split(rng_key, 6)
        order = ['nf1', 'nf2', 'nf3', 'nf4', 'disjoint', 'nf3_neg']
        sampled = {}
        for k, name in zip(keys, order):
            arr = inputs[name]
            idx = jax.random.randint(k, (self.sample_batch,), 0, arr.shape[0])
            sampled[name] = arr[idx]
        return sampled

    def forward(self, inputs, rng_key):
        sampled = self.sample_axioms(inputs, rng_key)
        total = _loss_from_samples(self.class_emb_T, self.rel_emb_T, sampled,
                                   dim=self.embedding_dim,
                                   margin1=self.margin1)
        return [total]


# ----------------------------------------------------------------------------
# Pure-JAX reference (mirrors the PyTorch module 1:1, incl. nf2 broadcast)
# ----------------------------------------------------------------------------
def _reference_total(model, sampled):
    dim = model.embedding_dim
    m = model.margin1
    ce = lambda idx: jnp.take(model.class_emb, idx, axis=0)
    re = lambda idx: jnp.take(model.rel_emb, idx, axis=0)

    def pair_dst(c, d, r, s_euc, s_cr, s_dr, s_m):
        c1, c2 = c[:, :dim], c[:, dim:]
        d1, d2 = d[:, :dim], d[:, dim:]
        euc = jnp.abs(c1 + r - d1)
        val = jnp.maximum(
            s_euc * euc + s_cr * jnp.abs(c2) + s_dr * jnp.abs(d2) + s_m * m, 0.0)
        return jnp.linalg.norm(val, axis=1).reshape(-1, 1)

    s = sampled
    dst = pair_dst(ce(s['nf1'][:, 0]), ce(s['nf1'][:, 1]), 0.0, 1, 1, -1, 1)
    loss1 = jnp.mean(dst ** 2)
    dst = pair_dst(ce(s['disjoint'][:, 0]), ce(s['disjoint'][:, 1]), 0.0,
                   -1, 1, 1, 1)
    loss_dis = jnp.mean(dst ** 2)
    dst = pair_dst(ce(s['nf3'][:, 0]), ce(s['nf3'][:, 2]), re(s['nf3'][:, 1]),
                   1, 1, -1, 1)
    loss3 = jnp.mean(dst ** 2)
    dst = pair_dst(ce(s['nf4'][:, 1]), ce(s['nf4'][:, 2]), -re(s['nf4'][:, 0]),
                   1, -1, -1, 1)
    loss4 = jnp.mean(dst ** 2)
    dst = pair_dst(ce(s['nf3_neg'][:, 0]), ce(s['nf3_neg'][:, 2]),
                   re(s['nf3_neg'][:, 1]), 1, -1, -1, -1)
    loss_neg = jnp.mean((dst - 2.0) ** 2)

    c, d, e = ce(s['nf2'][:, 0]), ce(s['nf2'][:, 1]), ce(s['nf2'][:, 2])
    c1, c2 = c[:, :dim], jnp.abs(c[:, dim:])
    d1, d2 = d[:, :dim], jnp.abs(d[:, dim:])
    e1, e2 = e[:, :dim], jnp.abs(e[:, dim:])
    start_all = jnp.maximum(c1 - c2, d1 - d2)
    end_all = jnp.minimum(c1 + c2, d1 + d2)
    new_r = jnp.maximum((end_all - start_all) / 2.0, 0.0)
    r_big = new_r * 10000.0
    cen1 = (start_all + end_all) / 2.0
    euc = jnp.abs(cen1 - e1)
    a = jnp.linalg.norm(
        jnp.minimum(r_big, jnp.maximum(euc + new_r - e2 + m, 0.0)),
        axis=1).reshape(-1, 1)
    b = jnp.linalg.norm(jnp.maximum(start_all - end_all, 0.0), axis=1)
    dst = a + b                                # (B, B) broadcast quirk
    loss2 = jnp.mean(dst ** 2)

    return loss1 + loss2 + loss_dis + loss3 + loss4 + loss_neg


# ----------------------------------------------------------------------------
# main
# ----------------------------------------------------------------------------
if __name__ == "__main__":
    CLASS_NUM = 20
    REL_NUM = 5
    EMB_DIM = 32        # class table stores 2*EMB_DIM per row
    N_AXIOMS = 40       # rows available per axiom type
    SAMPLE_BATCH = 128  # small, lane-dense stand-in for batch=512 in forward()

    model = ELBoxModelPallas(CLASS_NUM, REL_NUM, EMB_DIM, SAMPLE_BATCH,
                             margin1=0.0, seed=0)

    key = jax.random.PRNGKey(0)
    ks = jax.random.split(key, 8)

    def cls_idx(k, shape):
        return jax.random.randint(k, shape, 0, CLASS_NUM, dtype=jnp.int32)

    def rel_idx(k, shape):
        return jax.random.randint(k, shape, 0, REL_NUM, dtype=jnp.int32)

    inputs = {
        'nf1': cls_idx(ks[0], (N_AXIOMS, 2)),
        'nf2': cls_idx(ks[1], (N_AXIOMS, 3)),
        'nf3': jnp.concatenate(
            [cls_idx(ks[2], (N_AXIOMS, 1)), rel_idx(ks[3], (N_AXIOMS, 1)),
             cls_idx(ks[2], (N_AXIOMS, 1))], axis=1),
        'nf4': jnp.concatenate(
            [rel_idx(ks[4], (N_AXIOMS, 1)), cls_idx(ks[5], (N_AXIOMS, 1)),
             cls_idx(ks[5], (N_AXIOMS, 1))], axis=1),
        'disjoint': cls_idx(ks[6], (N_AXIOMS, 2)),
        'nf3_neg': jnp.concatenate(
            [cls_idx(ks[7], (N_AXIOMS, 1)), rel_idx(ks[7], (N_AXIOMS, 1)),
             cls_idx(ks[7], (N_AXIOMS, 1))], axis=1),
    }

    fwd_key = jax.random.PRNGKey(123)
    out = model.forward(inputs, fwd_key)
    total_loss = jax.block_until_ready(out[0])
    assert total_loss.shape == () and jnp.isfinite(total_loss)

    # Correctness check against a pure-JAX reference of the PyTorch module
    # (same sampling key -> same sampled axioms).
    sampled = model.sample_axioms(inputs, fwd_key)
    ref_total = jax.block_until_ready(_reference_total(model, sampled))
    assert jnp.allclose(total_loss, ref_total, rtol=2e-3, atol=1e-5), \
        (float(total_loss), float(ref_total))

    print("KERNEL_OK")
</pallas_src>

<mosaic_0001>
module attributes {stable_mosaic.version = 11 : i64} {
  func.func @_fused_elbox_kernel(%arg0: memref<1x1664xi32, #tpu.memory_space<vmem>>, %arg1: memref<1x384xi32, #tpu.memory_space<vmem>>, %arg2: memref<64x20xf32, #tpu.memory_space<vmem>>, %arg3: memref<32x5xf32, #tpu.memory_space<vmem>>, %arg4: memref<1x1xf32, #tpu.memory_space<smem>>) attributes {dimension_semantics = [], scalar_prefetch = 0 : i64, scratch_operands = 0 : i64, tpu.core_type = #tpu.core_type<tc>} {
    %0 = tpu.iota {dimensions = array<i32: 0>} : vector<20x1664xi32>
    %c0 = arith.constant 0 : index
    %c0_0 = arith.constant 0 : index
    %1 = vector.load %arg0[%c0, %c0_0] : memref<1x1664xi32, #tpu.memory_space<vmem>>, vector<1x1664xi32>
    %2 = vector.broadcast %1 : vector<1x1664xi32> to vector<20x1664xi32>
    %3 = arith.cmpi eq, %0, %2 : vector<20x1664xi32>
    %4 = arith.extui %3 : vector<20x1664xi1> to vector<20x1664xi32>
    %5 = arith.sitofp %4 : vector<20x1664xi32> to vector<20x1664xf32>
    %c0_1 = arith.constant 0 : index
    %c0_2 = arith.constant 0 : index
    %6 = vector.load %arg2[%c0_1, %c0_2] : memref<64x20xf32, #tpu.memory_space<vmem>>, vector<64x20xf32>
    %cst = arith.constant dense<0.000000e+00> : vector<64x1664xf32>
    %7 = tpu.matmul %6, %5, %cst {dimension_numbers = #tpu.dot_dimension_numbers<[1], [0], [0], [1], [0, 0, 1, 1], [], []>, precision = #tpu.contract_precision<fp32>} : vector<64x20xf32>, vector<20x1664xf32>, vector<64x1664xf32> -> vector<64x1664xf32>
    %8 = tpu.iota {dimensions = array<i32: 0>} : vector<5x384xi32>
    %c0_3 = arith.constant 0 : index
    %c0_4 = arith.constant 0 : index
    %9 = vector.load %arg1[%c0_3, %c0_4] : memref<1x384xi32, #tpu.memory_space<vmem>>, vector<1x384xi32>
    %10 = vector.broadcast %9 : vector<1x384xi32> to vector<5x384xi32>
    %11 = arith.cmpi eq, %8, %10 : vector<5x384xi32>
    %12 = arith.extui %11 : vector<5x384xi1> to vector<5x384xi32>
    %13 = arith.sitofp %12 : vector<5x384xi32> to vector<5x384xf32>
    %c0_5 = arith.constant 0 : index
    %c0_6 = arith.constant 0 : index
    %14 = vector.load %arg3[%c0_5, %c0_6] : memref<32x5xf32, #tpu.memory_space<vmem>>, vector<32x5xf32>
    %cst_7 = arith.constant dense<0.000000e+00> : vector<32x384xf32>
    %15 = tpu.matmul %14, %13, %cst_7 {dimension_numbers = #tpu.dot_dimension_numbers<[1], [0], [0], [1], [0, 0, 1, 1], [], []>, precision = #tpu.contract_precision<fp32>} : vector<32x5xf32>, vector<5x384xf32>, vector<32x384xf32> -> vector<32x384xf32>
    %16 = vector.extract_strided_slice %7 {offsets = [0, 0], sizes = [32, 128], strides = [1, 1]} : vector<64x1664xf32> to vector<32x128xf32>
    %17 = vector.extract_strided_slice %7 {offsets = [32, 0], sizes = [32, 128], strides = [1, 1]} : vector<64x1664xf32> to vector<32x128xf32>
    %18 = vector.extract_strided_slice %7 {offsets = [0, 128], sizes = [32, 128], strides = [1, 1]} : vector<64x1664xf32> to vector<32x128xf32>
    %19 = vector.extract_strided_slice %7 {offsets = [32, 128], sizes = [32, 128], strides = [1, 1]} : vector<64x1664xf32> to vector<32x128xf32>
    %20 = arith.subf %16, %18 : vector<32x128xf32>
    %21 = math.absf %20 : vector<32x128xf32>
    %cst_8 = arith.constant 1.000000e+00 : f32
    %22 = vector.broadcast %cst_8 : f32 to vector<32x128xf32>
    %23 = arith.mulf %22, %21 : vector<32x128xf32>
    %24 = math.absf %17 : vector<32x128xf32>
    %cst_9 = arith.constant 1.000000e+00 : f32
    %25 = vector.broadcast %cst_9 : f32 to vector<32x128xf32>
    %26 = arith.mulf %25, %24 : vector<32x128xf32>
    %27 = arith.addf %23, %26 : vector<32x128xf32>
    %28 = math.absf %19 : vector<32x128xf32>
    %cst_10 = arith.constant -1.000000e+00 : f32
    %29 = vector.broadcast %cst_10 : f32 to vector<32x128xf32>
    %30 = arith.mulf %29, %28 : vector<32x128xf32>
    %31 = arith.addf %27, %30 : vector<32x128xf32>
    %cst_11 = arith.constant 0.000000e+00 : f32
    %32 = vector.broadcast %cst_11 : f32 to vector<32x128xf32>
    %33 = arith.addf %31, %32 : vector<32x128xf32>
    %cst_12 = arith.constant 0.000000e+00 : f32
    %34 = vector.broadcast %cst_12 : f32 to vector<32x128xf32>
    %35 = arith.maximumf %33, %34 : vector<32x128xf32>
    %36 = arith.mulf %35, %35 : vector<32x128xf32>
    %cst_13 = arith.constant dense<0.000000e+00> : vector<128xf32>
    %37 = vector.multi_reduction <add>, %36, %cst_13 [0] : vector<32x128xf32> to vector<128xf32>
    %38 = vector.shape_cast %37 : vector<128xf32> to vector<1x128xf32>
    %39 = vector.extract_strided_slice %7 {offsets = [0, 256], sizes = [32, 128], strides = [1, 1]} : vector<64x1664xf32> to vector<32x128xf32>
    %40 = vector.extract_strided_slice %7 {offsets = [32, 256], sizes = [32, 128], strides = [1, 1]} : vector<64x1664xf32> to vector<32x128xf32>
    %41 = vector.extract_strided_slice %7 {offsets = [0, 384], sizes = [32, 128], strides = [1, 1]} : vector<64x1664xf32> to vector<32x128xf32>
    %42 = vector.extract_strided_slice %7 {offsets = [32, 384], sizes = [32, 128], strides = [1, 1]} : vector<64x1664xf32> to vector<32x128xf32>
    %43 = arith.subf %39, %41 : vector<32x128xf32>
    %44 = math.absf %43 : vector<32x128xf32>
    %cst_14 = arith.constant -1.000000e+00 : f32
    %45 = vector.broadcast %cst_14 : f32 to vector<32x128xf32>
    %46 = arith.mulf %45, %44 : vector<32x128xf32>
    %47 = math.absf %40 : vector<32x128xf32>
    %cst_15 = arith.constant 1.000000e+00 : f32
    %48 = vector.broadcast %cst_15 : f32 to vector<32x128xf32>
    %49 = arith.mulf %48, %47 : vector<32x128xf32>
    %50 = arith.addf %46, %49 : vector<32x128xf32>
    %51 = math.absf %42 : vector<32x128xf32>
    %cst_16 = arith.constant 1.000000e+00 : f32
    %52 = vector.broadcast %cst_16 : f32 to vector<32x128xf32>
    %53 = arith.mulf %52, %51 : vector<32x128xf32>
    %54 = arith.addf %50, %53 : vector<32x128xf32>
    %cst_17 = arith.constant 0.000000e+00 : f32
    %55 = vector.broadcast %cst_17 : f32 to vector<32x128xf32>
    %56 = arith.addf %54, %55 : vector<32x128xf32>
    %cst_18 = arith.constant 0.000000e+00 : f32
    %57 = vector.broadcast %cst_18 : f32 to vector<32x128xf32>
    %58 = arith.maximumf %56, %57 : vector<32x128xf32>
    %59 = arith.mulf %58, %58 : vector<32x128xf32>
    %cst_19 = arith.constant dense<0.000000e+00> : vector<128xf32>
    %60 = vector.multi_reduction <add>, %59, %cst_19 [0] : vector<32x128xf32> to vector<128xf32>
    %61 = vector.shape_cast %60 : vector<128xf32> to vector<1x128xf32>
    %62 = vector.extract_strided_slice %7 {offsets = [0, 512], sizes = [32, 128], strides = [1, 1]} : vector<64x1664xf32> to vector<32x128xf32>
    %63 = vector.extract_strided_slice %7 {offsets = [32, 512], sizes = [32, 128], strides = [1, 1]} : vector<64x1664xf32> to vector<32x128xf32>
    %64 = vector.extract_strided_slice %7 {offsets = [0, 640], sizes = [32, 128], strides = [1, 1]} : vector<64x1664xf32> to vector<32x128xf32>
    %65 = vector.extract_strided_slice %7 {offsets = [32, 640], sizes = [32, 128], strides = [1, 1]} : vector<64x1664xf32> to vector<32x128xf32>
    %66 = vector.extract_strided_slice %15 {offsets = [0, 0], sizes = [32, 128], strides = [1, 1]} : vector<32x384xf32> to vector<32x128xf32>
    %67 = arith.addf %62, %66 : vector<32x128xf32>
    %68 = arith.subf %67, %64 : vector<32x128xf32>
    %69 = math.absf %68 : vector<32x128xf32>
    %cst_20 = arith.constant 1.000000e+00 : f32
    %70 = vector.broadcast %cst_20 : f32 to vector<32x128xf32>
    %71 = arith.mulf %70, %69 : vector<32x128xf32>
    %72 = math.absf %63 : vector<32x128xf32>
    %cst_21 = arith.constant 1.000000e+00 : f32
    %73 = vector.broadcast %cst_21 : f32 to vector<32x128xf32>
    %74 = arith.mulf %73, %72 : vector<32x128xf32>
    %75 = arith.addf %71, %74 : vector<32x128xf32>
    %76 = math.absf %65 : vector<32x128xf32>
    %cst_22 = arith.constant -1.000000e+00 : f32
    %77 = vector.broadcast %cst_22 : f32 to vector<32x128xf32>
    %78 = arith.mulf %77, %76 : vector<32x128xf32>
    %79 = arith.addf %75, %78 : vector<32x128xf32>
    %cst_23 = arith.constant 0.000000e+00 : f32
    %80 = vector.broadcast %cst_23 : f32 to vector<32x128xf32>
    %81 = arith.addf %79, %80 : vector<32x128xf32>
    %cst_24 = arith.constant 0.000000e+00 : f32
    %82 = vector.broadcast %cst_24 : f32 to vector<32x128xf32>
    %83 = arith.maximumf %81, %82 : vector<32x128xf32>
    %84 = arith.mulf %83, %83 : vector<32x128xf32>
    %cst_25 = arith.constant dense<0.000000e+00> : vector<128xf32>
    %85 = vector.multi_reduction <add>, %84, %cst_25 [0] : vector<32x128xf32> to vector<128xf32>
    %86 = vector.shape_cast %85 : vector<128xf32> to vector<1x128xf32>
    %87 = vector.extract_strided_slice %7 {offsets = [0, 768], sizes = [32, 128], strides = [1, 1]} : vector<64x1664xf32> to vector<32x128xf32>
    %88 = vector.extract_strided_slice %7 {offsets = [32, 768], sizes = [32, 128], strides = [1, 1]} : vector<64x1664xf32> to vector<32x128xf32>
    %89 = vector.extract_strided_slice %7 {offsets = [0, 896], sizes = [32, 128], strides = [1, 1]} : vector<64x1664xf32> to vector<32x128xf32>
    %90 = vector.extract_strided_slice %7 {offsets = [32, 896], sizes = [32, 128], strides = [1, 1]} : vector<64x1664xf32> to vector<32x128xf32>
    %91 = vector.extract_strided_slice %15 {offsets = [0, 128], sizes = [32, 128], strides = [1, 1]} : vector<32x384xf32> to vector<32x128xf32>
    %92 = arith.subf %87, %91 : vector<32x128xf32>
    %93 = arith.subf %92, %89 : vector<32x128xf32>
    %94 = math.absf %93 : vector<32x128xf32>
    %cst_26 = arith.constant 1.000000e+00 : f32
    %95 = vector.broadcast %cst_26 : f32 to vector<32x128xf32>
    %96 = arith.mulf %95, %94 : vector<32x128xf32>
    %97 = math.absf %88 : vector<32x128xf32>
    %cst_27 = arith.constant -1.000000e+00 : f32
    %98 = vector.broadcast %cst_27 : f32 to vector<32x128xf32>
    %99 = arith.mulf %98, %97 : vector<32x128xf32>
    %100 = arith.addf %96, %99 : vector<32x128xf32>
    %101 = math.absf %90 : vector<32x128xf32>
    %cst_28 = arith.constant -1.000000e+00 : f32
    %102 = vector.broadcast %cst_28 : f32 to vector<32x128xf32>
    %103 = arith.mulf %102, %101 : vector<32x128xf32>
    %104 = arith.addf %100, %103 : vector<32x128xf32>
    %cst_29 = arith.constant 0.000000e+00 : f32
    %105 = vector.broadcast %cst_29 : f32 to vector<32x128xf32>
    %106 = arith.addf %104, %105 : vector<32x128xf32>
    %cst_30 = arith.constant 0.000000e+00 : f32
    %107 = vector.broadcast %cst_30 : f32 to vector<32x128xf32>
    %108 = arith.maximumf %106, %107 : vector<32x128xf32>
    %109 = arith.mulf %108, %108 : vector<32x128xf32>
    %cst_31 = arith.constant dense<0.000000e+00> : vector<128xf32>
    %110 = vector.multi_reduction <add>, %109, %cst_31 [0] : vector<32x128xf32> to vector<128xf32>
    %111 = vector.shape_cast %110 : vector<128xf32> to vector<1x128xf32>
    %112 = vector.extract_strided_slice %7 {offsets = [0, 1024], sizes = [32, 128], strides = [1, 1]} : vector<64x1664xf32> to vector<32x128xf32>
    %113 = vector.extract_strided_slice %7 {offsets = [32, 1024], sizes = [32, 128], strides = [1, 1]} : vector<64x1664xf32> to vector<32x128xf32>
    %114 = vector.extract_strided_slice %7 {offsets = [0, 1152], sizes = [32, 128], strides = [1, 1]} : vector<64x1664xf32> to vector<32x128xf32>
    %115 = vector.extract_strided_slice %7 {offsets = [32, 1152], sizes = [32, 128], strides = [1, 1]} : vector<64x1664xf32> to vector<32x128xf32>
    %116 = vector.extract_strided_slice %15 {offsets = [0, 256], sizes = [32, 128], strides = [1, 1]} : vector<32x384xf32> to vector<32x128xf32>
    %117 = arith.addf %112, %116 : vector<32x128xf32>
    %118 = arith.subf %117, %114 : vector<32x128xf32>
    %119 = math.absf %118 : vector<32x128xf32>
    %cst_32 = arith.constant 1.000000e+00 : f32
    %120 = vector.broadcast %cst_32 : f32 to vector<32x128xf32>
    %121 = arith.mulf %120, %119 : vector<32x128xf32>
    %122 = math.absf %113 : vector<32x128xf32>
    %cst_33 = arith.constant -1.000000e+00 : f32
    %123 = vector.broadcast %cst_33 : f32 to vector<32x128xf32>
    %124 = arith.mulf %123, %122 : vector<32x128xf32>
    %125 = arith.addf %121, %124 : vector<32x128xf32>
    %126 = math.absf %115 : vector<32x128xf32>
    %cst_34 = arith.constant -1.000000e+00 : f32
    %127 = vector.broadcast %cst_34 : f32 to vector<32x128xf32>
    %128 = arith.mulf %127, %126 : vector<32x128xf32>
    %129 = arith.addf %125, %128 : vector<32x128xf32>
    %cst_35 = arith.constant -0.000000e+00 : f32
    %130 = vector.broadcast %cst_35 : f32 to vector<32x128xf32>
    %131 = arith.addf %129, %130 : vector<32x128xf32>
    %cst_36 = arith.constant 0.000000e+00 : f32
    %132 = vector.broadcast %cst_36 : f32 to vector<32x128xf32>
    %133 = arith.maximumf %131, %132 : vector<32x128xf32>
    %134 = arith.mulf %133, %133 : vector<32x128xf32>
    %cst_37 = arith.constant dense<0.000000e+00> : vector<128xf32>
    %135 = vector.multi_reduction <add>, %134, %cst_37 [0] : vector<32x128xf32> to vector<128xf32>
    %136 = vector.shape_cast %135 : vector<128xf32> to vector<1x128xf32>
    %137 = math.sqrt %136 : vector<1x128xf32>
    %cst_38 = arith.constant 2.000000e+00 : f32
    %138 = vector.broadcast %cst_38 : f32 to vector<1x128xf32>
    %139 = arith.subf %137, %138 : vector<1x128xf32>
    %140 = arith.mulf %139, %139 : vector<1x128xf32>
    %141 = vector.extract_strided_slice %7 {offsets = [0, 1280], sizes = [32, 128], strides = [1, 1]} : vector<64x1664xf32> to vector<32x128xf32>
    %142 = vector.extract_strided_slice %7 {offsets = [32, 1280], sizes = [32, 128], strides = [1, 1]} : vector<64x1664xf32> to vector<32x128xf32>
    %143 = vector.extract_strided_slice %7 {offsets = [0, 1408], sizes = [32, 128], strides = [1, 1]} : vector<64x1664xf32> to vector<32x128xf32>
    %144 = vector.extract_strided_slice %7 {offsets = [32, 1408], sizes = [32, 128], strides = [1, 1]} : vector<64x1664xf32> to vector<32x128xf32>
    %145 = vector.extract_strided_slice %7 {offsets = [0, 1536], sizes = [32, 128], strides = [1, 1]} : vector<64x1664xf32> to vector<32x128xf32>
    %146 = vector.extract_strided_slice %7 {offsets = [32, 1536], sizes = [32, 128], strides = [1, 1]} : vector<64x1664xf32> to vector<32x128xf32>
    %147 = math.absf %142 : vector<32x128xf32>
    %148 = math.absf %144 : vector<32x128xf32>
    %149 = math.absf %146 : vector<32x128xf32>
    %150 = arith.subf %141, %147 : vector<32x128xf32>
    %151 = arith.subf %143, %148 : vector<32x128xf32>
    %152 = arith.maximumf %150, %151 : vector<32x128xf32>
    %153 = arith.addf %141, %147 : vector<32x128xf32>
    %154 = arith.addf %143, %148 : vector<32x128xf32>
    %155 = arith.minimumf %153, %154 : vector<32x128xf32>
    %156 = arith.subf %155, %152 : vector<32x128xf32>
    %cst_39 = arith.constant 5.000000e-01 : f32
    %157 = vector.broadcast %cst_39 : f32 to vector<32x128xf32>
    %158 = arith.mulf %156, %157 : vector<32x128xf32>
    %cst_40 = arith.constant 0.000000e+00 : f32
    %159 = vector.broadcast %cst_40 : f32 to vector<32x128xf32>
    %160 = arith.maximumf %158, %159 : vector<32x128xf32>
    %cst_41 = arith.constant 1.000000e+04 : f32
    %161 = vector.broadcast %cst_41 : f32 to vector<32x128xf32>
    %162 = arith.mulf %160, %161 : vector<32x128xf32>
    %163 = arith.addf %152, %155 : vector<32x128xf32>
    %cst_42 = arith.constant 5.000000e-01 : f32
    %164 = vector.broadcast %cst_42 : f32 to vector<32x128xf32>
    %165 = arith.mulf %163, %164 : vector<32x128xf32>
    %166 = arith.subf %165, %145 : vector<32x128xf32>
    %167 = math.absf %166 : vector<32x128xf32>
    %168 = arith.addf %167, %160 : vector<32x128xf32>
    %169 = arith.subf %168, %149 : vector<32x128xf32>
    %cst_43 = arith.constant 0.000000e+00 : f32
    %170 = vector.broadcast %cst_43 : f32 to vector<32x128xf32>
    %171 = arith.addf %169, %170 : vector<32x128xf32>
    %cst_44 = arith.constant 0.000000e+00 : f32
    %172 = vector.broadcast %cst_44 : f32 to vector<32x128xf32>
    %173 = arith.maximumf %171, %172 : vector<32x128xf32>
    %174 = arith.minimumf %162, %173 : vector<32x128xf32>
    %175 = arith.mulf %174, %174 : vector<32x128xf32>
    %cst_45 = arith.constant dense<0.000000e+00> : vector<128xf32>
    %176 = vector.multi_reduction <add>, %175, %cst_45 [0] : vector<32x128xf32> to vector<128xf32>
    %177 = vector.shape_cast %176 : vector<128xf32> to vector<1x128xf32>
    %178 = arith.subf %152, %155 : vector<32x128xf32>
    %cst_46 = arith.constant 0.000000e+00 : f32
    %179 = vector.broadcast %cst_46 : f32 to vector<32x128xf32>
    %180 = arith.maximumf %178, %179 : vector<32x128xf32>
    %181 = arith.mulf %180, %180 : vector<32x128xf32>
    %cst_47 = arith.constant dense<0.000000e+00> : vector<128xf32>
    %182 = vector.multi_reduction <add>, %181, %cst_47 [0] : vector<32x128xf32> to vector<128xf32>
    %183 = vector.shape_cast %182 : vector<128xf32> to vector<1x128xf32>
    %184 = math.sqrt %177 : vector<1x128xf32>
    %185 = math.sqrt %183 : vector<1x128xf32>
    %186 = arith.addf %38, %61 : vector<1x128xf32>
    %187 = arith.addf %186, %86 : vector<1x128xf32>
    %188 = arith.addf %187, %111 : vector<1x128xf32>
    %189 = arith.addf %188, %140 : vector<1x128xf32>
    %190 = arith.addf %189, %177 : vector<1x128xf32>
    %191 = arith.addf %190, %183 : vector<1x128xf32>
    %192 = vector.shape_cast %191 : vector<1x128xf32> to vector<1x1x128xf32>
    %cst_48 = arith.constant dense<0.000000e+00> : vector<1xf32>
    %193 = vector.multi_reduction <add>, %192, %cst_48 [1, 2] : vector<1x1x128xf32> to vector<1xf32>
    %194 = vector.shape_cast %193 : vector<1xf32> to vector<1x1x1xf32>
    %195 = vector.extract %194[0, 0, 0] : f32 from vector<1x1x1xf32>
    %196 = vector.shape_cast %184 : vector<1x128xf32> to vector<1x1x128xf32>
    %cst_49 = arith.constant dense<0.000000e+00> : vector<1xf32>
    %197 = vector.multi_reduction <add>, %196, %cst_49 [1, 2] : vector<1x1x128xf32> to vector<1xf32>
    %198 = vector.shape_cast %197 : vector<1xf32> to vector<1x1x1xf32>
    %199 = vector.extract %198[0, 0, 0] : f32 from vector<1x1x1xf32>
    %200 = vector.shape_cast %185 : vector<1x128xf32> to vector<1x1x128xf32>
    %cst_50 = arith.constant dense<0.000000e+00> : vector<1xf32>
    %201 = vector.multi_reduction <add>, %200, %cst_50 [1, 2] : vector<1x1x128xf32> to vector<1xf32>
    %202 = vector.shape_cast %201 : vector<1xf32> to vector<1x1x1xf32>
    %203 = vector.extract %202[0, 0, 0] : f32 from vector<1x1x1xf32>
    %cst_51 = arith.constant 7.812500e-03 : f32
    %204 = arith.mulf %195, %cst_51 : f32
    %cst_52 = arith.constant 7.812500e-03 : f32
    %205 = arith.mulf %199, %cst_52 : f32
    %cst_53 = arith.constant 2.000000e+00 : f32
    %206 = arith.mulf %cst_53, %205 : f32
    %cst_54 = arith.constant 7.812500e-03 : f32
    %207 = arith.mulf %203, %cst_54 : f32
    %208 = arith.mulf %206, %207 : f32
    %209 = arith.addf %204, %208 : f32
    %c0_55 = arith.constant 0 : index
    %c0_56 = arith.constant 0 : index
    %210 = memref.load %arg4[%c0_55, %c0_56] : memref<1x1xf32, #tpu.memory_space<smem>>
    memref.store %209, %arg4[%c0_55, %c0_56] : memref<1x1xf32, #tpu.memory_space<smem>>
    return
  }
}

</mosaic_0001>

<bundles_post_ra>
// kernel: _loss_from_samples.1
= control target key start
LH: loop header
LB: loop body
LE: loop exit
PB: predicated region body
PF: predicated region fallthrough
CT: control target
= control target key end

     0   :  { %v18_v0 = vlaneseq  ;;  %vm187_vm0 = vcmask 1043456   ;;  %vm162_vm1 = vcmask 162816   ;;  %s9567_s0 = inlined_call_operand.vmem [shape: s32[1,1664], index: 0, kind: input, shape index: {}]   ;;  %s9568_s1 = inlined_call_operand.vmem [shape: s32[1,384], index: 1, kind: input, shape index: {}]   ;;  %s9569_s2 = inlined_call_operand.vmem [shape: f32[64,20], index: 2, kind: input, shape index: {}]   ;;  %s9570_s3 = inlined_call_operand.vmem [shape: f32[32,5], index: 3, kind: input, shape index: {}]   ;;  %s9571_s4 = inlined_call_operand.hbm [shape: f32[1,1], index: 4, kind: output, shape index: {}]  }
   0x1   :  { %v6760_v1 = vld [vmem:[%s9567_s0] sm:$0xff]  ;;  %v160_v3 = vld [vmem:[%s9569_s2 + $0x30] sm:$0xff]  ;;  %v155_v5 = vld [vmem:[%s9569_s2 + $0x8] sm:$0xff] }
   0x2   :  { %v154_v2 = vld [vmem:[%s9569_s2] sm:$0xff]  ;;  %v24_v4 = vperm.slane %v6760_v1, 0  ;;  %v161_v6 = vld [vmem:[%s9569_s2 + $0x38] sm:$0xff]  ;;  %v6775_v7 = vshrl.u32 %v18_v0, 7  ;;  %v182_v9 = vsel %vm162_vm1, %v160_v3, 0  ;;  %v167_v10 = vsel %vm162_vm1, %v155_v5, 0 }
   0x3   :  { %v164_v8 = vsel %vm162_vm1, %v154_v2, 0  ;;  %v6782_v12 = vand.u32 4294901760, %v182_v9  ;;  %v6784_v13 = vand.u32 4294901760, %v167_v10  ;;  %v185_v14 = vsel %vm162_vm1, %v161_v6, 0 }
   0x4   :  { %9655 = vst [vmem:[#allocation5_spill] sm:$0xff] %v6775_v7  ;;  %v6780_v11 = vand.u32 4294901760, %v164_v8 }
   0x5   :  { %9 = vsyncpa [#allocation3], 0  ;;  %v6788_v15 = vadd.s32 16, %v6775_v7  ;;  %v6791_v16 = vadd.s32 8, %v6775_v7  ;;  %vm6794_vm2 = vcmp.eq.s32.totalorder %v6775_v7, %v24_v4  ;;  %v6798_v18 = vand.u32 4294901760, %v185_v14  ;;  %v156_v31 = vld [vmem:[%s9569_s2 + $0x10] sm:$0xff] }
   0x6   :  { %v6801_v19 = vsub.f32 %v164_v8, %v6780_v11  ;;  %v6804_v20 = vsub.f32 %v182_v9, %v6782_v12  ;;  %v6807_v21 = vsub.f32 %v167_v10, %v6784_v13  ;;  %v9572_v22 = vmov 0.0   ;;  %v157_v47 = vld [vmem:[%s9569_s2 + $0x18] sm:$0xff]  ;;  %s6512_s30 = sshll.u32 %s9571_s4, 4  ;;  %s6513_s30 = int_to_ptr.hbm [resolvable:$true] %s6512_s30 }
   0x7   :  { %9656 = vst [vmem:[#allocation6_spill] sm:$0xff] %v6791_v16  ;;  %v6522_v23 = vsel %vm6794_vm2, 1.0, %v9572_v22  ;;  %vm63_vm3 = vcmp.eq.s32.totalorder %v6788_v15, %v24_v4  ;;  %vm6814_vm4 = vcmp.eq.s32.totalorder %v6791_v16, %v24_v4  ;;  %v6819_v25 = vsub.f32 %v185_v14, %v6798_v18  ;;  %v158_v4 = vld [vmem:[%s9569_s2 + $0x20] sm:$0xff] }
   0x8   :  { %9659 = vst [vmem:[#allocation7_spill] sm:$0xff] %v6801_v19  ;;  %v337_v26 = vsub.f32 %v6522_v23, %v6522_v23  ;;  %v6822_v27 = vsel %vm63_vm3, 1.0, %v9572_v22  ;;  %v6825_v28 = vand.u32 4294901760, %v6801_v19  ;;  %v6828_v29 = vand.u32 4294901760, %v6804_v20 }
   0x9   :  { %9660 = vst [vmem:[#allocation8_spill] sm:$0xff] %v6804_v20  ;;  %v6535_v30 = vsel %vm6814_vm4, 1.0, %v9572_v22  ;;  %6561 = vmatpush.msk.msra.mxu0 %vm187_vm0, %v6822_v27  ;;  %6691 = vmatpush.msk.msra.mxu2 %vm187_vm0, %v6822_v27  ;;  %v189_v32 = vsel %vm187_vm0, %v6822_v27, 0  ;;  %v6843_v34 = vand.u32 4294901760, %v6807_v21  ;;  %v6846_v35 = vperm.slane %v6760_v1, 1 }
   0xa   :  { %9661 = vst [vmem:[#allocation9_spill] sm:$0xff] %v6807_v21  ;;  %v331_v33 = vsub.f32 %v6535_v30, %v6535_v30  ;;  %v249_v36 = vsub.f32 %v6801_v19, %v6825_v28  ;;  %v297_v37 = vsub.f32 %v6804_v20, %v6828_v29  ;;  %v325_v38 = vsub.f32 %v189_v32, %v189_v32 }
   0xb   :  { %9664 = vst [vmem:[#allocation10_spill] sm:$0xff] %v6819_v25  ;;  %v6853_v39 = vand.u32 4294901760, %v6819_v25  ;;  %v9574_v40 = vmov 1.0   ;;  %v338_v42 = vand.u32 4294901760, %v337_v26  ;;  %v170_v43 = vsel %vm162_vm1, %v156_v31, 0  ;;  %v159_v31 = vld [vmem:[%s9569_s2 + $0x28] sm:$0xff] }
   0xc   :  { %9665 = vst [vmem:[#allocation11_spill] sm:$0xff] %v6825_v28  ;;  %6562 = vmatpush.msk.msra.mxu0 %vm6814_vm4, %v9574_v40  ;;  %6692 = vmatpush.msk.msra.mxu2 %vm6814_vm4, %v9574_v40  ;;  %v332_v41 = vand.u32 4294901760, %v331_v33  ;;  %v6862_v44 = vand.u32 4294901760, %v249_v36  ;;  %v6864_v45 = vand.u32 4294901760, %v297_v37  ;;  %v326_v46 = vand.u32 4294901760, %v325_v38  ;;  %s6731_s2 = smov [#allocation2]  }
   0xd   :  { %9666 = vst [vmem:[#allocation12_spill] sm:$0xff] %v6828_v29  ;;  %v257_v49 = vsub.f32 %v6807_v21, %v6843_v34  ;;  %v6877_v50 = vand.u32 4294901760, %v170_v43  ;;  %v305_v52 = vsub.f32 %v6819_v25, %v6853_v39  ;;  %vm64_vm5 = vcmp.eq.s32.totalorder %v6788_v15, %v6846_v35 }
   0xe   :  { %9667 = vst [vmem:[#allocation13_spill] sm:$0xff] %v6843_v34  ;;  %6563 = vmatpush.msk.msra.mxu0 %vm6794_vm2, %v9574_v40  ;;  %6693 = vmatpush.msk.msra.mxu2 %vm6794_vm2, %v9574_v40  ;;  %v333_v48 = vsub.f32 %v331_v33, %v332_v41  ;;  %v327_v51 = vsub.f32 %v325_v38, %v326_v46  ;;  %v6889_v55 = vsel %vm64_vm5, 1.0, %v9572_v22  ;;  %v173_v56 = vsel %vm162_vm1, %v157_v47, 0 }
   0xf   :  { %9668 = vst [vmem:[#allocation14_spill] sm:$0xff] %v6864_v45  ;;  %251 = vmatmul.f32.vlgmr.msra.gmra.mxu0 %v6862_v44  ;;  %299 = vmatmul.f32.vlgmr.msra.gmra.mxu2 %v6864_v45  ;;  %v339_v53 = vsub.f32 %v337_v26, %v338_v42  ;;  %v6886_v54 = vsub.f32 %v170_v43, %v6877_v50  ;;  %v192_v59 = vsel %vm187_vm0, %v6889_v55, 0  ;;  %v6896_v61 = vand.u32 4294901760, %v257_v49 }
  0x10   :  { %390 = vmatpush.msrb.mxu2 %v325_v38  ;;  %522 = vmatpush.msrb.mxu0 %v326_v46  ;;  %v328_v57 = vand.u32 4294901760, %v327_v51  ;;  %v334_v58 = vand.u32 4294901760, %v333_v48  ;;  %v6894_v60 = vsub.f32 %v192_v59, %v192_v59  ;;  %v6898_v62 = vand.u32 4294901760, %v305_v52 }
  0x11   :  { %9669 = vst [vmem:[#allocation15_spill] sm:$0xff] %v6886_v54  ;;  %v6901_v63 = vand.u32 4294901760, %v6886_v54  ;;  %v6903_v0 = vand.u32 4294901760, %v173_v56  ;;  %v340_v2 = vand.u32 4294901760, %v339_v53  ;;  %v176_v9 = vsel %vm162_vm1, %v158_v4, 0 }
  0x12   :  { %393 = vmatpush.msrb.mxu2 %v331_v33  ;;  %526 = vmatpush.msrb.mxu0 %v332_v41  ;;  %9670 = vst [vmem:[#allocation16_spill] sm:$0xff] %v6896_v61  ;;  %v715_v3 = vand.u32 4294901760, %v6894_v60  ;;  %vm51_vm6 = vcmp.eq.s32.totalorder %v6791_v16, %v6846_v35  ;;  %v179_v37 = vsel %vm162_vm1, %v159_v31, 0  ;;  %vm38_vm7 = vcmp.eq.s32.totalorder %v6775_v7, %v6846_v35 }
  0x13   :  { %329 = vmatpush.msra.mxu1 %v328_v57  ;;  %6694 = vmatpush.msra.mxu3 %v328_v57  ;;  %9671 = vst [vmem:[#allocation17_spill] sm:$0xff] %v6901_v63  ;;  %v265_v5 = vsub.f32 %v6886_v54, %v6901_v63  ;;  %v6917_v6 = vsub.f32 %v173_v56, %v6903_v0  ;;  %v6536_v10 = vsel %vm51_vm6, 1.0, %v9572_v22  ;;  %v6523_v51 = vsel %vm38_vm7, 1.0, %v9572_v22 }
  0x14   :  { %396 = vmatpush.msrb.mxu2 %v337_v26  ;;  %530 = vmatpush.msrb.mxu0 %v338_v42  ;;  %v716_v8 = vsub.f32 %v6894_v60, %v715_v3  ;;  %v6940_v26 = vand.u32 4294901760, %v176_v9  ;;  %v720_v30 = vsub.f32 %v6536_v10, %v6536_v10  ;;  %v6982_v42 = vand.u32 4294901760, %v179_v37 }
  0x15   :  { %335 = vmatpush.msra.mxu1 %v334_v58  ;;  %6695 = vmatpush.msra.mxu3 %v334_v58  ;;  %9672 = vst [vmem:[#allocation18_spill] sm:$0xff] %v6917_v6  ;;  %v6935_v14 = vand.u32 4294901760, %v265_v5  ;;  %v6938_v23 = vand.u32 4294901760, %v6917_v6  ;;  %v726_v53 = vsub.f32 %v6523_v51, %v6523_v51  ;;  %v7065_v35 = vperm.slane %v6760_v1, 2 }
  0x16   :  { %6570 = vmatpush.msk.msra.mxu2 %vm187_vm0, %v6889_v55  ;;  %779 = vmatpush.msra.mxu0 %v6894_v60  ;;  %v721_v32 = vand.u32 4294901760, %v720_v30  ;;  %v6966_v33 = vsub.f32 %v176_v9, %v6940_v26  ;;  %v6989_v46 = vsub.f32 %v179_v37, %v6982_v42 }
  0x17   :  { %259 = vmatmul.f32.gmra.mxu0 %v6896_v61  ;;  %307 = vmatmul.f32.gmra.mxu2 %v6898_v62  ;;  %9673 = vst [vmem:[#allocation19_spill] sm:$0xff] %v6938_v23  ;;  %v273_v24 = vsub.f32 %v6917_v6, %v6938_v23  ;;  %v727_v56 = vand.u32 4294901760, %v726_v53  ;;  %vm65_vm8 = vcmp.eq.s32.totalorder %v6788_v15, %v7065_v35 }
  0x18   :  { %341 = vmatpush.msra.mxu1 %v340_v2  ;;  %6696 = vmatpush.msra.mxu3 %v340_v2  ;;  %9674 = vst [vmem:[#allocation20_spill] sm:$0xff] %v6966_v33  ;;  %v722_v36 = vsub.f32 %v720_v30, %v721_v32  ;;  %v6980_v41 = vand.u32 4294901760, %v6966_v33  ;;  %v6996_v48 = vand.u32 4294901760, %v6989_v46  ;;  %vm52_vm9 = vcmp.eq.s32.totalorder %v6791_v16, %v7065_v35 }
  0x19   :  { %343 = vmatmul.f32.vlgmr.msra.gmra.mxu1 %v6780_v11  ;;  %367 = vmatmul.f32.vlgmr.msra.gmra.mxu3 %v6782_v12  ;;  %v6977_v38 = vand.u32 4294901760, %v273_v24  ;;  %9677 = vst [vmem:[#allocation23_spill] sm:$0xff] %v6989_v46  ;;  %v728_v57 = vsub.f32 %v726_v53, %v727_v56  ;;  %v6537_v5 = vsel %vm52_vm9, 1.0, %v9572_v22  ;;  %vm39_vm10 = vcmp.eq.s32.totalorder %v6775_v7, %v7065_v35 }
  0x1a   :  { %6564 = vmatpush.msk.msrb.mxu3 %vm187_vm0, %v6822_v27  ;;  %6567 = vmatpush.msk.msrb.mxu1 %vm187_vm0, %v6822_v27  ;;  %v717_v27 = vand.u32 4294901760, %v716_v8  ;;  %v723_v17 = vand.u32 4294901760, %v722_v36  ;;  %9676 = vst [vmem:[#allocation22_spill] sm:$0xff] %v6980_v41  ;;  %v281_v43 = vsub.f32 %v6966_v33, %v6980_v41  ;;  %v289_v49 = vsub.f32 %v6989_v46, %v6996_v48 }
  0x1b   :  { %6571 = vmatpush.msk.msra.mxu2 %vm51_vm6, %v9574_v40  ;;  %782 = vmatpush.msra.mxu0 %v720_v30  ;;  %9675 = vst [vmem:[#allocation21_spill] sm:$0xff] %v6977_v38  ;;  %v729_v58 = vand.u32 4294901760, %v728_v57  ;;  %v1109_v8 = vsub.f32 %v6537_v5, %v6537_v5  ;;  %v6524_v51 = vsel %vm39_vm10, 1.0, %v9572_v22 }
  0x1c   :  { %6565 = vmatpush.msk.msrb.mxu3 %vm6814_vm4, %v9574_v40  ;;  %6568 = vmatpush.msk.msrb.mxu1 %vm6814_vm4, %v9574_v40  ;;  %v6993_v47 = vand.u32 4294901760, %v281_v43  ;;  %9679 = vst [vmem:[#allocation25_spill] sm:$0xff] %v6996_v48  ;;  %v7018_v52 = vand.u32 4294901760, %v289_v49 }
  0x1d   :  { %6572 = vmatpush.msk.msra.mxu2 %vm38_vm7, %v9574_v40  ;;  %785 = vmatpush.msra.mxu0 %v726_v53  ;;  %v1110_v9 = vand.u32 4294901760, %v1109_v8  ;;  %v1115_v53 = vsub.f32 %v6524_v51, %v6524_v51 }
  0x1e   :  { %6566 = vmatpush.msk.msrb.mxu3 %vm6794_vm2, %v9574_v40  ;;  %6569 = vmatpush.msk.msrb.mxu1 %vm6794_vm2, %v9574_v40  ;;  %9678 = vst [vmem:[#allocation24_spill] sm:$0xff] %v6993_v47 }
  0x1f   :  { %267 = vmatmul.f32.gmra.mxu0 %v6935_v14  ;;  %399 = vmatmul.f32.vlgmr.msrb.gmra.mxu2 %v6801_v19  ;;  %9680 = vst [vmem:[#allocation26_spill] sm:$0xff] %v7018_v52  ;;  %v1111_v30 = vsub.f32 %v1109_v8, %v1110_v9  ;;  %v1116_v57 = vand.u32 4294901760, %v1115_v53 }
  0x20   :  { %718 = vmatpush.msra.mxu3 %v717_v27  ;;  %6573 = vmatpush.msk.msra.mxu1 %vm187_vm0, %v6889_v55 }
  0x21   :  { %347 = vmatmul.f32.gmra.mxu1 %v6784_v13  ;;  %371 = vmatmul.f32.gmra.mxu3 %v6798_v18  ;;  %v1112_v27 = vand.u32 4294901760, %v1111_v30 }
  0x22   :  { %6574 = vmatpush.msk.msra.mxu1 %vm51_vm6, %v9574_v40  ;;  %724 = vmatpush.msra.mxu3 %v723_v17 }
  0x23   :  { %911 = vmatpush.msrb.mxu2 %v715_v3 }
  0x24   :  { %6575 = vmatpush.msk.msra.mxu1 %vm38_vm7, %v9574_v40  ;;  %730 = vmatpush.msra.mxu3 %v729_v58 }
  0x25   :  { %915 = vmatpush.msrb.mxu2 %v721_v32 }
  0x27   :  { %275 = vmatmul.f32.gmra.mxu0 %v6977_v38  ;;  %404 = vmatmul.f32.gmra.mxu2 %v6807_v21 }
  0x28   :  { %919 = vmatpush.msrb.mxu2 %v727_v56 }
  0x29   :  { %351 = vmatmul.f32.gmra.mxu1 %v6877_v50  ;;  %460 = vmatmul.f32.vlgmr.msrb.gmra.mxu3 %v6825_v28 }
  0x2a   :  { %6576 = vmatpush.msk.msrb.mxu3 %vm187_vm0, %v6889_v55  ;;  %v7070_v55 = vsel %vm65_vm8, 1.0, %v9572_v22 }
  0x2b   :  { %v195_v59 = vsel %vm187_vm0, %v7070_v55, 0 }
  0x2c   :  { %6577 = vmatpush.msk.msrb.mxu3 %vm51_vm6, %v9574_v40  ;;  %v1103_v60 = vsub.f32 %v195_v59, %v195_v59 }
  0x2e   :  { %6578 = vmatpush.msk.msrb.mxu3 %vm38_vm7, %v9574_v40  ;;  %v1104_v2 = vand.u32 4294901760, %v1103_v60 }
  0x2f   :  { %283 = vmatmul.f32.gmra.mxu0 %v6993_v47  ;;  %409 = vmatmul.f32.gmra.mxu2 %v6886_v54 }
  0x30   :  { %v1105_v3 = vsub.f32 %v1103_v60, %v1104_v2 }
  0x31   :  { %355 = vmatmul.f32.gmra.mxu1 %v6903_v0  ;;  %466 = vmatmul.f32.gmra.mxu3 %v6843_v34 }
  0x32   :  { %v1106_v4 = vand.u32 4294901760, %v1105_v3 }
  0x37   :  { %291 = vmatmul.f32.gmra.mxu0 %v7018_v52  ;;  %414 = vmatmul.f32.gmra.mxu2 %v6917_v6 }
  0x39   :  { %359 = vmatmul.f32.gmra.mxu1 %v6940_v26  ;;  %472 = vmatmul.f32.gmra.mxu3 %v6901_v63 }
  0x3f   :  { %419 = vmatmul.f32.gmra.mxu2 %v6966_v33  ;;  %532 = vmatmul.f32.vlgmr.msrb.gmra.mxu0 %v6780_v11 }
  0x40   :  { %6579 = vmatpush.msk.msrb.mxu0 %vm187_vm0, %v7070_v55 }
  0x41   :  { %363 = vmatmul.f32.gmra.mxu1 %v6982_v42  ;;  %478 = vmatmul.f32.gmra.mxu3 %v6938_v23 }
  0x42   :  { %6580 = vmatpush.msk.msrb.mxu0 %vm52_vm9, %v9574_v40 }
  0x44   :  { %6581 = vmatpush.msk.msrb.mxu0 %vm39_vm10, %v9574_v40 }
  0x47   :  { %424 = vmatmul.f32.gmra.mxu2 %v6989_v46  ;;  %536 = vmatmul.f32.gmra.mxu0 %v6784_v13 }
  0x49   :  { %484 = vmatmul.f32.gmra.mxu3 %v6980_v41  ;;  %584 = vmatmul.f32.vlgmr.msrb.gmra.mxu1 %v6780_v11 }
  0x4a   :  { %1107 = vmatpush.msrb.mxu1 %v1106_v4 }
  0x4c   :  { %1113 = vmatpush.msrb.mxu1 %v1112_v27 }
  0x4f   :  { %429 = vmatmul.f32.gmra.mxu2 %v6804_v20  ;;  %540 = vmatmul.f32.gmra.mxu0 %v6877_v50 }
  0x51   :  { %490 = vmatmul.f32.gmra.mxu3 %v6996_v48  ;;  %588 = vmatmul.f32.gmra.mxu1 %v6784_v13 }
  0x57   :  { %434 = vmatmul.f32.gmra.mxu2 %v6819_v25  ;;  %544 = vmatmul.f32.gmra.mxu0 %v6903_v0 }
  0x59   :  { %496 = vmatmul.f32.gmra.mxu3 %v6828_v29  ;;  %592 = vmatmul.f32.gmra.mxu1 %v6877_v50 }
  0x5f   :  { %548 = vmatmul.f32.gmra.mxu0 %v6940_v26  ;;  %640 = vmatmul.f32.vlgmr.msra.gmra.mxu2 %v6862_v44 }
  0x60   :  { %1168 = vmatpush.msra.mxu2 %v1103_v60  ;;  %v1117_v60 = vsub.f32 %v1115_v53, %v1116_v57 }
  0x61   :  { %502 = vmatmul.f32.gmra.mxu3 %v6853_v39  ;;  %596 = vmatmul.f32.gmra.mxu1 %v6903_v0 }
  0x62   :  { %1171 = vmatpush.msra.mxu2 %v1109_v8  ;;  %v1118_v8 = vand.u32 4294901760, %v1117_v60 }
  0x64   :  { %1174 = vmatpush.msra.mxu2 %v1115_v53  ;;  %1119 = vmatpush.msrb.mxu1 %v1118_v8 }
  0x67   :  { %552 = vmatmul.f32.gmra.mxu0 %v6982_v42  ;;  %648 = vmatmul.f32.gmra.mxu2 %v6896_v61 }
  0x69   :  { %600 = vmatmul.f32.gmra.mxu1 %v6940_v26  ;;  %732 = vmatmul.f32.vlgmr.msra.gmra.mxu3 %v6780_v11 }
  0x6a   :  { %6582 = vmatpush.msk.msra.mxu3 %vm187_vm0, %v7070_v55 }
  0x6c   :  { %6583 = vmatpush.msk.msra.mxu3 %vm52_vm9, %v9574_v40 }
  0x6e   :  { %6584 = vmatpush.msk.msra.mxu3 %vm39_vm10, %v9574_v40 }
  0x6f   :  { %556 = vmatmul.f32.gmra.mxu0 %v6782_v12  ;;  %656 = vmatmul.f32.gmra.mxu2 %v6935_v14 }
  0x71   :  { %604 = vmatmul.f32.gmra.mxu1 %v6982_v42  ;;  %736 = vmatmul.f32.gmra.mxu3 %v6784_v13 }
  0x77   :  { %560 = vmatmul.f32.gmra.mxu0 %v6798_v18  ;;  %664 = vmatmul.f32.gmra.mxu2 %v6977_v38 }
  0x79   :  { %608 = vmatmul.f32.gmra.mxu1 %v6782_v12  ;;  %740 = vmatmul.f32.gmra.mxu3 %v6877_v50 }
  0x7f   :  { %672 = vmatmul.f32.gmra.mxu2 %v6993_v47  ;;  %788 = vmatmul.f32.vlgmr.msra.gmra.mxu0 %v6801_v19 }
  0x80   :  { %1300 = vmatpush.msra.mxu0 %v1104_v2 }
  0x81   :  { %612 = vmatmul.f32.gmra.mxu1 %v6798_v18  ;;  %744 = vmatmul.f32.gmra.mxu3 %v6903_v0 }
  0x82   :  { %1304 = vmatpush.msra.mxu0 %v1110_v9 }
  0x84   :  { %1308 = vmatpush.msra.mxu0 %v1116_v57 }
  0x87   :  { %680 = vmatmul.f32.gmra.mxu2 %v7018_v52  ;;  %793 = vmatmul.f32.gmra.mxu0 %v6807_v21 }
  0x89   :  { %748 = vmatmul.f32.gmra.mxu3 %v6940_v26  ;;  %849 = vmatmul.f32.vlgmr.msra.gmra.mxu1 %v6825_v28 }
  0x8a   :  { %6585 = vmatpush.msk.msra.mxu1 %vm187_vm0, %v7070_v55 }
  0x8c   :  { %v252_v10 = vpop.f32.mrf.mxu0  ;;  %6586 = vmatpush.msk.msra.mxu1 %vm52_vm9, %v9574_v40 }
  0x8e   :  { %6587 = vmatpush.msk.msra.mxu1 %vm39_vm10, %v9574_v40 }
  0x8f   :  { %688 = vmatmul.f32.gmra.mxu2 %v6864_v45  ;;  %798 = vmatmul.f32.gmra.mxu0 %v6886_v54 }
  0x91   :  { %752 = vmatmul.f32.gmra.mxu3 %v6982_v42  ;;  %855 = vmatmul.f32.gmra.mxu1 %v6843_v34 }
  0x92   :  { %v300_v31 = vpop.f32.mrf.mxu2 }
  0x94   :  { %v260_v32 = vpop.f32.mrf.mxu0 }
  0x96   :  { %v344_v24 = vpop.f32.mrf.mxu1 }
  0x97   :  { %696 = vmatmul.f32.gmra.mxu2 %v6898_v62  ;;  %803 = vmatmul.f32.gmra.mxu0 %v6917_v6  ;;  %v345_v56 = vadd.f32 %v344_v24, %v252_v10 }
  0x99   :  { %756 = vmatmul.f32.gmra.mxu3 %v6782_v12  ;;  %861 = vmatmul.f32.gmra.mxu1 %v6901_v63 }
  0x9a   :  { %v308_v36 = vpop.f32.mrf.mxu2 }
  0x9c   :  { %v368_v37 = vpop.f32.mrf.mxu3  ;;  %v268_v17 = vpop.f32.mrf.mxu0 }
  0x9d   :  { %v7112_v43 = vadd.f32 %v368_v37, %v300_v31 }
  0x9e   :  { %v348_v49 = vpop.f32.mrf.mxu1 }
  0x9f   :  { %808 = vmatmul.f32.gmra.mxu0 %v6966_v33  ;;  %921 = vmatmul.f32.vlgmr.msrb.gmra.mxu2 %v6780_v11  ;;  %v349_v2 = vadd.f32 %v348_v49, %v260_v32 }
  0xa1   :  { %760 = vmatmul.f32.gmra.mxu3 %v6798_v18  ;;  %867 = vmatmul.f32.gmra.mxu1 %v6938_v23 }
  0xa2   :  { %v400_v58 = vpop.f32.mrf.mxu2 }
  0xa3   :  { %v401_v59 = vadd.f32 %v400_v58, %v345_v56 }
  0xa4   :  { %v372_v3 = vpop.f32.mrf.mxu3  ;;  %v276_v4 = vpop.f32.mrf.mxu0 }
  0xa5   :  { %v7132_v5 = vadd.f32 %v372_v3, %v308_v36 }
  0xa6   :  { %v352_v30 = vpop.f32.mrf.mxu1 }
  0xa7   :  { %813 = vmatmul.f32.gmra.mxu0 %v6989_v46  ;;  %925 = vmatmul.f32.gmra.mxu2 %v6784_v13  ;;  %v353_v55 = vadd.f32 %v352_v30, %v268_v17 }
  0xa9   :  { %873 = vmatmul.f32.gmra.mxu1 %v6980_v41  ;;  %973 = vmatmul.f32.vlgmr.msrb.gmra.mxu3 %v6780_v11 }
  0xaa   :  { %v405_v9 = vpop.f32.mrf.mxu2 }
  0xab   :  { %v406_v10 = vadd.f32 %v405_v9, %v349_v2 }
  0xac   :  { %v461_v27 = vpop.f32.mrf.mxu3  ;;  %v284_v31 = vpop.f32.mrf.mxu0 }
  0xad   :  { %v7144_v24 = vadd.f32 %v461_v27, %v401_v59 }
  0xae   :  { %v356_v36 = vpop.f32.mrf.mxu1 }
  0xaf   :  { %818 = vmatmul.f32.gmra.mxu0 %v6804_v20  ;;  %929 = vmatmul.f32.gmra.mxu2 %v6877_v50  ;;  %v357_v35 = vadd.f32 %v356_v36, %v276_v4 }
  0xb1   :  { %879 = vmatmul.f32.gmra.mxu1 %v6996_v48  ;;  %977 = vmatmul.f32.gmra.mxu3 %v6784_v13 }
  0xb2   :  { %v410_v32 = vpop.f32.mrf.mxu2 }
  0xb3   :  { %v411_v37 = vadd.f32 %v410_v32, %v353_v55 }
  0xb4   :  { %v467_v49 = vpop.f32.mrf.mxu3  ;;  %v292_v51 = vpop.f32.mrf.mxu0 }
  0xb5   :  { %v7154_v53 = vadd.f32 %v467_v49, %v406_v10 }
  0xb6   :  { %v360_v56 = vpop.f32.mrf.mxu1 }
  0xb7   :  { %823 = vmatmul.f32.gmra.mxu0 %v6819_v25  ;;  %933 = vmatmul.f32.gmra.mxu2 %v6903_v0  ;;  %v361_v8 = vadd.f32 %v360_v56, %v284_v31  ;;  %v7179_v31 = vperm.slane %v6760_v1, 3 }
  0xb9   :  { %885 = vmatmul.f32.gmra.mxu1 %v6828_v29  ;;  %981 = vmatmul.f32.gmra.mxu3 %v6877_v50  ;;  %vm66_vm11 = vcmp.eq.s32.totalorder %v6788_v15, %v7179_v31  ;;  %vm53_vm12 = vcmp.eq.s32.totalorder %v6791_v16, %v7179_v31  ;;  %vm40_vm13 = vcmp.eq.s32.totalorder %v6775_v7, %v7179_v31 }
  0xba   :  { %v415_v17 = vpop.f32.mrf.mxu2  ;;  %v7186_v56 = vsel %vm66_vm11, 1.0, %v9572_v22 }
  0xbb   :  { %v416_v57 = vadd.f32 %v415_v17, %v357_v35  ;;  %6588 = vmatpush.msk.msrb.mxu2 %vm187_vm0, %v7186_v56 }
  0xbc   :  { %v473_v58 = vpop.f32.mrf.mxu3  ;;  %v7160_v59 = vpop.f32.mrf.mxu0 }
  0xbd   :  { %v7162_v60 = vadd.f32 %v473_v58, %v411_v37  ;;  %6589 = vmatpush.msk.msrb.mxu2 %vm53_vm12, %v9574_v40 }
  0xbe   :  { %v364_v3 = vpop.f32.mrf.mxu1 }
  0xbf   :  { %937 = vmatmul.f32.gmra.mxu2 %v6940_v26  ;;  %1029 = vmatmul.f32.vlgmr.msrb.gmra.mxu0 %v6862_v44  ;;  %v365_v36 = vadd.f32 %v364_v3, %v292_v51  ;;  %v198_v51 = vsel %vm187_vm0, %v7186_v56, 0 }
  0xc0   :  { %v7198_v17 = vsub.f32 %v198_v51, %v198_v51 }
  0xc1   :  { %891 = vmatmul.f32.gmra.mxu1 %v6853_v39  ;;  %985 = vmatmul.f32.gmra.mxu3 %v6903_v0 }
  0xc2   :  { %v420_v4 = vpop.f32.mrf.mxu2  ;;  %1557 = vmatpush.msrb.mxu0 %v7198_v17 }
  0xc3   :  { %v421_v30 = vadd.f32 %v420_v4, %v361_v8 }
  0xc4   :  { %v479_v2 = vpop.f32.mrf.mxu3  ;;  %v7168_v9 = vpop.f32.mrf.mxu0 }
  0xc5   :  { %v7170_v10 = vadd.f32 %v479_v2, %v416_v57  ;;  %v1493_v57 = vand.u32 4294901760, %v7198_v17 }
  0xc6   :  { %v7172_v27 = vpop.f32.mrf.mxu1 }
  0xc7   :  { %9681 = vst [vmem:[#allocation27_spill] sm:$0xff] %v7170_v10  ;;  %941 = vmatmul.f32.gmra.mxu2 %v6982_v42  ;;  %1037 = vmatmul.f32.gmra.mxu0 %v6896_v61  ;;  %v1494_v3 = vsub.f32 %v7198_v17, %v1493_v57 }
  0xc9   :  { %989 = vmatmul.f32.gmra.mxu3 %v6940_v26  ;;  %1121 = vmatmul.f32.vlgmr.msrb.gmra.mxu1 %v6780_v11  ;;  %v1495_v2 = vand.u32 4294901760, %v1494_v3  ;;  %v6538_v3 = vsel %vm53_vm12, 1.0, %v9572_v22 }
  0xca   :  { %v425_v55 = vpop.f32.mrf.mxu2  ;;  %6591 = vmatpush.msk.msrb.mxu1 %vm187_vm0, %v7186_v56 }
  0xcb   :  { %v426_v32 = vadd.f32 %v425_v55, %v365_v36  ;;  %1496 = vmatpush.msrb.mxu3 %v1495_v2 }
  0xcc   :  { %v485_v37 = vpop.f32.mrf.mxu3  ;;  %v7183_v49 = vpop.f32.mrf.mxu0  ;;  %6592 = vmatpush.msk.msrb.mxu1 %vm53_vm12, %v9574_v40 }
  0xcd   :  { %v7188_v35 = vadd.f32 %v485_v37, %v421_v30 }
  0xce   :  { %v7196_v1 = vpop.f32.mrf.mxu1 }
  0xcf   :  { %945 = vmatmul.f32.gmra.mxu2 %v6782_v12  ;;  %1045 = vmatmul.f32.gmra.mxu0 %v6935_v14 }
  0xd1   :  { %993 = vmatmul.f32.gmra.mxu3 %v6982_v42  ;;  %1125 = vmatmul.f32.gmra.mxu1 %v6784_v13 }
  0xd2   :  { %v430_v58 = vpop.f32.mrf.mxu2 }
  0xd3   :  { %v431_v8 = vadd.f32 %v430_v58, %v7112_v43 }
  0xd4   :  { %v491_v4 = vpop.f32.mrf.mxu3  ;;  %v7208_v30 = vpop.f32.mrf.mxu0 }
  0xd5   :  { %9682 = vst [vmem:[#allocation28_spill] sm:$0xff] %v7208_v30  ;;  %v7210_v36 = vadd.f32 %v491_v4, %v426_v32 }
  0xd6   :  { %v7212_v55 = vpop.f32.mrf.mxu1 }
  0xd7   :  { %949 = vmatmul.f32.gmra.mxu2 %v6798_v18  ;;  %1053 = vmatmul.f32.gmra.mxu0 %v6977_v38 }
  0xd9   :  { %997 = vmatmul.f32.gmra.mxu3 %v6782_v12  ;;  %1129 = vmatmul.f32.gmra.mxu1 %v6877_v50 }
  0xda   :  { %v435_v37 = vpop.f32.mrf.mxu2 }
  0xdb   :  { %v436_v43 = vadd.f32 %v435_v37, %v7132_v5  ;;  %v1498_v5 = vsub.f32 %v6538_v3, %v6538_v3 }
  0xdc   :  { %v497_v51 = vpop.f32.mrf.mxu3  ;;  %v7219_v17 = vpop.f32.mrf.mxu0 }
  0xdd   :  { %v7221_v58 = vadd.f32 %v497_v51, %v431_v8  ;;  %v1499_v8 = vand.u32 4294901760, %v1498_v5  ;;  %1560 = vmatpush.msrb.mxu0 %v1498_v5 }
  0xde   :  { %v7225_v32 = vpop.f32.mrf.mxu1 }
  0xdf   :  { %9683 = vst [vmem:[#allocation29_spill] sm:$0xff] %v7225_v32  ;;  %1061 = vmatmul.f32.gmra.mxu0 %v6993_v47  ;;  %1177 = vmatmul.f32.vlgmr.msra.gmra.mxu2 %v6801_v19  ;;  %v1500_v2 = vsub.f32 %v1498_v5, %v1499_v8 }
  0xe1   :  { %1001 = vmatmul.f32.gmra.mxu3 %v6798_v18  ;;  %1133 = vmatmul.f32.gmra.mxu1 %v6903_v0  ;;  %v1501_v32 = vand.u32 4294901760, %v1500_v2  ;;  %v9684_v2 = vmov 0.0  }
  0xe2   :  { %v641_v4 = vpop.f32.mrf.mxu2 }
  0xe3   :  { %1502 = vmatpush.msrb.mxu3 %v1501_v32 }
  0xe4   :  { %v503_v37 = vpop.f32.mrf.mxu3  ;;  %v7243_v51 = vpop.f32.mrf.mxu0 }
  0xe5   :  { %v7245_v22 = vadd.f32 %v503_v37, %v436_v43 }
  0xe6   :  { %v7247_v40 = vpop.f32.mrf.mxu1 }
  0xe7   :  { %1069 = vmatmul.f32.gmra.mxu0 %v7018_v52  ;;  %1182 = vmatmul.f32.gmra.mxu2 %v6807_v21 }
  0xe9   :  { %1137 = vmatmul.f32.gmra.mxu1 %v6940_v26  ;;  %1238 = vmatmul.f32.vlgmr.msra.gmra.mxu3 %v6825_v28 }
  0xea   :  { %v649_v3 = vpop.f32.mrf.mxu2 }
  0xec   :  { %v733_v30 = vpop.f32.mrf.mxu3  ;;  %v7253_v5 = vpop.f32.mrf.mxu0 }
  0xed   :  { %v7255_v10 = vadd.f32 %v733_v30, %v641_v4  ;;  %v6525_v30 = vsel %vm40_vm13, 1.0, %v9684_v2  ;;  %v9685_v4 = vmov 1.0  }
  0xee   :  { %v7257_v43 = vpop.f32.mrf.mxu1  ;;  %6590 = vmatpush.msk.msrb.mxu2 %vm40_vm13, %v9685_v4  ;;  %6593 = vmatpush.msk.msrb.mxu1 %vm40_vm13, %v9685_v4  ;;  %v1504_v37 = vsub.f32 %v6525_v30, %v6525_v30 }
  0xef   :  { %1077 = vmatmul.f32.gmra.mxu0 %v6864_v45  ;;  %1187 = vmatmul.f32.gmra.mxu2 %v6886_v54 }
  0xf0   :  { %1689 = vmatpush.msra.mxu2 %v1493_v57  ;;  %v1505_v28 = vand.u32 4294901760, %v1504_v37  ;;  %1563 = vmatpush.msrb.mxu0 %v1504_v37 }
  0xf1   :  { %1141 = vmatmul.f32.gmra.mxu1 %v6982_v42  ;;  %1244 = vmatmul.f32.gmra.mxu3 %v6843_v34 }
  0xf2   :  { %v657_v32 = vpop.f32.mrf.mxu2  ;;  %1693 = vmatpush.msra.mxu2 %v1499_v8  ;;  %v1506_v52 = vsub.f32 %v1504_v37, %v1505_v28 }
  0xf4   :  { %v737_v34 = vpop.f32.mrf.mxu3  ;;  %v7277_v54 = vpop.f32.mrf.mxu0  ;;  %1697 = vmatpush.msra.mxu2 %v1505_v28  ;;  %v1507_v57 = vand.u32 4294901760, %v1506_v52 }
  0xf5   :  { %9686 = vst [vmem:[#allocation30_spill] sm:$0xff] %v7277_v54  ;;  %v7279_v45 = vadd.f32 %v737_v34, %v649_v3 }
  0xf6   :  { %v7281_v21 = vpop.f32.mrf.mxu1  ;;  %1508 = vmatpush.msrb.mxu3 %v1507_v57 }
  0xf7   :  { %1085 = vmatmul.f32.gmra.mxu0 %v6898_v62  ;;  %1192 = vmatmul.f32.gmra.mxu2 %v6917_v6 }
  0xf8   :  { %6594 = vmatpush.msk.msra.mxu3 %vm187_vm0, %v7186_v56 }
  0xf9   :  { %1145 = vmatmul.f32.gmra.mxu1 %v6782_v12  ;;  %1250 = vmatmul.f32.gmra.mxu3 %v6901_v63 }
  0xfa   :  { %v665_v30 = vpop.f32.mrf.mxu2  ;;  %6595 = vmatpush.msk.msra.mxu3 %vm53_vm12, %v9685_v4 }
  0xfc   :  { %v741_v34 = vpop.f32.mrf.mxu3  ;;  %v789_v3 = vpop.f32.mrf.mxu0  ;;  %6596 = vmatpush.msk.msra.mxu3 %vm40_vm13, %v9685_v4 }
  0xfd   :  { %v7289_v8 = vadd.f32 %v741_v34, %v657_v32  ;;  %v790_v16 = vadd.f32 %v789_v3, %v7255_v10 }
  0xfe   :  { %v7291_v54 = vpop.f32.mrf.mxu1 }
  0xff   :  { %1197 = vmatmul.f32.gmra.mxu2 %v6966_v33  ;;  %1310 = vmatmul.f32.vlgmr.msra.gmra.mxu0 %v6780_v11 }
 0x101   :  { %1149 = vmatmul.f32.gmra.mxu1 %v6798_v18  ;;  %1256 = vmatmul.f32.gmra.mxu3 %v6938_v23 }
 0x102   :  { %v673_v28 = vpop.f32.mrf.mxu2 }
 0x104   :  { %v745_v52 = vpop.f32.mrf.mxu3  ;;  %v794_v56 = vpop.f32.mrf.mxu0 }
 0x105   :  { %v7305_v32 = vadd.f32 %v745_v52, %v665_v30  ;;  %v795_v10 = vadd.f32 %v794_v56, %v7279_v45 }
 0x106   :  { %v850_v37 = vpop.f32.mrf.mxu1 }
 0x107   :  { %1202 = vmatmul.f32.gmra.mxu2 %v6989_v46  ;;  %1314 = vmatmul.f32.gmra.mxu0 %v6784_v13 }
 0x109   :  { %1262 = vmatmul.f32.gmra.mxu3 %v6980_v41  ;;  %1362 = vmatmul.f32.vlgmr.msra.gmra.mxu1 %v6780_v11 }
 0x10a   :  { %v681_v31 = vpop.f32.mrf.mxu2 }
 0x10c   :  { %v749_v57 = vpop.f32.mrf.mxu3  ;;  %v799_v34 = vpop.f32.mrf.mxu0 }
 0x10d   :  { %v7311_v33 = vadd.f32 %v749_v57, %v673_v28 }
 0x10e   :  { %v856_v23 = vpop.f32.mrf.mxu1 }
 0x10f   :  { %1207 = vmatmul.f32.gmra.mxu2 %v6804_v20  ;;  %1318 = vmatmul.f32.gmra.mxu0 %v6877_v50 }
 0x111   :  { %1268 = vmatmul.f32.gmra.mxu3 %v6996_v48  ;;  %1366 = vmatmul.f32.gmra.mxu1 %v6784_v13 }
 0x112   :  { %v689_v30 = vpop.f32.mrf.mxu2 }
 0x114   :  { %v753_v52 = vpop.f32.mrf.mxu3  ;;  %v804_v46 = vpop.f32.mrf.mxu0 }
 0x115   :  { %v7317_v41 = vadd.f32 %v753_v52, %v681_v31  ;;  %v851_v31 = vadd.f32 %v850_v37, %v790_v16  ;;  %v857_v16 = vadd.f32 %v856_v23, %v795_v10  ;;  %v534_v37 = vadd.f32 %v7160_v59, %v7144_v24 }
 0x116   :  { %v862_v7 = vpop.f32.mrf.mxu1  ;;  %v800_v10 = vadd.f32 %v799_v34, %v7289_v8 }
 0x117   :  { %1212 = vmatmul.f32.gmra.mxu2 %v6819_v25  ;;  %1322 = vmatmul.f32.gmra.mxu0 %v6903_v0  ;;  %v586_v45 = vadd.f32 %v7172_v27, %v534_v37 }
 0x118   :  { %v863_v59 = vadd.f32 %v862_v7, %v800_v10 }
 0x119   :  { %1274 = vmatmul.f32.gmra.mxu3 %v6828_v29  ;;  %1370 = vmatmul.f32.gmra.mxu1 %v6877_v50 }
 0x11a   :  { %v697_v28 = vpop.f32.mrf.mxu2 }
 0x11c   :  { %v757_v57 = vpop.f32.mrf.mxu3  ;;  %v7323_v20 = vpop.f32.mrf.mxu0 }
 0x11d   :  { %v7325_v48 = vadd.f32 %v757_v57, %v689_v30 }
 0x11e   :  { %v868_v4 = vpop.f32.mrf.mxu1 }
 0x11f   :  { %1326 = vmatmul.f32.gmra.mxu0 %v6940_v26  ;;  %1418 = vmatmul.f32.vlgmr.msrb.gmra.mxu2 %v6862_v44 }
 0x121   :  { %1280 = vmatmul.f32.gmra.mxu3 %v6853_v39  ;;  %1374 = vmatmul.f32.gmra.mxu1 %v6903_v0 }
 0x122   :  { %v922_v52 = vpop.f32.mrf.mxu2 }
 0x123   :  { %v923_v29 = vadd.f32 %v922_v52, %v851_v31 }
 0x124   :  { %v761_v25 = vpop.f32.mrf.mxu3  ;;  %v7332_v63 = vpop.f32.mrf.mxu0 }
 0x125   :  { %v7334_v6 = vadd.f32 %v761_v25, %v697_v28  ;;  %v550_v25 = vadd.f32 %v7219_v17, %v7188_v35 }
 0x126   :  { %v7336_v30 = vpop.f32.mrf.mxu1 }
 0x127   :  { %1330 = vmatmul.f32.gmra.mxu0 %v6982_v42  ;;  %1426 = vmatmul.f32.gmra.mxu2 %v6896_v61  ;;  %v602_v56 = vadd.f32 %v7247_v40, %v550_v25  ;;  %v554_v40 = vadd.f32 %v7243_v51, %v7210_v36  ;;  %v805_v25 = vadd.f32 %v804_v46, %v7305_v32 }
 0x128   :  { %v542_v46 = vadd.f32 %v7183_v49, %v7162_v60 }
 0x129   :  { %1378 = vmatmul.f32.gmra.mxu1 %v6940_v26  ;;  %1510 = vmatmul.f32.vlgmr.msrb.gmra.mxu3 %v6780_v11  ;;  %v6049_v24 = vand.u32 2147483647, %v602_v56  ;;  %v869_v36 = vadd.f32 %v868_v4, %v805_v25 }
 0x12a   :  { %v926_v3 = vpop.f32.mrf.mxu2  ;;  %v594_v10 = vadd.f32 %v7212_v55, %v542_v46 }
 0x12b   :  { %v927_v28 = vadd.f32 %v926_v3, %v857_v16 }
 0x12c   :  { %v974_v57 = vpop.f32.mrf.mxu3  ;;  %v7347_v31 = vpop.f32.mrf.mxu0 }
 0x12d   :  { %v975_v23 = vadd.f32 %v974_v57, %v923_v29  ;;  %v538_v29 = vadd.f32 %v7168_v9, %v7154_v53  ;;  %v7376_v53 = vld [vmem:[%s9567_s0] sm:$0xff] }
 0x12e   :  { %v7351_v52 = vpop.f32.mrf.mxu1  ;;  %v7379_v9 = vperm.slane %v7376_v53, 4 }
 0x12f   :  { %v6041_v61 = vsub.f32 %v586_v45, %v975_v23  ;;  %1334 = vmatmul.f32.gmra.mxu0 %v6782_v12  ;;  %1434 = vmatmul.f32.gmra.mxu2 %v6935_v14  ;;  %v590_v7 = vadd.f32 %v7196_v1, %v538_v29 }
 0x130   :  { %vm67_vm14 = vcmp.eq.s32.totalorder %v6788_v15, %v7379_v9 }
 0x131   :  { %v6045_v35 = vand.u32 2147483647, %v6041_v61  ;;  %1382 = vmatmul.f32.gmra.mxu1 %v6982_v42  ;;  %1514 = vmatmul.f32.gmra.mxu3 %v6784_v13  ;;  %v606_v61 = vadd.f32 %v7257_v43, %v554_v40  ;;  %v7388_v32 = vsel %vm67_vm14, 1.0, %v9684_v2 }
 0x132   :  { %v930_v27 = vpop.f32.mrf.mxu2  ;;  %v201_v56 = vsel %vm187_vm0, %v7388_v32, 0  ;;  %6597 = vmatpush.msk.msra.mxu0 %vm187_vm0, %v7388_v32  ;;  %6600 = vmatpush.msk.msrb.mxu3 %vm187_vm0, %v7388_v32 }
 0x133   :  { %v7362_v17 = vadd.f32 %v6049_v24, %v6045_v35  ;;  %v931_v8 = vadd.f32 %v930_v27, %v863_v59  ;;  %v6050_v1 = vand.u32 2147483647, %v606_v61  ;;  %v7402_v23 = vsub.f32 %v201_v56, %v201_v56  ;;  %v9689_v61 = vld [vmem:[#allocation30_spill] sm:$0xff] }
 0x134   :  { %v978_v34 = vpop.f32.mrf.mxu3  ;;  %v7364_v16 = vpop.f32.mrf.mxu0  ;;  %v810_v35 = vadd.f32 %v7323_v20, %v7311_v33  ;;  %v9687_v20 = vld [vmem:[#allocation27_spill] sm:$0xff]  ;;  %v9688_v33 = vld [vmem:[#allocation28_spill] sm:$0xff]  ;;  %v815_v56 = vadd.f32 %v7332_v63, %v7317_v41 }
 0x135   :  { %v979_v3 = vadd.f32 %v978_v34, %v927_v28  ;;  %v558_v28 = vadd.f32 %v7253_v5, %v7221_v58  ;;  %v1882_v59 = vand.u32 4294901760, %v7402_v23  ;;  %1946 = vmatpush.msrb.mxu2 %v7402_v23 }
 0x136   :  { %v7368_v37 = vpop.f32.mrf.mxu1 }
 0x137   :  { %v6042_v57 = vsub.f32 %v590_v7, %v979_v3  ;;  %1338 = vmatmul.f32.gmra.mxu0 %v6798_v18  ;;  %1442 = vmatmul.f32.gmra.mxu2 %v6977_v38  ;;  %v610_v58 = vadd.f32 %v7281_v21, %v558_v28  ;;  %v1883_v55 = vsub.f32 %v7402_v23, %v1882_v59 }
 0x138   :  { %v875_v21 = vadd.f32 %v7336_v30, %v810_v35  ;;  %v546_v7 = vadd.f32 %v9688_v33, %v9687_v20  ;;  %v562_v3 = vadd.f32 %v9689_v61, %v7245_v22  ;;  %v9690_v30 = vld [vmem:[#allocation29_spill] sm:$0xff] }
 0x139   :  { %v6046_v51 = vand.u32 2147483647, %v6042_v57  ;;  %1386 = vmatmul.f32.gmra.mxu1 %v6782_v12  ;;  %1518 = vmatmul.f32.gmra.mxu3 %v6877_v50  ;;  %v6051_v29 = vand.u32 2147483647, %v610_v58  ;;  %v1884_v34 = vand.u32 4294901760, %v1883_v55  ;;  %v9692_v22 = vld [vmem:[#allocation9_spill] sm:$0xff] }
 0x13a   :  { %v934_v43 = vpop.f32.mrf.mxu2  ;;  %v614_v46 = vadd.f32 %v7291_v54, %v562_v3 }
 0x13b   :  { %v7392_v45 = vadd.f32 %v6050_v1, %v6046_v51  ;;  %v935_v4 = vadd.f32 %v934_v43, %v869_v36  ;;  %1885 = vmatpush.msra.mxu1 %v1884_v34  ;;  %v598_v51 = vadd.f32 %v9690_v30, %v546_v7  ;;  %v9695_v34 = vld [vmem:[#allocation15_spill] sm:$0xff]  ;;  %v9696_v7 = vld [vmem:[#allocation13_spill] sm:$0xff] }
 0x13c   :  { %v982_v60 = vpop.f32.mrf.mxu3  ;;  %v7400_v49 = vpop.f32.mrf.mxu0  ;;  %v6052_v58 = vand.u32 2147483647, %v614_v46 }
 0x13d   :  { %v983_v5 = vadd.f32 %v982_v60, %v931_v8 }
 0x13e   :  { %v892_v24 = vpop.f32.mrf.mxu1 }
 0x13f   :  { %v6043_v27 = vsub.f32 %v594_v10, %v983_v5  ;;  %1450 = vmatmul.f32.gmra.mxu2 %v6993_v47  ;;  %1566 = vmatmul.f32.vlgmr.msrb.gmra.mxu0 %v6801_v19  ;;  %v9691_v10 = vld [vmem:[#allocation26_spill] sm:$0xff]  ;;  %v881_v5 = vadd.f32 %v7351_v52, %v815_v56 }
 0x140   :  { %v9694_v52 = vld [vmem:[#allocation14_spill] sm:$0xff] }
 0x141   :  { %v6047_v40 = vand.u32 2147483647, %v6043_v27  ;;  %1390 = vmatmul.f32.gmra.mxu1 %v6798_v18  ;;  %1522 = vmatmul.f32.gmra.mxu3 %v6903_v0  ;;  %v9693_v27 = vld [vmem:[#allocation11_spill] sm:$0xff] }
 0x142   :  { %v938_v8 = vpop.f32.mrf.mxu2 }
 0x143   :  { %v7422_v25 = vadd.f32 %v6051_v29, %v6047_v40  ;;  %v939_v57 = vadd.f32 %v938_v8, %v875_v21  ;;  %v820_v40 = vadd.f32 %v7347_v31, %v7325_v48 }
 0x144   :  { %v986_v1 = vpop.f32.mrf.mxu3  ;;  %v7424_v36 = vpop.f32.mrf.mxu0 }
 0x145   :  { %v987_v43 = vadd.f32 %v986_v1, %v935_v4  ;;  %v887_v20 = vadd.f32 %v7368_v37, %v820_v40  ;;  %v9697_v37 = vld [vmem:[#allocation18_spill] sm:$0xff]  ;;  %v9701_v40 = vld [vmem:[#allocation5_spill] sm:$0xff] }
 0x146   :  { %v7428_v28 = vpop.f32.mrf.mxu1  ;;  %vm41_vm1 = vcmp.eq.s32.totalorder %v9701_v40, %v7379_v9 }
 0x147   :  { %v6044_v60 = vsub.f32 %v598_v51, %v987_v43  ;;  %1458 = vmatmul.f32.gmra.mxu2 %v9691_v10  ;;  %1571 = vmatmul.f32.gmra.mxu0 %v9692_v22  ;;  %v825_v51 = vadd.f32 %v7364_v16, %v7334_v6 }
 0x149   :  { %v6048_v35 = vand.u32 2147483647, %v6044_v60  ;;  %1526 = vmatmul.f32.gmra.mxu3 %v6940_v26  ;;  %1627 = vmatmul.f32.vlgmr.msrb.gmra.mxu1 %v9693_v27  ;;  %v893_v43 = vadd.f32 %v892_v24, %v825_v51  ;;  %v1123_v51 = vadd.f32 %v7428_v28, %v7400_v49 }
 0x14a   :  { %v942_v54 = vpop.f32.mrf.mxu2 }
 0x14b   :  { %v7437_v4 = vadd.f32 %v6052_v58, %v6048_v35  ;;  %v943_v55 = vadd.f32 %v942_v54, %v881_v5  ;;  %v9699_v54 = vld [vmem:[#allocation6_spill] sm:$0xff] }
 0x14c   :  { %v990_v29 = vpop.f32.mrf.mxu3  ;;  %v7439_v21 = vpop.f32.mrf.mxu0  ;;  %vm54_vm15 = vcmp.eq.s32.totalorder %v9699_v54, %v7379_v9 }
 0x14d   :  { %v991_v63 = vadd.f32 %v990_v29, %v939_v57  ;;  %v6539_v24 = vsel %vm54_vm15, 1.0, %v9684_v2 }
 0x14e   :  { %v7441_v41 = vpop.f32.mrf.mxu1 }
 0x14f   :  { %v6057_v8 = vand.u32 2147483647, %v991_v63  ;;  %1466 = vmatmul.f32.gmra.mxu2 %v9694_v52  ;;  %1576 = vmatmul.f32.gmra.mxu0 %v9695_v34  ;;  %v1887_v63 = vsub.f32 %v6539_v24, %v6539_v24 }
 0x151   :  { %v6061_v33 = vmul.f32 -1.0, %v6057_v8  ;;  %1530 = vmatmul.f32.gmra.mxu3 %v6982_v42  ;;  %1633 = vmatmul.f32.gmra.mxu1 %v9696_v7 }
 0x152   :  { %v946_v61 = vpop.f32.mrf.mxu2  ;;  %1949 = vmatpush.msrb.mxu2 %v1887_v63 }
 0x153   :  { %v6065_v3 = vadd.f32 %v6061_v33, %v7362_v17  ;;  %v947_v57 = vadd.f32 %v946_v61, %v887_v20  ;;  %v9698_v17 = vld [vmem:[#allocation17_spill] sm:$0xff]  ;;  %v6526_v20 = vsel %vm41_vm1, 1.0, %v9684_v2 }
 0x154   :  { %v994_v1 = vpop.f32.mrf.mxu3  ;;  %v7451_v30 = vpop.f32.mrf.mxu0 }
 0x155   :  { %v995_v48 = vadd.f32 %v994_v1, %v943_v55  ;;  %v6073_v58 = vmax.f32 %v6065_v3, 0.0  ;;  %v9700_v55 = vmov 1.0   ;;  %v1888_v1 = vand.u32 4294901760, %v1887_v63 }
 0x156   :  { %v7453_v31 = vpop.f32.mrf.mxu1  ;;  %6598 = vmatpush.msk.msra.mxu0 %vm54_vm15, %v9700_v55  ;;  %6601 = vmatpush.msk.msrb.mxu3 %vm54_vm15, %v9700_v55 }
 0x157   :  { %v6058_v46 = vand.u32 2147483647, %v995_v48  ;;  %1474 = vmatmul.f32.gmra.mxu2 %v6898_v62  ;;  %1581 = vmatmul.f32.gmra.mxu0 %v9697_v37  ;;  %v6077_v33 = vmul.f32 %v6073_v58, %v6073_v58  ;;  %v1893_v48 = vsub.f32 %v6526_v20, %v6526_v20 }
 0x158   :  { %6599 = vmatpush.msk.msra.mxu0 %vm41_vm1, %v9700_v55  ;;  %6602 = vmatpush.msk.msrb.mxu3 %vm41_vm1, %v9700_v55 }
 0x159   :  { %v6062_v56 = vmul.f32 -1.0, %v6058_v46  ;;  %1534 = vmatmul.f32.gmra.mxu3 %v6782_v12  ;;  %1639 = vmatmul.f32.gmra.mxu1 %v9698_v17 }
 0x15a   :  { %v950_v60 = vpop.f32.mrf.mxu2  ;;  %2078 = vmatpush.msrb.mxu0 %v1882_v59  ;;  %1952 = vmatpush.msrb.mxu2 %v1893_v48 }
 0x15b   :  { %v6066_v5 = vadd.f32 %v6062_v56, %v7392_v45  ;;  %v951_v35 = vadd.f32 %v950_v60, %v893_v43  ;;  %v9703_v56 = vld [vmem:[#allocation19_spill] sm:$0xff]  ;;  %v1889_v60 = vsub.f32 %v1887_v63, %v1888_v1 }
 0x15c   :  { %v998_v6 = vpop.f32.mrf.mxu3  ;;  %v7464_v16 = vpop.f32.mrf.mxu0  ;;  %2082 = vmatpush.msrb.mxu0 %v1888_v1 }
 0x15d   :  { %v6074_v45 = vmax.f32 %v6066_v5, 0.0  ;;  %v999_v29 = vadd.f32 %v998_v6, %v947_v57  ;;  %v9702_v57 = vld [vmem:[#allocation20_spill] sm:$0xff]  ;;  %v1894_v5 = vand.u32 4294901760, %v1893_v48 }
 0x15e   :  { %v7480_v8 = vpop.f32.mrf.mxu1 }
 0x15f   :  { %v6078_v61 = vmul.f32 %v6074_v45, %v6074_v45  ;;  %v6059_v3 = vand.u32 2147483647, %v999_v29  ;;  %1586 = vmatmul.f32.gmra.mxu0 %v9702_v57  ;;  %1699 = vmatmul.f32.vlgmr.msra.gmra.mxu2 %v6780_v11  ;;  %v1890_v45 = vand.u32 4294901760, %v1889_v60  ;;  %v1895_v29 = vsub.f32 %v1893_v48, %v1894_v5 }
 0x160   :  { %2086 = vmatpush.msrb.mxu0 %v1894_v5 }
 0x161   :  { %v6081_v46 = vadd.f32 %v6078_v61, %v6077_v33  ;;  %v6063_v43 = vmul.f32 -1.0, %v6059_v3  ;;  %1538 = vmatmul.f32.gmra.mxu3 %v6798_v18  ;;  %1645 = vmatmul.f32.gmra.mxu1 %v9703_v56  ;;  %v1896_v33 = vand.u32 4294901760, %v1895_v29  ;;  %v9704_v3 = vld [vmem:[#allocation23_spill] sm:$0xff] }
 0x162   :  { %v1178_v58 = vpop.f32.mrf.mxu2  ;;  %1891 = vmatpush.msra.mxu1 %v1890_v45 }
 0x163   :  { %v6067_v6 = vadd.f32 %v6063_v43, %v7422_v25  ;;  %v1179_v24 = vadd.f32 %v1178_v58, %v1123_v51  ;;  %v1127_v25 = vadd.f32 %v7441_v41, %v7424_v36  ;;  %v9705_v43 = vld [vmem:[#allocation22_spill] sm:$0xff] }
 0x164   :  { %v1002_v23 = vpop.f32.mrf.mxu3  ;;  %v7503_v59 = vpop.f32.mrf.mxu0  ;;  %1897 = vmatpush.msra.mxu1 %v1896_v33 }
 0x165   :  { %v6075_v49 = vmax.f32 %v6067_v6, 0.0  ;;  %v1003_v28 = vadd.f32 %v1002_v23, %v951_v35  ;;  %v1131_v6 = vadd.f32 %v7453_v31, %v7439_v21  ;;  %v9708_v23 = vld [vmem:[#allocation25_spill] sm:$0xff]  ;;  %v1135_v21 = vadd.f32 %v7480_v8, %v7451_v30  ;;  %v9710_v31 = vld [vmem:[#allocation12_spill] sm:$0xff] }
 0x166   :  { %v1138_v20 = vpop.f32.mrf.mxu1  ;;  %6603 = vmatpush.msk.msrb.mxu1 %vm187_vm0, %v7388_v32 }
 0x167   :  { %v6079_v61 = vmul.f32 %v6075_v49, %v6075_v49  ;;  %v6060_v63 = vand.u32 2147483647, %v1003_v28  ;;  %1591 = vmatmul.f32.gmra.mxu0 %v9704_v3  ;;  %1703 = vmatmul.f32.gmra.mxu2 %v6784_v13 }
 0x168   :  { %6604 = vmatpush.msk.msrb.mxu1 %vm54_vm15, %v9700_v55 }
 0x169   :  { %v6082_v1 = vadd.f32 %v6081_v46, %v6079_v61  ;;  %v6064_v51 = vmul.f32 -1.0, %v6060_v63  ;;  %1651 = vmatmul.f32.gmra.mxu1 %v9705_v43  ;;  %1751 = vmatmul.f32.vlgmr.msra.gmra.mxu3 %v6780_v11  ;;  %v9709_v61 = vld [vmem:[#allocation10_spill] sm:$0xff] }
 0x16a   :  { %v1183_v35 = vpop.f32.mrf.mxu2  ;;  %6605 = vmatpush.msk.msrb.mxu1 %vm41_vm1, %v9700_v55 }
 0x16b   :  { %v6068_v48 = vadd.f32 %v6064_v51, %v7437_v4  ;;  %v1184_v60 = vadd.f32 %v1183_v35, %v1127_v25  ;;  %v9706_v4 = vld [vmem:[#allocation8_spill] sm:$0xff] }
 0x16c   :  { %v1239_v58 = vpop.f32.mrf.mxu3  ;;  %v7514_v5 = vpop.f32.mrf.mxu0 }
 0x16d   :  { %v6076_v36 = vmax.f32 %v6068_v48, 0.0  ;;  %v7520_v41 = vadd.f32 %v1239_v58, %v1179_v24 }
 0x16e   :  { %v1142_v46 = vpop.f32.mrf.mxu1 }
 0x16f   :  { %v6080_v32 = vmul.f32 %v6076_v36, %v6076_v36  ;;  %1596 = vmatmul.f32.gmra.mxu0 %v9706_v4  ;;  %1707 = vmatmul.f32.gmra.mxu2 %v6877_v50 }
 0x171   :  { %v7530_v45 = vadd.f32 %v6082_v1, %v6080_v32  ;;  %1657 = vmatmul.f32.gmra.mxu1 %v9708_v23  ;;  %1755 = vmatmul.f32.gmra.mxu3 %v6784_v13 }
 0x172   :  { %v1188_v24 = vpop.f32.mrf.mxu2 }
 0x173   :  { %9707 = vst [vmem:[#allocation27_spill] sm:$0xff] %v7530_v45  ;;  %v1189_v29 = vadd.f32 %v1188_v24, %v1131_v6  ;;  %v9712_v24 = vld [vmem:[#allocation16_spill] sm:$0xff] }
 0x174   :  { %v1245_v49 = vpop.f32.mrf.mxu3  ;;  %v1086_v28 = vpop.f32.mrf.mxu0 }
 0x175   :  { %v7534_v9 = vadd.f32 %v1245_v49, %v1184_v60  ;;  %v1139_v60 = vadd.f32 %v1138_v20, %v7464_v16  ;;  %v7563_v16 = vperm.slane %v7376_v53, 5 }
 0x176   :  { %v1146_v33 = vpop.f32.mrf.mxu1 }
 0x177   :  { %1601 = vmatmul.f32.gmra.mxu0 %v9709_v61  ;;  %1711 = vmatmul.f32.gmra.mxu2 %v6903_v0  ;;  %vm68_vm2 = vcmp.eq.s32.totalorder %v6788_v15, %v7563_v16  ;;  %vm55_vm3 = vcmp.eq.s32.totalorder %v9699_v54, %v7563_v16  ;;  %vm42_vm4 = vcmp.eq.s32.totalorder %v9701_v40, %v7563_v16 }
 0x179   :  { %1663 = vmatmul.f32.gmra.mxu1 %v9710_v31  ;;  %1759 = vmatmul.f32.gmra.mxu3 %v6877_v50 }
 0x17a   :  { %v1193_v63 = vpop.f32.mrf.mxu2 }
 0x17b   :  { %v1194_v25 = vadd.f32 %v1193_v63, %v1135_v21 }
 0x17c   :  { %v1251_v1 = vpop.f32.mrf.mxu3  ;;  %v7542_v51 = vpop.f32.mrf.mxu0 }
 0x17d   :  { %v7544_v35 = vadd.f32 %v1251_v1, %v1189_v29  ;;  %v1143_v29 = vadd.f32 %v1142_v46, %v7503_v59 }
 0x17e   :  { %v1150_v48 = vpop.f32.mrf.mxu1 }
 0x17f   :  { %1715 = vmatmul.f32.gmra.mxu2 %v6940_v26  ;;  %1807 = vmatmul.f32.vlgmr.msra.gmra.mxu0 %v6862_v44 }
 0x181   :  { %1669 = vmatmul.f32.gmra.mxu1 %v6853_v39  ;;  %1763 = vmatmul.f32.gmra.mxu3 %v6903_v0 }
 0x182   :  { %v1198_v30 = vpop.f32.mrf.mxu2 }
 0x183   :  { %v1199_v8 = vadd.f32 %v1198_v30, %v1139_v60 }
 0x184   :  { %v1257_v58 = vpop.f32.mrf.mxu3  ;;  %v7551_v36 = vpop.f32.mrf.mxu0 }
 0x185   :  { %v7553_v32 = vadd.f32 %v1257_v58, %v1194_v25  ;;  %v7570_v25 = vsel %vm68_vm2, 1.0, %v9684_v2 }
 0x186   :  { %v7555_v6 = vpop.f32.mrf.mxu1  ;;  %v204_v59 = vsel %vm187_vm0, %v7570_v25, 0  ;;  %6606 = vmatpush.msk.msra.mxu2 %vm187_vm0, %v7570_v25 }
 0x187   :  { %9711 = vst [vmem:[#allocation28_spill] sm:$0xff] %v7553_v32  ;;  %1719 = vmatmul.f32.gmra.mxu2 %v6982_v42  ;;  %1815 = vmatmul.f32.gmra.mxu0 %v9712_v24  ;;  %v7582_v60 = vsub.f32 %v204_v59, %v204_v59 }
 0x188   :  { %6607 = vmatpush.msk.msra.mxu2 %vm55_vm3, %v9700_v55 }
 0x189   :  { %1767 = vmatmul.f32.gmra.mxu3 %v6940_v26  ;;  %1899 = vmatmul.f32.vlgmr.msra.gmra.mxu1 %v6780_v11  ;;  %v9616_v30 = vand.u32 4294901760, %v7582_v60 }
 0x18a   :  { %v1203_v20 = vpop.f32.mrf.mxu2  ;;  %6609 = vmatpush.msk.msra.mxu1 %vm187_vm0, %v7570_v25  ;;  %2335 = vmatpush.msra.mxu0 %v7582_v60 }
 0x18b   :  { %v1204_v49 = vadd.f32 %v1203_v20, %v1143_v29  ;;  %v2272_v29 = vsub.f32 %v7582_v60, %v9616_v30  ;;  %6608 = vmatpush.msk.msra.mxu2 %vm42_vm4, %v9700_v55 }
 0x18c   :  { %v1263_v21 = vpop.f32.mrf.mxu3  ;;  %v7567_v63 = vpop.f32.mrf.mxu0  ;;  %6610 = vmatpush.msk.msra.mxu1 %vm55_vm3, %v9700_v55 }
 0x18d   :  { %9713 = vst [vmem:[#allocation30_spill] sm:$0xff] %v7567_v63  ;;  %v7572_v1 = vadd.f32 %v1263_v21, %v1199_v8  ;;  %v1147_v8 = vadd.f32 %v1146_v33, %v7514_v5  ;;  %v2273_v45 = vand.u32 4294901760, %v2272_v29  ;;  %v1151_v5 = vadd.f32 %v1150_v48, %v1086_v28 }
 0x18e   :  { %v7580_v46 = vpop.f32.mrf.mxu1  ;;  %v6540_v28 = vsel %vm55_vm3, 1.0, %v9684_v2  ;;  %6611 = vmatpush.msk.msra.mxu1 %vm42_vm4, %v9700_v55 }
 0x18f   :  { %1723 = vmatmul.f32.gmra.mxu2 %v6782_v12  ;;  %1823 = vmatmul.f32.gmra.mxu0 %v6935_v14  ;;  %v2276_v48 = vsub.f32 %v6540_v28, %v6540_v28 }
 0x190   :  { %2274 = vmatpush.msra.mxu3 %v2273_v45 }
 0x191   :  { %1771 = vmatmul.f32.gmra.mxu3 %v6982_v42  ;;  %1903 = vmatmul.f32.gmra.mxu1 %v6784_v13 }
 0x192   :  { %v1208_v58 = vpop.f32.mrf.mxu2  ;;  %2338 = vmatpush.msra.mxu0 %v2276_v48 }
 0x193   :  { %v1209_v20 = vadd.f32 %v1208_v58, %v1147_v8 }
 0x194   :  { %v1269_v21 = vpop.f32.mrf.mxu3  ;;  %v7594_v59 = vpop.f32.mrf.mxu0 }
 0x195   :  { %9714 = vst [vmem:[#allocation29_spill] sm:$0xff] %v7594_v59  ;;  %v7596_v32 = vadd.f32 %v1269_v21, %v1204_v49  ;;  %v2277_v49 = vand.u32 4294901760, %v2276_v48 }
 0x196   :  { %v7598_v63 = vpop.f32.mrf.mxu1 }
 0x197   :  { %1727 = vmatmul.f32.gmra.mxu2 %v6798_v18  ;;  %1831 = vmatmul.f32.gmra.mxu0 %v6977_v38  ;;  %v2278_v21 = vsub.f32 %v2276_v48, %v2277_v49 }
 0x199   :  { %1775 = vmatmul.f32.gmra.mxu3 %v6782_v12  ;;  %1907 = vmatmul.f32.gmra.mxu1 %v6877_v50 }
 0x19a   :  { %v1213_v33 = vpop.f32.mrf.mxu2 }
 0x19b   :  { %v1214_v8 = vadd.f32 %v1213_v33, %v1151_v5 }
 0x19c   :  { %v1275_v58 = vpop.f32.mrf.mxu3  ;;  %v7604_v30 = vpop.f32.mrf.mxu0 }
 0x19d   :  { %v7606_v29 = vadd.f32 %v1275_v58, %v1209_v20 }
 0x19e   :  { %v7610_v45 = vpop.f32.mrf.mxu1 }
 0x19f   :  { %9715 = vst [vmem:[#allocation26_spill] sm:$0xff] %v7610_v45  ;;  %1839 = vmatmul.f32.gmra.mxu0 %v6993_v47  ;;  %1955 = vmatmul.f32.vlgmr.msrb.gmra.mxu2 %v6801_v19  ;;  %v2279_v45 = vand.u32 4294901760, %v2278_v21  ;;  %v9716_v21 = vand.u32 4294901760, %v7582_v60 }
 0x1a1   :  { %1779 = vmatmul.f32.gmra.mxu3 %v6798_v18  ;;  %1911 = vmatmul.f32.gmra.mxu1 %v6903_v0 }
 0x1a2   :  { %v1419_v20 = vpop.f32.mrf.mxu2  ;;  %2280 = vmatpush.msra.mxu3 %v2279_v45  ;;  %2467 = vmatpush.msrb.mxu2 %v9716_v21 }
 0x1a4   :  { %v1281_v5 = vpop.f32.mrf.mxu3  ;;  %v7628_v33 = vpop.f32.mrf.mxu0  ;;  %2471 = vmatpush.msrb.mxu2 %v2277_v49 }
 0x1a5   :  { %v7630_v58 = vadd.f32 %v1281_v5, %v1214_v8 }
 0x1a6   :  { %v7632_v59 = vpop.f32.mrf.mxu1 }
 0x1a7   :  { %1847 = vmatmul.f32.gmra.mxu0 %v9691_v10  ;;  %1960 = vmatmul.f32.gmra.mxu2 %v9692_v22 }
 0x1a9   :  { %1915 = vmatmul.f32.gmra.mxu1 %v6940_v26  ;;  %2016 = vmatmul.f32.vlgmr.msrb.gmra.mxu3 %v9693_v27 }
 0x1aa   :  { %v1427_v28 = vpop.f32.mrf.mxu2 }
 0x1ac   :  { %v1511_v19 = vpop.f32.mrf.mxu3  ;;  %v7638_v48 = vpop.f32.mrf.mxu0 }
 0x1ad   :  { %v7640_v47 = vadd.f32 %v1511_v19, %v1419_v20  ;;  %v6527_v19 = vsel %vm42_vm4, 1.0, %v9684_v2 }
 0x1ae   :  { %v7642_v8 = vpop.f32.mrf.mxu1  ;;  %v2282_v20 = vsub.f32 %v6527_v19, %v6527_v19 }
 0x1af   :  { %1855 = vmatmul.f32.gmra.mxu0 %v9694_v52  ;;  %1965 = vmatmul.f32.gmra.mxu2 %v9695_v34 }
 0x1b0   :  { %v2283_v52 = vand.u32 4294901760, %v2282_v20  ;;  %2341 = vmatpush.msra.mxu0 %v2282_v20 }
 0x1b1   :  { %1919 = vmatmul.f32.gmra.mxu1 %v6982_v42  ;;  %2022 = vmatmul.f32.gmra.mxu3 %v9696_v7 }
 0x1b2   :  { %v1435_v45 = vpop.f32.mrf.mxu2  ;;  %v2284_v22 = vsub.f32 %v2282_v20, %v2283_v52  ;;  %2475 = vmatpush.msrb.mxu2 %v2283_v52 }
 0x1b4   :  { %v1515_v5 = vpop.f32.mrf.mxu3  ;;  %v7664_v7 = vpop.f32.mrf.mxu0  ;;  %v2285_v60 = vand.u32 4294901760, %v2284_v22 }
 0x1b5   :  { %v7666_v34 = vadd.f32 %v1515_v5, %v1427_v28 }
 0x1b6   :  { %v7668_v27 = vpop.f32.mrf.mxu1  ;;  %2286 = vmatpush.msra.mxu3 %v2285_v60 }
 0x1b7   :  { %1863 = vmatmul.f32.gmra.mxu0 %v6898_v62  ;;  %1970 = vmatmul.f32.gmra.mxu2 %v9697_v37 }
 0x1b8   :  { %6612 = vmatpush.msk.msrb.mxu3 %vm187_vm0, %v7570_v25 }
 0x1b9   :  { %1923 = vmatmul.f32.gmra.mxu1 %v6782_v12  ;;  %2028 = vmatmul.f32.gmra.mxu3 %v9698_v17 }
 0x1ba   :  { %v1443_v19 = vpop.f32.mrf.mxu2  ;;  %6613 = vmatpush.msk.msrb.mxu3 %vm55_vm3, %v9700_v55 }
 0x1bc   :  { %v1519_v28 = vpop.f32.mrf.mxu3  ;;  %v1567_v21 = vpop.f32.mrf.mxu0  ;;  %6614 = vmatpush.msk.msrb.mxu3 %vm42_vm4, %v9700_v55 }
 0x1bd   :  { %v7676_v49 = vadd.f32 %v1519_v28, %v1435_v45  ;;  %v1568_v54 = vadd.f32 %v1567_v21, %v7640_v47 }
 0x1be   :  { %v7678_v5 = vpop.f32.mrf.mxu1 }
 0x1bf   :  { %1975 = vmatmul.f32.gmra.mxu2 %v9702_v57  ;;  %2088 = vmatmul.f32.vlgmr.msrb.gmra.mxu0 %v6780_v11 }
 0x1c1   :  { %1927 = vmatmul.f32.gmra.mxu1 %v6798_v18  ;;  %2034 = vmatmul.f32.gmra.mxu3 %v9703_v56 }
 0x1c2   :  { %v1451_v22 = vpop.f32.mrf.mxu2 }
 0x1c4   :  { %v1523_v52 = vpop.f32.mrf.mxu3  ;;  %v1572_v25 = vpop.f32.mrf.mxu0 }
 0x1c5   :  { %v7692_v45 = vadd.f32 %v1523_v52, %v1443_v19  ;;  %v1573_v47 = vadd.f32 %v1572_v25, %v7666_v34  ;;  %v1328_v34 = vadd.f32 %v7604_v30, %v7572_v1 }
 0x1c6   :  { %v1628_v20 = vpop.f32.mrf.mxu1 }
 0x1c7   :  { %1980 = vmatmul.f32.gmra.mxu2 %v9704_v3  ;;  %2092 = vmatmul.f32.gmra.mxu0 %v6784_v13 }
 0x1c9   :  { %2040 = vmatmul.f32.gmra.mxu3 %v9705_v43  ;;  %2140 = vmatmul.f32.vlgmr.msrb.gmra.mxu1 %v6780_v11 }
 0x1ca   :  { %v1459_v16 = vpop.f32.mrf.mxu2 }
 0x1cc   :  { %v1527_v60 = vpop.f32.mrf.mxu3  ;;  %v1577_v28 = vpop.f32.mrf.mxu0 }
 0x1cd   :  { %v7698_v57 = vadd.f32 %v1527_v60, %v1451_v22 }
 0x1ce   :  { %v1634_v56 = vpop.f32.mrf.mxu1 }
 0x1cf   :  { %1985 = vmatmul.f32.gmra.mxu2 %v9706_v4  ;;  %2096 = vmatmul.f32.gmra.mxu0 %v6877_v50 }
 0x1d1   :  { %2046 = vmatmul.f32.gmra.mxu3 %v9708_v23  ;;  %2144 = vmatmul.f32.gmra.mxu1 %v6784_v13 }
 0x1d2   :  { %v1467_v19 = vpop.f32.mrf.mxu2 }
 0x1d4   :  { %v1531_v52 = vpop.f32.mrf.mxu3  ;;  %v1582_v3 = vpop.f32.mrf.mxu0 }
 0x1d5   :  { %v7704_v43 = vadd.f32 %v1531_v52, %v1459_v16  ;;  %v1629_v16 = vadd.f32 %v1628_v20, %v1568_v54  ;;  %v1635_v54 = vadd.f32 %v1634_v56, %v1573_v47  ;;  %v1312_v20 = vadd.f32 %v7542_v51, %v7520_v41 }
 0x1d6   :  { %v1640_v40 = vpop.f32.mrf.mxu1  ;;  %v1380_v56 = vadd.f32 %v7632_v59, %v1328_v34  ;;  %v1578_v47 = vadd.f32 %v1577_v28, %v7676_v49  ;;  %v1332_v49 = vadd.f32 %v7628_v33, %v7596_v32 }
 0x1d7   :  { %1990 = vmatmul.f32.gmra.mxu2 %v9709_v61  ;;  %2100 = vmatmul.f32.gmra.mxu0 %v6903_v0 }
 0x1d8   :  { %v1641_v41 = vadd.f32 %v1640_v40, %v1578_v47  ;;  %v6102_v1 = vand.u32 2147483647, %v1380_v56 }
 0x1d9   :  { %2052 = vmatmul.f32.gmra.mxu3 %v9710_v31  ;;  %2148 = vmatmul.f32.gmra.mxu1 %v6877_v50 }
 0x1da   :  { %v1475_v22 = vpop.f32.mrf.mxu2 }
 0x1dc   :  { %v1535_v60 = vpop.f32.mrf.mxu3  ;;  %v7710_v4 = vpop.f32.mrf.mxu0 }
 0x1dd   :  { %v7712_v23 = vadd.f32 %v1535_v60, %v1467_v19 }
 0x1de   :  { %v1646_v55 = vpop.f32.mrf.mxu1 }
 0x1df   :  { %2104 = vmatmul.f32.gmra.mxu0 %v6940_v26  ;;  %2196 = vmatmul.f32.vlgmr.msra.gmra.mxu2 %v6862_v44 }
 0x1e1   :  { %2058 = vmatmul.f32.gmra.mxu3 %v6853_v39  ;;  %2152 = vmatmul.f32.gmra.mxu1 %v6903_v0 }
 0x1e2   :  { %v1700_v52 = vpop.f32.mrf.mxu2 }
 0x1e3   :  { %v1701_v31 = vadd.f32 %v1700_v52, %v1629_v16  ;;  %v1364_v16 = vadd.f32 %v7555_v6, %v1312_v20  ;;  %v7755_v20 = vperm.slane %v7376_v53, 6 }
 0x1e4   :  { %v1539_v61 = vpop.f32.mrf.mxu3  ;;  %v7719_v17 = vpop.f32.mrf.mxu0 }
 0x1e5   :  { %v7721_v37 = vadd.f32 %v1539_v61, %v1475_v22  ;;  %vm69_vm5 = vcmp.eq.s32.totalorder %v6788_v15, %v7755_v20 }
 0x1e6   :  { %v7723_v19 = vpop.f32.mrf.mxu1  ;;  %v7766_v32 = vsel %vm69_vm5, 1.0, %v9684_v2 }
 0x1e7   :  { %2108 = vmatmul.f32.gmra.mxu0 %v6982_v42  ;;  %2204 = vmatmul.f32.gmra.mxu2 %v9712_v24 }
 0x1e8   :  { %6615 = vmatpush.msk.msrb.mxu0 %vm187_vm0, %v7766_v32 }
 0x1e9   :  { %2156 = vmatmul.f32.gmra.mxu1 %v6940_v26  ;;  %2288 = vmatmul.f32.vlgmr.msra.gmra.mxu3 %v6780_v11 }
 0x1ea   :  { %v1704_v21 = vpop.f32.mrf.mxu2  ;;  %6618 = vmatpush.msk.msra.mxu3 %vm187_vm0, %v7766_v32 }
 0x1eb   :  { %v1705_v60 = vadd.f32 %v1704_v21, %v1635_v54 }
 0x1ec   :  { %v1752_v61 = vpop.f32.mrf.mxu3  ;;  %v7732_v22 = vpop.f32.mrf.mxu0 }
 0x1ed   :  { %v1753_v25 = vadd.f32 %v1752_v61, %v1701_v31  ;;  %v1316_v31 = vadd.f32 %v7551_v36, %v7534_v9  ;;  %v1384_v61 = vadd.f32 %v7642_v8, %v1332_v49  ;;  %v1583_v36 = vadd.f32 %v1582_v3, %v7692_v45  ;;  %v9717_v45 = vld [vmem:[#allocation30_spill] sm:$0xff] }
 0x1ee   :  { %v7737_v52 = vpop.f32.mrf.mxu1  ;;  %v207_v3 = vsel %vm187_vm0, %v7766_v32, 0 }
 0x1ef   :  { %v6090_v24 = vsub.f32 %v1364_v16, %v1753_v25  ;;  %2112 = vmatmul.f32.gmra.mxu0 %v6782_v12  ;;  %2212 = vmatmul.f32.gmra.mxu2 %v6935_v14  ;;  %v1368_v40 = vadd.f32 %v7580_v46, %v1316_v31  ;;  %v1647_v46 = vadd.f32 %v1646_v55, %v1583_v36  ;;  %v9720_v36 = vld [vmem:[#allocation28_spill] sm:$0xff] }
 0x1f0   :  { %v7774_v8 = vsub.f32 %v207_v3, %v207_v3  ;;  %v1320_v55 = vadd.f32 %v9717_v45, %v7544_v35 }
 0x1f1   :  { %v6094_v51 = vand.u32 2147483647, %v6090_v24  ;;  %2160 = vmatmul.f32.gmra.mxu1 %v6982_v42  ;;  %2292 = vmatmul.f32.gmra.mxu3 %v6784_v13 }
 0x1f2   :  { %v1708_v6 = vpop.f32.mrf.mxu2  ;;  %2724 = vmatpush.msra.mxu2 %v7774_v8 }
 0x1f3   :  { %v6098_v30 = vmul.f32 -1.0, %v6094_v51  ;;  %v1709_v59 = vadd.f32 %v1708_v6, %v1641_v41  ;;  %v2660_v41 = vand.u32 4294901760, %v7774_v8  ;;  %v1372_v51 = vadd.f32 %v7598_v63, %v1320_v55  ;;  %v9719_v63 = vld [vmem:[#allocation7_spill] sm:$0xff] }
 0x1f4   :  { %v1756_v28 = vpop.f32.mrf.mxu3  ;;  %v7749_v54 = vpop.f32.mrf.mxu0  ;;  %v1336_v6 = vadd.f32 %v7638_v48, %v7606_v29 }
 0x1f5   :  { %v1757_v24 = vadd.f32 %v1756_v28, %v1705_v60  ;;  %v7752_v21 = vadd.f32 %v6102_v1, %v6098_v30  ;;  %v6103_v60 = vand.u32 2147483647, %v1384_v61  ;;  %v2661_v35 = vsub.f32 %v7774_v8, %v2660_v41 }
 0x1f6   :  { %v7758_v9 = vpop.f32.mrf.mxu1  ;;  %v1388_v49 = vadd.f32 %v7668_v27, %v1336_v6  ;;  %v1588_v28 = vadd.f32 %v7710_v4, %v7698_v57  ;;  %v9721_v27 = vld [vmem:[#allocation29_spill] sm:$0xff] }
 0x1f7   :  { %v6091_v16 = vsub.f32 %v1368_v40, %v1757_v24  ;;  %2116 = vmatmul.f32.gmra.mxu0 %v6798_v18  ;;  %2220 = vmatmul.f32.gmra.mxu2 %v6977_v38  ;;  %v9718_v24 = vld [vmem:[#allocation24_spill] sm:$0xff]  ;;  %v2662_v61 = vand.u32 4294901760, %v2661_v35 }
 0x1f8   :  { %v1653_v29 = vadd.f32 %v7723_v19, %v1588_v28  ;;  %v1340_v19 = vadd.f32 %v7664_v7, %v7630_v58  ;;  %v9724_v7 = vld [vmem:[#allocation11_spill] sm:$0xff] }
 0x1f9   :  { %v6095_v53 = vand.u32 2147483647, %v6091_v16  ;;  %2164 = vmatmul.f32.gmra.mxu1 %v6782_v12  ;;  %2296 = vmatmul.f32.gmra.mxu3 %v6877_v50  ;;  %v1324_v16 = vadd.f32 %v9721_v27, %v9720_v36  ;;  %v9726_v36 = vld [vmem:[#allocation15_spill] sm:$0xff] }
 0x1fa   :  { %v1712_v33 = vpop.f32.mrf.mxu2  ;;  %2663 = vmatpush.msrb.mxu1 %v2662_v61 }
 0x1fb   :  { %v6099_v34 = vmul.f32 -1.0, %v6095_v53  ;;  %v1713_v25 = vadd.f32 %v1712_v33, %v1647_v46  ;;  %v6104_v46 = vand.u32 2147483647, %v1388_v49  ;;  %v9722_v33 = vld [vmem:[#allocation26_spill] sm:$0xff] }
 0x1fc   :  { %v1760_v56 = vpop.f32.mrf.mxu3  ;;  %v7780_v47 = vpop.f32.mrf.mxu0  ;;  %v1376_v45 = vadd.f32 %v9722_v33, %v1324_v16 }
 0x1fd   :  { %v1761_v31 = vadd.f32 %v1760_v56, %v1709_v59  ;;  %v7787_v1 = vadd.f32 %v6103_v60, %v6099_v34  ;;  %v1392_v56 = vadd.f32 %v7678_v5, %v1340_v19 }
 0x1fe   :  { %v1670_v30 = vpop.f32.mrf.mxu1 }
 0x1ff   :  { %v6092_v40 = vsub.f32 %v1372_v51, %v1761_v31  ;;  %2228 = vmatmul.f32.gmra.mxu2 %v9718_v24  ;;  %2344 = vmatmul.f32.vlgmr.msra.gmra.mxu0 %v9719_v63  ;;  %v1593_v51 = vadd.f32 %v7719_v17, %v7704_v43  ;;  %v9723_v31 = vld [vmem:[#allocation9_spill] sm:$0xff] }
 0x201   :  { %v6096_v48 = vand.u32 2147483647, %v6092_v40  ;;  %2168 = vmatmul.f32.gmra.mxu1 %v6798_v18  ;;  %2300 = vmatmul.f32.gmra.mxu3 %v6903_v0  ;;  %v1659_v35 = vadd.f32 %v7737_v52, %v1593_v51  ;;  %v1598_v52 = vadd.f32 %v7732_v22, %v7712_v23  ;;  %v1603_v22 = vadd.f32 %v7749_v54, %v7721_v37  ;;  %v9729_v51 = vld [vmem:[#allocation17_spill] sm:$0xff] }
 0x202   :  { %v1716_v59 = vpop.f32.mrf.mxu2 }
 0x203   :  { %v6100_v57 = vmul.f32 -1.0, %v6096_v48  ;;  %v1717_v4 = vadd.f32 %v1716_v59, %v1653_v29  ;;  %v9725_v59 = vld [vmem:[#allocation14_spill] sm:$0xff]  ;;  %v1665_v27 = vadd.f32 %v7758_v9, %v1598_v52 }
 0x204   :  { %v1764_v53 = vpop.f32.mrf.mxu3  ;;  %v7802_v3 = vpop.f32.mrf.mxu0  ;;  %v9728_v9 = vld [vmem:[#allocation18_spill] sm:$0xff] }
 0x205   :  { %v1765_v55 = vadd.f32 %v1764_v53, %v1713_v25  ;;  %v7807_v60 = vadd.f32 %v6104_v46, %v6100_v57  ;;  %v6105_v25 = vand.u32 2147483647, %v1392_v56  ;;  %v9727_v46 = vld [vmem:[#allocation13_spill] sm:$0xff] }
 0x206   :  { %v7809_v34 = vpop.f32.mrf.mxu1 }
 0x207   :  { %v6093_v6 = vsub.f32 %v1376_v45, %v1765_v55  ;;  %2236 = vmatmul.f32.gmra.mxu2 %v9691_v10  ;;  %2349 = vmatmul.f32.gmra.mxu0 %v9723_v31  ;;  %v1671_v55 = vadd.f32 %v1670_v30, %v1603_v22 }
 0x209   :  { %v6097_v49 = vand.u32 2147483647, %v6093_v6  ;;  %2304 = vmatmul.f32.gmra.mxu3 %v6940_v26  ;;  %2405 = vmatmul.f32.vlgmr.msra.gmra.mxu1 %v9724_v7 }
 0x20a   :  { %v1720_v58 = vpop.f32.mrf.mxu2 }
 0x20b   :  { %v6101_v28 = vmul.f32 -1.0, %v6097_v49  ;;  %v1721_v40 = vadd.f32 %v1720_v58, %v1659_v35  ;;  %v9730_v58 = vld [vmem:[#allocation6_spill] sm:$0xff] }
 0x20c   :  { %v1768_v5 = vpop.f32.mrf.mxu3  ;;  %v7819_v61 = vpop.f32.mrf.mxu0  ;;  %vm56_vm6 = vcmp.eq.s32.totalorder %v9730_v58, %v7755_v20 }
 0x20d   :  { %v1769_v17 = vadd.f32 %v1768_v5, %v1717_v4  ;;  %v7821_v43 = vadd.f32 %v6105_v25, %v6101_v28  ;;  %v6541_v30 = vsel %vm56_vm6, 1.0, %v9684_v2 }
 0x20e   :  { %v7823_v29 = vpop.f32.mrf.mxu1  ;;  %v2665_v5 = vsub.f32 %v6541_v30, %v6541_v30 }
 0x20f   :  { %v6110_v48 = vand.u32 2147483647, %v1769_v17  ;;  %2244 = vmatmul.f32.gmra.mxu2 %v9725_v59  ;;  %2354 = vmatmul.f32.gmra.mxu0 %v9726_v36  ;;  %v9732_v17 = vld [vmem:[#allocation5_spill] sm:$0xff] }
 0x210   :  { %vm43_vm7 = vcmp.eq.s32.totalorder %v9732_v17, %v7755_v20  ;;  %2727 = vmatpush.msra.mxu2 %v2665_v5 }
 0x211   :  { %v6114_v16 = vadd.f32 %v6110_v48, %v7752_v21  ;;  %2308 = vmatmul.f32.gmra.mxu3 %v6982_v42  ;;  %2411 = vmatmul.f32.gmra.mxu1 %v9727_v46  ;;  %v6528_v48 = vsel %vm43_vm7, 1.0, %v9684_v2 }
 0x212   :  { %v1724_v57 = vpop.f32.mrf.mxu2 }
 0x213   :  { %v1725_v4 = vadd.f32 %v1724_v57, %v1665_v27  ;;  %v6122_v21 = vmax.f32 %v6114_v16, 0.0  ;;  %v9733_v57 = vld [vmem:[#allocation20_spill] sm:$0xff] }
 0x214   :  { %v1772_v53 = vpop.f32.mrf.mxu3  ;;  %v7833_v33 = vpop.f32.mrf.mxu0 }
 0x215   :  { %v1773_v45 = vadd.f32 %v1772_v53, %v1721_v40  ;;  %v6126_v37 = vmul.f32 %v6122_v21, %v6122_v21  ;;  %v2671_v53 = vsub.f32 %v6528_v48, %v6528_v48 }
 0x216   :  { %v7835_v23 = vpop.f32.mrf.mxu1 }
 0x217   :  { %v6111_v19 = vand.u32 2147483647, %v1773_v45  ;;  %2252 = vmatmul.f32.gmra.mxu2 %v6898_v62  ;;  %2359 = vmatmul.f32.gmra.mxu0 %v9728_v9  ;;  %v1901_v45 = vadd.f32 %v7809_v34, %v7780_v47 }
 0x218   :  { %2730 = vmatpush.msra.mxu2 %v2671_v53 }
 0x219   :  { %v6115_v56 = vadd.f32 %v6111_v19, %v7787_v1  ;;  %2312 = vmatmul.f32.gmra.mxu3 %v6782_v12  ;;  %2417 = vmatmul.f32.gmra.mxu1 %v9729_v51  ;;  %v9731_v1 = vmov 1.0   ;;  %v9734_v19 = vld [vmem:[#allocation19_spill] sm:$0xff] }
 0x21a   :  { %v1728_v6 = vpop.f32.mrf.mxu2  ;;  %6616 = vmatpush.msk.msrb.mxu0 %vm56_vm6, %v9731_v1  ;;  %6619 = vmatpush.msk.msra.mxu3 %vm56_vm6, %v9731_v1 }
 0x21b   :  { %v6123_v35 = vmax.f32 %v6115_v56, 0.0  ;;  %v1729_v49 = vadd.f32 %v1728_v6, %v1671_v55  ;;  %v2672_v56 = vand.u32 4294901760, %v2671_v53 }
 0x21c   :  { %v1776_v54 = vpop.f32.mrf.mxu3  ;;  %v7846_v25 = vpop.f32.mrf.mxu0  ;;  %6617 = vmatpush.msk.msrb.mxu0 %vm43_vm7, %v9731_v1  ;;  %6620 = vmatpush.msk.msra.mxu3 %vm43_vm7, %v9731_v1 }
 0x21d   :  { %v6127_v28 = vmul.f32 %v6123_v35, %v6123_v35  ;;  %v1777_v40 = vadd.f32 %v1776_v54, %v1725_v4  ;;  %v2666_v4 = vand.u32 4294901760, %v2665_v5 }
 0x21e   :  { %v7862_v52 = vpop.f32.mrf.mxu1  ;;  %2856 = vmatpush.msra.mxu0 %v2660_v41  ;;  %v2673_v41 = vsub.f32 %v2671_v53, %v2672_v56 }
 0x21f   :  { %v6130_v27 = vadd.f32 %v6127_v28, %v6126_v37  ;;  %v6112_v16 = vand.u32 2147483647, %v1777_v40  ;;  %2364 = vmatmul.f32.gmra.mxu0 %v9733_v57  ;;  %2477 = vmatmul.f32.vlgmr.msrb.gmra.mxu2 %v6780_v11  ;;  %v2667_v21 = vsub.f32 %v2665_v5, %v2666_v4  ;;  %v9735_v28 = vld [vmem:[#allocation27_spill] sm:$0xff] }
 0x220   :  { %2860 = vmatpush.msra.mxu0 %v2666_v4  ;;  %v2674_v30 = vand.u32 4294901760, %v2673_v41  ;;  %v6084_v40 = vrot.slane %v9735_v28, 4  ;;  %v1905_v4 = vadd.f32 %v7823_v29, %v7802_v3 }
 0x221   :  { %v6116_v22 = vadd.f32 %v6112_v16, %v7807_v60  ;;  %2316 = vmatmul.f32.gmra.mxu3 %v6798_v18  ;;  %2423 = vmatmul.f32.gmra.mxu1 %v9734_v19  ;;  %v2668_v37 = vand.u32 4294901760, %v2667_v21  ;;  %v9736_v16 = vld [vmem:[#allocation23_spill] sm:$0xff] }
 0x222   :  { %v1956_v55 = vpop.f32.mrf.mxu2  ;;  %2864 = vmatpush.msra.mxu0 %v2672_v56 }
 0x223   :  { %v6124_v6 = vmax.f32 %v6116_v22, 0.0  ;;  %v1957_v35 = vadd.f32 %v1956_v55, %v1901_v45  ;;  %2669 = vmatpush.msrb.mxu1 %v2668_v37  ;;  %v9737_v45 = vld [vmem:[#allocation22_spill] sm:$0xff]  ;;  %v9739_v37 = vld [vmem:[#allocation8_spill] sm:$0xff] }
 0x224   :  { %v1780_v54 = vpop.f32.mrf.mxu3  ;;  %v7885_v8 = vpop.f32.mrf.mxu0 }
 0x225   :  { %v6128_v47 = vmul.f32 %v6124_v6, %v6124_v6  ;;  %v1781_v34 = vadd.f32 %v1780_v54, %v1729_v49  ;;  %2675 = vmatpush.msrb.mxu1 %v2674_v30  ;;  %v1909_v54 = vadd.f32 %v7835_v23, %v7819_v61  ;;  %v1913_v61 = vadd.f32 %v7862_v52, %v7833_v33 }
 0x226   :  { %v1916_v60 = vpop.f32.mrf.mxu1 }
 0x227   :  { %v6131_v5 = vadd.f32 %v6130_v27, %v6128_v47  ;;  %v6113_v48 = vand.u32 2147483647, %v1781_v34  ;;  %2369 = vmatmul.f32.gmra.mxu0 %v9736_v16  ;;  %2481 = vmatmul.f32.gmra.mxu2 %v6784_v13  ;;  %v6085_v27 = vadd.f32 %v6084_v40, %v9735_v28  ;;  %v9740_v47 = vld [vmem:[#allocation25_spill] sm:$0xff]  ;;  %v1917_v33 = vadd.f32 %v1916_v60, %v7846_v25 }
 0x228   :  { %6621 = vmatpush.msk.msra.mxu1 %vm187_vm0, %v7766_v32  ;;  %v6713_v25 = vld [vmem:[%s9567_s0] sm:$0xff] }
 0x229   :  { %v6117_v53 = vadd.f32 %v6113_v48, %v7821_v43  ;;  %2429 = vmatmul.f32.gmra.mxu1 %v9737_v45  ;;  %2529 = vmatmul.f32.vlgmr.msrb.gmra.mxu3 %v6780_v11  ;;  %v6086_v32 = vrot.slane %v6085_v27, 2  ;;  %v7951_v60 = vperm.slane %v6713_v25, 7 }
 0x22a   :  { %v1961_v49 = vpop.f32.mrf.mxu2  ;;  %6622 = vmatpush.msk.msra.mxu1 %vm56_vm6, %v9731_v1 }
 0x22b   :  { %v6125_v22 = vmax.f32 %v6117_v53, 0.0  ;;  %v1962_v21 = vadd.f32 %v1961_v49, %v1905_v4  ;;  %v6087_v34 = vadd.f32 %v6086_v32, %v6085_v27  ;;  %v9743_v27 = vld [vmem:[#allocation12_spill] sm:$0xff]  ;;  %vm70_vm8 = vcmp.eq.s32.totalorder %v6788_v15, %v7951_v60 }
 0x22c   :  { %v2017_v55 = vpop.f32.mrf.mxu3  ;;  %v7898_v56 = vpop.f32.mrf.mxu0  ;;  %6623 = vmatpush.msk.msra.mxu1 %vm43_vm7, %v9731_v1  ;;  %vm57_vm9 = vcmp.eq.s32.totalorder %v9730_v58, %v7951_v60  ;;  %vm44_vm10 = vcmp.eq.s32.totalorder %v9732_v17, %v7951_v60 }
 0x22d   :  { %v6129_v3 = vmul.f32 %v6125_v22, %v6125_v22  ;;  %v7904_v43 = vadd.f32 %v2017_v55, %v1957_v35  ;;  %v6088_v53 = vrot.slane %v6087_v34, 1  ;;  %v9742_v22 = vld [vmem:[#allocation10_spill] sm:$0xff] }
 0x22e   :  { %v1920_v29 = vpop.f32.mrf.mxu1 }
 0x22f   :  { %9738 = vst [vmem:[#allocation30_spill] sm:$0xff] %v7904_v43  ;;  %v6132_v6 = vadd.f32 %v6131_v5, %v6129_v3  ;;  %2374 = vmatmul.f32.gmra.mxu0 %v9739_v37  ;;  %2485 = vmatmul.f32.gmra.mxu2 %v6877_v50 }
 0x231   :  { %v6133_v41 = vrot.slane %v6132_v6, 4  ;;  %2435 = vmatmul.f32.gmra.mxu1 %v9740_v47  ;;  %2533 = vmatmul.f32.gmra.mxu3 %v6784_v13 }
 0x232   :  { %v1966_v35 = vpop.f32.mrf.mxu2 }
 0x233   :  { %v6134_v30 = vadd.f32 %v6133_v41, %v6132_v6  ;;  %v1967_v28 = vadd.f32 %v1966_v35, %v1909_v54 }
 0x234   :  { %v2023_v20 = vpop.f32.mrf.mxu3  ;;  %v7916_v40 = vpop.f32.mrf.mxu0 }
 0x235   :  { %v6135_v5 = vrot.slane %v6134_v30, 2  ;;  %v7918_v48 = vadd.f32 %v2023_v20, %v1962_v21  ;;  %v6089_v21 = vadd.f32 %v6088_v53, %v6087_v34 }
 0x236   :  { %v1924_v4 = vpop.f32.mrf.mxu1 }
 0x237   :  { %9741 = vst [vmem:[#allocation24_spill] sm:$0xff] %v7918_v48  ;;  %v6136_v49 = vadd.f32 %v6135_v5, %v6134_v30  ;;  %2379 = vmatmul.f32.gmra.mxu0 %v9742_v22  ;;  %2489 = vmatmul.f32.gmra.mxu2 %v6903_v0 }
 0x239   :  { %v6137_v23 = vrot.slane %v6136_v49, 1  ;;  %2441 = vmatmul.f32.gmra.mxu1 %v9743_v27  ;;  %2537 = vmatmul.f32.gmra.mxu3 %v6877_v50 }
 0x23a   :  { %v1971_v55 = vpop.f32.mrf.mxu2 }
 0x23b   :  { %v6138_v3 = vadd.f32 %v6137_v23, %v6136_v49  ;;  %v1972_v32 = vadd.f32 %v1971_v55, %v1913_v61  ;;  %v9750_v49 = vld [vmem:[#allocation16_spill] sm:$0xff]  ;;  %v1921_v61 = vadd.f32 %v1920_v29, %v7885_v8  ;;  %v7958_v8 = vsel %vm70_vm8, 1.0, %v9684_v2 }
 0x23c   :  { %v2029_v6 = vpop.f32.mrf.mxu3  ;;  %v7926_v54 = vpop.f32.mrf.mxu0  ;;  %6624 = vmatpush.msk.msrb.mxu2 %vm187_vm0, %v7958_v8 }
 0x23d   :  { %9744 = vst [vmem:[#allocation7_spill] sm:$0xff] %v7926_v54  ;;  %v7928_v41 = vadd.f32 %v2029_v6, %v1967_v28  ;;  %v7930_v35 = vadd.f32 %v6138_v3, %v6089_v21  ;;  %v210_v21 = vsel %vm187_vm0, %v7958_v8, 0 }
 0x23e   :  { %v1928_v30 = vpop.f32.mrf.mxu1  ;;  %6625 = vmatpush.msk.msrb.mxu2 %vm57_vm9, %v9731_v1 }
 0x23f   :  { %9745 = vst [vmem:[#allocation28_spill] sm:$0xff] %v7928_v41  ;;  %2493 = vmatmul.f32.gmra.mxu2 %v6940_v26  ;;  %2585 = vmatmul.f32.vlgmr.msrb.gmra.mxu0 %v6862_v44 }
 0x240   :  { %9746 = vst [vmem:[#allocation29_spill] sm:$0xff] %v7930_v35  ;;  %6626 = vmatpush.msk.msrb.mxu2 %vm44_vm10, %v9731_v1 }
 0x241   :  { %2447 = vmatmul.f32.gmra.mxu1 %v6853_v39  ;;  %2541 = vmatmul.f32.gmra.mxu3 %v6903_v0 }
 0x242   :  { %v1976_v52 = vpop.f32.mrf.mxu2 }
 0x243   :  { %v1977_v34 = vadd.f32 %v1976_v52, %v1917_v33  ;;  %v7970_v33 = vsub.f32 %v210_v21, %v210_v21 }
 0x244   :  { %v2035_v20 = vpop.f32.mrf.mxu3  ;;  %v7937_v5 = vpop.f32.mrf.mxu0 }
 0x245   :  { %9747 = vst [vmem:[#allocation26_spill] sm:$0xff] %v7937_v5  ;;  %v7939_v28 = vadd.f32 %v2035_v20, %v1972_v32  ;;  %v9640_v52 = vand.u32 4294901760, %v7970_v33  ;;  %3113 = vmatpush.msrb.mxu0 %v7970_v33 }
 0x246   :  { %v7941_v53 = vpop.f32.mrf.mxu1 }
 0x247   :  { %9748 = vst [vmem:[#allocation9_spill] sm:$0xff] %v7939_v28  ;;  %2497 = vmatmul.f32.gmra.mxu2 %v6982_v42  ;;  %2593 = vmatmul.f32.gmra.mxu0 %v9750_v49 }
 0x248   :  { %9749 = vst [vmem:[#allocation11_spill] sm:$0xff] %v7941_v53 }
 0x249   :  { %2545 = vmatmul.f32.gmra.mxu3 %v6940_v26  ;;  %2677 = vmatmul.f32.vlgmr.msrb.gmra.mxu1 %v6780_v11 }
 0x24a   :  { %v1981_v23 = vpop.f32.mrf.mxu2  ;;  %6627 = vmatpush.msk.msrb.mxu1 %vm187_vm0, %v7958_v8 }
 0x24b   :  { %v1982_v55 = vadd.f32 %v1981_v23, %v1921_v61  ;;  %v3050_v61 = vsub.f32 %v7970_v33, %v9640_v52 }
 0x24c   :  { %v2041_v3 = vpop.f32.mrf.mxu3  ;;  %v7955_v32 = vpop.f32.mrf.mxu0  ;;  %6628 = vmatpush.msk.msrb.mxu1 %vm57_vm9, %v9731_v1 }
 0x24d   :  { %9751 = vst [vmem:[#allocation14_spill] sm:$0xff] %v7955_v32  ;;  %v7960_v29 = vadd.f32 %v2041_v3, %v1977_v34  ;;  %v1925_v34 = vadd.f32 %v1924_v4, %v7898_v56  ;;  %v3051_v21 = vand.u32 4294901760, %v3050_v61  ;;  %v1929_v56 = vadd.f32 %v1928_v30, %v7916_v40 }
 0x24e   :  { %v7968_v6 = vpop.f32.mrf.mxu1  ;;  %v6542_v40 = vsel %vm57_vm9, 1.0, %v9684_v2  ;;  %6629 = vmatpush.msk.msrb.mxu1 %vm44_vm10, %v9731_v1 }
 0x24f   :  { %9752 = vst [vmem:[#allocation15_spill] sm:$0xff] %v7960_v29  ;;  %2501 = vmatmul.f32.gmra.mxu2 %v6782_v12  ;;  %2601 = vmatmul.f32.gmra.mxu0 %v6935_v14  ;;  %v3054_v30 = vsub.f32 %v6542_v40, %v6542_v40 }
 0x250   :  { %9753 = vst [vmem:[#allocation13_spill] sm:$0xff] %v7968_v6  ;;  %3052 = vmatpush.msrb.mxu3 %v3051_v21 }
 0x251   :  { %2549 = vmatmul.f32.gmra.mxu3 %v6982_v42  ;;  %2681 = vmatmul.f32.gmra.mxu1 %v6784_v13 }
 0x252   :  { %v1986_v20 = vpop.f32.mrf.mxu2  ;;  %3116 = vmatpush.msrb.mxu0 %v3054_v30 }
 0x253   :  { %v1987_v25 = vadd.f32 %v1986_v20, %v1925_v34 }
 0x254   :  { %v2047_v23 = vpop.f32.mrf.mxu3  ;;  %v7982_v3 = vpop.f32.mrf.mxu0 }
 0x255   :  { %9754 = vst [vmem:[#allocation18_spill] sm:$0xff] %v7982_v3  ;;  %v7984_v35 = vadd.f32 %v2047_v23, %v1982_v55 }
 0x256   :  { %v7986_v28 = vpop.f32.mrf.mxu1 }
 0x257   :  { %9755 = vst [vmem:[#allocation17_spill] sm:$0xff] %v7984_v35  ;;  %2505 = vmatmul.f32.gmra.mxu2 %v6798_v18  ;;  %2609 = vmatmul.f32.gmra.mxu0 %v6977_v38 }
 0x258   :  { %9756 = vst [vmem:[#allocation6_spill] sm:$0xff] %v7986_v28 }
 0x259   :  { %2553 = vmatmul.f32.gmra.mxu3 %v6782_v12  ;;  %2685 = vmatmul.f32.gmra.mxu1 %v6877_v50 }
 0x25a   :  { %v1991_v4 = vpop.f32.mrf.mxu2 }
 0x25b   :  { %v1992_v34 = vadd.f32 %v1991_v4, %v1929_v56 }
 0x25c   :  { %v2053_v20 = vpop.f32.mrf.mxu3  ;;  %v7993_v52 = vpop.f32.mrf.mxu0 }
 0x25d   :  { %9757 = vst [vmem:[#allocation5_spill] sm:$0xff] %v7993_v52  ;;  %v7995_v55 = vadd.f32 %v2053_v20, %v1987_v25  ;;  %v3055_v25 = vand.u32 4294901760, %v3054_v30 }
 0x25e   :  { %v7999_v61 = vpop.f32.mrf.mxu1 }
 0x25f   :  { %9758 = vst [vmem:[#allocation20_spill] sm:$0xff] %v7995_v55  ;;  %2617 = vmatmul.f32.gmra.mxu0 %v9718_v24  ;;  %2733 = vmatmul.f32.vlgmr.msra.gmra.mxu2 %v9719_v63  ;;  %v3056_v21 = vsub.f32 %v3054_v30, %v3055_v25 }
 0x260   :  { %9759 = vst [vmem:[#allocation19_spill] sm:$0xff] %v7999_v61 }
 0x261   :  { %2557 = vmatmul.f32.gmra.mxu3 %v6798_v18  ;;  %2689 = vmatmul.f32.gmra.mxu1 %v6903_v0  ;;  %v3057_v61 = vand.u32 4294901760, %v3056_v21  ;;  %v9765_v21 = vand.u32 4294901760, %v7970_v33 }
 0x262   :  { %v2197_v23 = vpop.f32.mrf.mxu2 }
 0x263   :  { %3058 = vmatpush.msrb.mxu3 %v3057_v61  ;;  %3245 = vmatpush.msra.mxu2 %v9765_v21 }
 0x264   :  { %v2059_v56 = vpop.f32.mrf.mxu3  ;;  %v8017_v4 = vpop.f32.mrf.mxu0 }
 0x265   :  { %9760 = vst [vmem:[#allocation27_spill] sm:$0xff] %v8017_v4  ;;  %v8019_v20 = vadd.f32 %v2059_v56, %v1992_v34  ;;  %3249 = vmatpush.msra.mxu2 %v3055_v25 }
 0x266   :  { %v8021_v3 = vpop.f32.mrf.mxu1 }
 0x267   :  { %9761 = vst [vmem:[#allocation23_spill] sm:$0xff] %v8019_v20  ;;  %2625 = vmatmul.f32.gmra.mxu0 %v9691_v10  ;;  %2738 = vmatmul.f32.gmra.mxu2 %v9723_v31 }
 0x268   :  { %9762 = vst [vmem:[#allocation22_spill] sm:$0xff] %v8021_v3 }
 0x269   :  { %2693 = vmatmul.f32.gmra.mxu1 %v6940_v26  ;;  %2794 = vmatmul.f32.vlgmr.msra.gmra.mxu3 %v9724_v7 }
 0x26a   :  { %v2205_v40 = vpop.f32.mrf.mxu2 }
 0x26c   :  { %v2289_v28 = vpop.f32.mrf.mxu3  ;;  %v8027_v30 = vpop.f32.mrf.mxu0 }
 0x26d   :  { %9763 = vst [vmem:[#allocation8_spill] sm:$0xff] %v8027_v30  ;;  %v8029_v55 = vadd.f32 %v2289_v28, %v2197_v23  ;;  %v6529_v28 = vsel %vm44_vm10, 1.0, %v9684_v2 }
 0x26e   :  { %v8031_v34 = vpop.f32.mrf.mxu1  ;;  %v3060_v23 = vsub.f32 %v6529_v28, %v6529_v28 }
 0x26f   :  { %9764 = vst [vmem:[#allocation25_spill] sm:$0xff] %v8031_v34  ;;  %2633 = vmatmul.f32.gmra.mxu0 %v9725_v59  ;;  %2743 = vmatmul.f32.gmra.mxu2 %v9726_v36 }
 0x270   :  { %v3061_v32 = vand.u32 4294901760, %v3060_v23  ;;  %3119 = vmatpush.msrb.mxu0 %v3060_v23 }
 0x271   :  { %2697 = vmatmul.f32.gmra.mxu1 %v6982_v42  ;;  %2800 = vmatmul.f32.gmra.mxu3 %v9727_v46 }
 0x272   :  { %v2213_v61 = vpop.f32.mrf.mxu2  ;;  %v3062_v34 = vsub.f32 %v3060_v23, %v3061_v32  ;;  %3253 = vmatpush.msra.mxu2 %v3061_v32 }
 0x274   :  { %v2293_v56 = vpop.f32.mrf.mxu3  ;;  %v8053_v20 = vpop.f32.mrf.mxu0  ;;  %v3063_v33 = vand.u32 4294901760, %v3062_v34 }
 0x275   :  { %9766 = vst [vmem:[#allocation10_spill] sm:$0xff] %v8053_v20  ;;  %v8055_v30 = vadd.f32 %v2293_v56, %v2205_v40 }
 0x276   :  { %v8057_v41 = vpop.f32.mrf.mxu1  ;;  %3064 = vmatpush.msrb.mxu3 %v3063_v33 }
 0x277   :  { %9767 = vst [vmem:[#allocation12_spill] sm:$0xff] %v8057_v41  ;;  %2641 = vmatmul.f32.gmra.mxu0 %v6898_v62  ;;  %2748 = vmatmul.f32.gmra.mxu2 %v9728_v9 }
 0x278   :  { %6630 = vmatpush.msk.msra.mxu3 %vm187_vm0, %v7958_v8 }
 0x279   :  { %2701 = vmatmul.f32.gmra.mxu1 %v6782_v12  ;;  %2806 = vmatmul.f32.gmra.mxu3 %v9729_v51 }
 0x27a   :  { %v2221_v28 = vpop.f32.mrf.mxu2  ;;  %6631 = vmatpush.msk.msra.mxu3 %vm57_vm9, %v9731_v1 }
 0x27c   :  { %v2297_v40 = vpop.f32.mrf.mxu3  ;;  %v2345_v21 = vpop.f32.mrf.mxu0  ;;  %6632 = vmatpush.msk.msra.mxu3 %vm44_vm10, %v9731_v1 }
 0x27d   :  { %v8065_v25 = vadd.f32 %v2297_v40, %v2213_v61  ;;  %v2346_v3 = vadd.f32 %v2345_v21, %v8029_v55 }
 0x27e   :  { %v8067_v56 = vpop.f32.mrf.mxu1 }
 0x27f   :  { %9768 = vst [vmem:[#allocation16_spill] sm:$0xff] %v8067_v56  ;;  %2753 = vmatmul.f32.gmra.mxu2 %v9733_v57  ;;  %2866 = vmatmul.f32.vlgmr.msra.gmra.mxu0 %v6780_v11 }
 0x281   :  { %2705 = vmatmul.f32.gmra.mxu1 %v6798_v18  ;;  %2812 = vmatmul.f32.gmra.mxu3 %v9734_v19 }
 0x282   :  { %v2229_v32 = vpop.f32.mrf.mxu2 }
 0x284   :  { %v2301_v8 = vpop.f32.mrf.mxu3  ;;  %v2350_v34 = vpop.f32.mrf.mxu0 }
 0x285   :  { %v8081_v61 = vadd.f32 %v2301_v8, %v2221_v28 }
 0x286   :  { %v2406_v23 = vpop.f32.mrf.mxu1 }
 0x287   :  { %2758 = vmatmul.f32.gmra.mxu2 %v9736_v16  ;;  %2870 = vmatmul.f32.gmra.mxu0 %v6784_v13 }
 0x289   :  { %2818 = vmatmul.f32.gmra.mxu3 %v9737_v45  ;;  %2918 = vmatmul.f32.vlgmr.msra.gmra.mxu1 %v6780_v11 }
 0x28a   :  { %v2237_v60 = vpop.f32.mrf.mxu2 }
 0x28c   :  { %v2305_v33 = vpop.f32.mrf.mxu3  ;;  %v2355_v40 = vpop.f32.mrf.mxu0 }
 0x28d   :  { %v8087_v56 = vadd.f32 %v2305_v33, %v2229_v32 }
 0x28e   :  { %v2412_v20 = vpop.f32.mrf.mxu1 }
 0x28f   :  { %2763 = vmatmul.f32.gmra.mxu2 %v9739_v37  ;;  %2874 = vmatmul.f32.gmra.mxu0 %v6877_v50 }
 0x291   :  { %2824 = vmatmul.f32.gmra.mxu3 %v9740_v47  ;;  %2922 = vmatmul.f32.gmra.mxu1 %v6784_v13 }
 0x292   :  { %v2245_v28 = vpop.f32.mrf.mxu2 }
 0x294   :  { %v2309_v8 = vpop.f32.mrf.mxu3  ;;  %v2360_v41 = vpop.f32.mrf.mxu0 }
 0x295   :  { %v8093_v4 = vadd.f32 %v2309_v8, %v2237_v60  ;;  %v2407_v60 = vadd.f32 %v2406_v23, %v2346_v3 }
 0x296   :  { %v2418_v35 = vpop.f32.mrf.mxu1 }
 0x297   :  { %2768 = vmatmul.f32.gmra.mxu2 %v9742_v22  ;;  %2878 = vmatmul.f32.gmra.mxu0 %v6903_v0 }
 0x299   :  { %2830 = vmatmul.f32.gmra.mxu3 %v9743_v27  ;;  %2926 = vmatmul.f32.gmra.mxu1 %v6877_v50 }
 0x29a   :  { %v2253_v32 = vpop.f32.mrf.mxu2 }
 0x29c   :  { %v2313_v33 = vpop.f32.mrf.mxu3  ;;  %v8099_v6 = vpop.f32.mrf.mxu0 }
 0x29d   :  { %v8101_v5 = vadd.f32 %v2313_v33, %v2245_v28  ;;  %v2351_v33 = vadd.f32 %v2350_v34, %v8055_v30  ;;  %v2366_v43 = vadd.f32 %v8099_v6, %v8087_v56 }
 0x29e   :  { %v2424_v48 = vpop.f32.mrf.mxu1 }
 0x29f   :  { %2882 = vmatmul.f32.gmra.mxu0 %v6940_v26  ;;  %2974 = vmatmul.f32.vlgmr.msrb.gmra.mxu2 %v6862_v44  ;;  %v2413_v55 = vadd.f32 %v2412_v20, %v2351_v33  ;;  %v8129_v20 = vld [vmem:[%s9567_s0 + $0x8] sm:$0x1f] }
 0x2a1   :  { %2836 = vmatmul.f32.gmra.mxu3 %v6853_v39  ;;  %2930 = vmatmul.f32.gmra.mxu1 %v6903_v0 }
 0x2a2   :  { %v2478_v8 = vpop.f32.mrf.mxu2 }
 0x2a3   :  { %v2479_v52 = vadd.f32 %v2478_v8, %v2407_v60 }
 0x2a4   :  { %v2317_v29 = vpop.f32.mrf.mxu3  ;;  %v8108_v53 = vpop.f32.mrf.mxu0 }
 0x2a5   :  { %v8110_v54 = vadd.f32 %v2317_v29, %v2253_v32  ;;  %v2356_v32 = vadd.f32 %v2355_v40, %v8065_v25  ;;  %v2371_v6 = vadd.f32 %v8108_v53, %v8093_v4 }
 0x2a6   :  { %v2430_v28 = vpop.f32.mrf.mxu1 }
 0x2a7   :  { %2886 = vmatmul.f32.gmra.mxu0 %v6982_v42  ;;  %2982 = vmatmul.f32.gmra.mxu2 %v9750_v49  ;;  %v2419_v30 = vadd.f32 %v2418_v35, %v2356_v32  ;;  %v2361_v32 = vadd.f32 %v2360_v41, %v8081_v61 }
 0x2a9   :  { %2934 = vmatmul.f32.gmra.mxu1 %v6940_v26  ;;  %3066 = vmatmul.f32.vlgmr.msrb.gmra.mxu3 %v6780_v11 }
 0x2aa   :  { %v2482_v3 = vpop.f32.mrf.mxu2 }
 0x2ab   :  { %v2483_v21 = vadd.f32 %v2482_v3, %v2413_v55 }
 0x2ac   :  { %v2530_v23 = vpop.f32.mrf.mxu3  ;;  %v8117_v60 = vpop.f32.mrf.mxu0 }
 0x2ad   :  { %v8119_v8 = vadd.f32 %v2530_v23, %v2479_v52  ;;  %v8132_v52 = vperm.slane %v8129_v20, 0 }
 0x2ae   :  { %v2436_v29 = vpop.f32.mrf.mxu1 }
 0x2af   :  { %9769 = vst [vmem:[#allocation31_spill] sm:$0xff] %v8119_v8  ;;  %2890 = vmatmul.f32.gmra.mxu0 %v6782_v12  ;;  %2990 = vmatmul.f32.gmra.mxu2 %v6935_v14  ;;  %vm71_vm11 = vcmp.eq.s32.totalorder %v6788_v15, %v8132_v52  ;;  %vm58_vm12 = vcmp.eq.s32.totalorder %v9730_v58, %v8132_v52 }
 0x2b0   :  { %v8141_v55 = vsel %vm71_vm11, 1.0, %v9684_v2  ;;  %vm45_vm13 = vcmp.eq.s32.totalorder %v9732_v17, %v8132_v52 }
 0x2b1   :  { %2938 = vmatmul.f32.gmra.mxu1 %v6982_v42  ;;  %3070 = vmatmul.f32.gmra.mxu3 %v6784_v13  ;;  %v213_v23 = vsel %vm187_vm0, %v8141_v55, 0 }
 0x2b2   :  { %v2486_v34 = vpop.f32.mrf.mxu2  ;;  %6633 = vmatpush.msk.msra.mxu0 %vm187_vm0, %v8141_v55  ;;  %6636 = vmatpush.msk.msrb.mxu3 %vm187_vm0, %v8141_v55 }
 0x2b3   :  { %v2487_v33 = vadd.f32 %v2486_v34, %v2419_v30  ;;  %v2425_v30 = vadd.f32 %v2424_v48, %v2361_v32 }
 0x2b4   :  { %v2534_v25 = vpop.f32.mrf.mxu3  ;;  %v8134_v40 = vpop.f32.mrf.mxu0  ;;  %6634 = vmatpush.msk.msra.mxu0 %vm58_vm12, %v9731_v1  ;;  %6637 = vmatpush.msk.msrb.mxu3 %vm58_vm12, %v9731_v1 }
 0x2b5   :  { %v8138_v35 = vadd.f32 %v2534_v25, %v2483_v21  ;;  %v8152_v21 = vsub.f32 %v213_v23, %v213_v23 }
 0x2b6   :  { %v2442_v3 = vpop.f32.mrf.mxu1  ;;  %6635 = vmatpush.msk.msra.mxu0 %vm45_vm13, %v9731_v1  ;;  %6638 = vmatpush.msk.msrb.mxu3 %vm45_vm13, %v9731_v1 }
 0x2b7   :  { %9770 = vst [vmem:[#allocation32_spill] sm:$0xff] %v8138_v35  ;;  %2894 = vmatmul.f32.gmra.mxu0 %v6798_v18  ;;  %2998 = vmatmul.f32.gmra.mxu2 %v6977_v38  ;;  %v9641_v34 = vand.u32 4294901760, %v8152_v21 }
 0x2b8   :  { %3502 = vmatpush.msrb.mxu2 %v8152_v21 }
 0x2b9   :  { %2942 = vmatmul.f32.gmra.mxu1 %v6782_v12  ;;  %3074 = vmatmul.f32.gmra.mxu3 %v6877_v50  ;;  %v3439_v41 = vsub.f32 %v8152_v21, %v9641_v34 }
 0x2ba   :  { %v2490_v25 = vpop.f32.mrf.mxu2 }
 0x2bb   :  { %v2491_v35 = vadd.f32 %v2490_v25, %v2425_v30  ;;  %v3440_v48 = vand.u32 4294901760, %v3439_v41  ;;  %v2431_v30 = vadd.f32 %v2430_v28, %v2366_v43  ;;  %v2437_v43 = vadd.f32 %v2436_v29, %v2371_v6 }
 0x2bc   :  { %v2538_v61 = vpop.f32.mrf.mxu3  ;;  %v8161_v8 = vpop.f32.mrf.mxu0 }
 0x2bd   :  { %v8163_v23 = vadd.f32 %v2538_v61, %v2487_v33  ;;  %3441 = vmatpush.msra.mxu1 %v3440_v48 }
 0x2be   :  { %v2448_v32 = vpop.f32.mrf.mxu1 }
 0x2bf   :  { %9771 = vst [vmem:[#allocation33_spill] sm:$0xff] %v8163_v23  ;;  %3006 = vmatmul.f32.gmra.mxu2 %v9718_v24  ;;  %3122 = vmatmul.f32.vlgmr.msrb.gmra.mxu0 %v9719_v63 }
 0x2c1   :  { %2946 = vmatmul.f32.gmra.mxu1 %v6798_v18  ;;  %3078 = vmatmul.f32.gmra.mxu3 %v6903_v0 }
 0x2c2   :  { %v2494_v25 = vpop.f32.mrf.mxu2 }
 0x2c3   :  { %v2495_v34 = vadd.f32 %v2494_v25, %v2431_v30  ;;  %v2376_v25 = vadd.f32 %v8117_v60, %v8101_v5  ;;  %v2381_v60 = vadd.f32 %v8134_v40, %v8110_v54  ;;  %v6530_v40 = vsel %vm45_vm13, 1.0, %v9684_v2 }
 0x2c4   :  { %v2542_v38 = vpop.f32.mrf.mxu3  ;;  %v8171_v33 = vpop.f32.mrf.mxu0 }
 0x2c5   :  { %v8173_v41 = vadd.f32 %v2542_v38, %v2491_v35  ;;  %v6543_v38 = vsel %vm58_vm12, 1.0, %v9684_v2 }
 0x2c6   :  { %v2678_v61 = vpop.f32.mrf.mxu1  ;;  %v3443_v4 = vsub.f32 %v6543_v38, %v6543_v38 }
 0x2c7   :  { %9772 = vst [vmem:[#allocation34_spill] sm:$0xff] %v8173_v41  ;;  %3014 = vmatmul.f32.gmra.mxu2 %v9691_v10  ;;  %3127 = vmatmul.f32.gmra.mxu0 %v9723_v31  ;;  %v2443_v41 = vadd.f32 %v2442_v3, %v2376_v25  ;;  %v2449_v3 = vadd.f32 %v2448_v32, %v2381_v60 }
 0x2c8   :  { %v3444_v48 = vand.u32 4294901760, %v3443_v4  ;;  %3505 = vmatpush.msrb.mxu2 %v3443_v4  ;;  %v3449_v32 = vsub.f32 %v6530_v40, %v6530_v40 }
 0x2c9   :  { %3082 = vmatmul.f32.gmra.mxu3 %v6940_v26  ;;  %3183 = vmatmul.f32.vlgmr.msrb.gmra.mxu1 %v9724_v7 }
 0x2ca   :  { %v2498_v56 = vpop.f32.mrf.mxu2  ;;  %v3445_v6 = vsub.f32 %v3443_v4, %v3444_v48  ;;  %3508 = vmatpush.msrb.mxu2 %v3449_v32 }
 0x2cb   :  { %v2499_v53 = vadd.f32 %v2498_v56, %v2437_v43 }
 0x2cc   :  { %v2546_v28 = vpop.f32.mrf.mxu3  ;;  %v8195_v29 = vpop.f32.mrf.mxu0  ;;  %v3446_v43 = vand.u32 4294901760, %v3445_v6 }
 0x2cd   :  { %v8197_v35 = vadd.f32 %v2546_v28, %v2495_v34 }
 0x2ce   :  { %v2682_v30 = vpop.f32.mrf.mxu1  ;;  %3447 = vmatpush.msra.mxu1 %v3446_v43  ;;  %v9776_v43 = vand.u32 4294901760, %v8152_v21 }
 0x2cf   :  { %9773 = vst [vmem:[#allocation35_spill] sm:$0xff] %v8197_v35  ;;  %3022 = vmatmul.f32.gmra.mxu2 %v9725_v59  ;;  %3132 = vmatmul.f32.gmra.mxu0 %v9726_v36 }
 0x2d0   :  { %3634 = vmatpush.msrb.mxu0 %v9776_v43 }
 0x2d1   :  { %3086 = vmatmul.f32.gmra.mxu3 %v6982_v42  ;;  %3189 = vmatmul.f32.gmra.mxu1 %v9727_v46 }
 0x2d2   :  { %v2502_v56 = vpop.f32.mrf.mxu2  ;;  %3638 = vmatpush.msrb.mxu0 %v3444_v48 }
 0x2d3   :  { %v2503_v34 = vadd.f32 %v2502_v56, %v2443_v41  ;;  %v2679_v56 = vadd.f32 %v2678_v61, %v8161_v8  ;;  %v2683_v8 = vadd.f32 %v2682_v30, %v8171_v33 }
 0x2d4   :  { %v2550_v38 = vpop.f32.mrf.mxu3  ;;  %v8205_v28 = vpop.f32.mrf.mxu0 }
 0x2d5   :  { %v8207_v23 = vadd.f32 %v2550_v38, %v2499_v53 }
 0x2d6   :  { %v2686_v5 = vpop.f32.mrf.mxu1 }
 0x2d7   :  { %9774 = vst [vmem:[#allocation36_spill] sm:$0xff] %v8207_v23  ;;  %3030 = vmatmul.f32.gmra.mxu2 %v6898_v62  ;;  %3137 = vmatmul.f32.gmra.mxu0 %v9728_v9 }
 0x2d9   :  { %3090 = vmatmul.f32.gmra.mxu3 %v6782_v12  ;;  %3195 = vmatmul.f32.gmra.mxu1 %v9729_v51 }
 0x2da   :  { %v2506_v41 = vpop.f32.mrf.mxu2 }
 0x2db   :  { %v2507_v4 = vadd.f32 %v2506_v41, %v2449_v3 }
 0x2dc   :  { %v2554_v25 = vpop.f32.mrf.mxu3  ;;  %v8215_v6 = vpop.f32.mrf.mxu0 }
 0x2dd   :  { %v8217_v53 = vadd.f32 %v2554_v25, %v2503_v34  ;;  %v3450_v34 = vand.u32 4294901760, %v3449_v32 }
 0x2de   :  { %v2690_v54 = vpop.f32.mrf.mxu1 }
 0x2df   :  { %9775 = vst [vmem:[#allocation37_spill] sm:$0xff] %v8217_v53  ;;  %3142 = vmatmul.f32.gmra.mxu0 %v9733_v57  ;;  %3255 = vmatmul.f32.vlgmr.msra.gmra.mxu2 %v6780_v11  ;;  %v3451_v3 = vsub.f32 %v3449_v32, %v3450_v34  ;;  %v2691_v52 = vadd.f32 %v2690_v54, %v8205_v28 }
 0x2e0   :  { %3642 = vmatpush.msrb.mxu0 %v3450_v34 }
 0x2e1   :  { %3094 = vmatmul.f32.gmra.mxu3 %v6798_v18  ;;  %3201 = vmatmul.f32.gmra.mxu1 %v9734_v19  ;;  %v3452_v40 = vand.u32 4294901760, %v3451_v3 }
 0x2e2   :  { %v2734_v38 = vpop.f32.mrf.mxu2 }
 0x2e3   :  { %v2735_v60 = vadd.f32 %v2734_v38, %v2679_v56  ;;  %3453 = vmatpush.msra.mxu1 %v3452_v40 }
 0x2e4   :  { %v2558_v41 = vpop.f32.mrf.mxu3  ;;  %v2626_v25 = vpop.f32.mrf.mxu0 }
 0x2e5   :  { %v8240_v53 = vadd.f32 %v2558_v41, %v2507_v4  ;;  %6639 = vmatpush.msk.msrb.mxu1 %vm187_vm0, %v8141_v55  ;;  %v2687_v55 = vadd.f32 %v2686_v5, %v8195_v29 }
 0x2e6   :  { %v2694_v21 = vpop.f32.mrf.mxu1 }
 0x2e7   :  { %9777 = vst [vmem:[#allocation38_spill] sm:$0xff] %v8240_v53  ;;  %3147 = vmatmul.f32.gmra.mxu0 %v9736_v16  ;;  %3259 = vmatmul.f32.gmra.mxu2 %v6784_v13 }
 0x2e8   :  { %6640 = vmatpush.msk.msrb.mxu1 %vm58_vm12, %v9731_v1  ;;  %vm5301_vm12 = vcmask 39936  }
 0x2e9   :  { %3207 = vmatmul.f32.gmra.mxu1 %v9737_v45  ;;  %3307 = vmatmul.f32.vlgmr.msra.gmra.mxu3 %v6780_v11 }
 0x2ea   :  { %v2739_v61 = vpop.f32.mrf.mxu2  ;;  %6641 = vmatpush.msk.msrb.mxu1 %vm45_vm13, %v9731_v1 }
 0x2eb   :  { %v2740_v48 = vadd.f32 %v2739_v61, %v2683_v8 }
 0x2ec   :  { %v2795_v4 = vpop.f32.mrf.mxu3  ;;  %v2634_v32 = vpop.f32.mrf.mxu0 }
 0x2ed   :  { %v8253_v43 = vadd.f32 %v2795_v4, %v2735_v60 }
 0x2ee   :  { %v2698_v56 = vpop.f32.mrf.mxu1 }
 0x2ef   :  { %9778 = vst [vmem:[#allocation39_spill] sm:$0xff] %v8253_v43  ;;  %3152 = vmatmul.f32.gmra.mxu0 %v9739_v37  ;;  %3263 = vmatmul.f32.gmra.mxu2 %v6877_v50 }
 0x2f1   :  { %3213 = vmatmul.f32.gmra.mxu1 %v9740_v47  ;;  %3311 = vmatmul.f32.gmra.mxu3 %v6784_v13 }
 0x2f2   :  { %v2744_v33 = vpop.f32.mrf.mxu2 }
 0x2f3   :  { %v2745_v30 = vadd.f32 %v2744_v33, %v2687_v55 }
 0x2f4   :  { %v2801_v34 = vpop.f32.mrf.mxu3  ;;  %v2642_v38 = vpop.f32.mrf.mxu0 }
 0x2f5   :  { %v8264_v60 = vadd.f32 %v2801_v34, %v2740_v48  ;;  %v2695_v48 = vadd.f32 %v2694_v21, %v8215_v6  ;;  %v2699_v34 = vadd.f32 %v2698_v56, %v2626_v25 }
 0x2f6   :  { %v2702_v3 = vpop.f32.mrf.mxu1 }
 0x2f7   :  { %9779 = vst [vmem:[#allocation40_spill] sm:$0xff] %v8264_v60  ;;  %3157 = vmatmul.f32.gmra.mxu0 %v9742_v22  ;;  %3267 = vmatmul.f32.gmra.mxu2 %v6903_v0 }
 0x2f9   :  { %3219 = vmatmul.f32.gmra.mxu1 %v9743_v27  ;;  %3315 = vmatmul.f32.gmra.mxu3 %v6877_v50 }
 0x2fa   :  { %v2749_v29 = vpop.f32.mrf.mxu2 }
 0x2fb   :  { %v2750_v5 = vadd.f32 %v2749_v29, %v2691_v52  ;;  %v8291_v52 = vperm.slane %v8129_v20, 1 }
 0x2fc   :  { %v2807_v41 = vpop.f32.mrf.mxu3  ;;  %v8271_v40 = vpop.f32.mrf.mxu0 }
 0x2fd   :  { %9780 = vst [vmem:[#allocation41_spill] sm:$0xff] %v8271_v40  ;;  %v8273_v8 = vadd.f32 %v2807_v41, %v2745_v30  ;;  %vm72_vm14 = vcmp.eq.s32.totalorder %v6788_v15, %v8291_v52  ;;  %vm59_vm15 = vcmp.eq.s32.totalorder %v9730_v58, %v8291_v52  ;;  %vm46_vm1 = vcmp.eq.s32.totalorder %v9732_v17, %v8291_v52 }
 0x2fe   :  { %v2706_v61 = vpop.f32.mrf.mxu1  ;;  %v8302_v25 = vsel %vm72_vm14, 1.0, %v9684_v2 }
 0x2ff   :  { %9781 = vst [vmem:[#allocation42_spill] sm:$0xff] %v8273_v8  ;;  %3271 = vmatmul.f32.gmra.mxu2 %v6940_v26  ;;  %3363 = vmatmul.f32.vlgmr.msra.gmra.mxu0 %v6862_v44  ;;  %v216_v56 = vsel %vm187_vm0, %v8302_v25, 0 }
 0x300   :  { %6642 = vmatpush.msk.msra.mxu2 %vm187_vm0, %v8302_v25 }
 0x301   :  { %3225 = vmatmul.f32.gmra.mxu1 %v6853_v39  ;;  %3319 = vmatmul.f32.gmra.mxu3 %v6903_v0 }
 0x302   :  { %v2754_v28 = vpop.f32.mrf.mxu2  ;;  %6643 = vmatpush.msk.msra.mxu2 %vm59_vm15, %v9731_v1 }
 0x303   :  { %v2755_v54 = vadd.f32 %v2754_v28, %v2695_v48  ;;  %v8310_v28 = vsub.f32 %v216_v56, %v216_v56 }
 0x304   :  { %v2813_v4 = vpop.f32.mrf.mxu3  ;;  %v8280_v55 = vpop.f32.mrf.mxu0  ;;  %6644 = vmatpush.msk.msra.mxu2 %vm46_vm1, %v9731_v1 }
 0x305   :  { %9782 = vst [vmem:[#allocation43_spill] sm:$0xff] %v8280_v55  ;;  %v8282_v33 = vadd.f32 %v2813_v4, %v2750_v5  ;;  %3891 = vmatpush.msra.mxu0 %v8310_v28 }
 0x306   :  { %v8284_v30 = vpop.f32.mrf.mxu1 }
 0x307   :  { %9783 = vst [vmem:[#allocation44_spill] sm:$0xff] %v8282_v33  ;;  %3275 = vmatmul.f32.gmra.mxu2 %v6982_v42  ;;  %3371 = vmatmul.f32.gmra.mxu0 %v9750_v49 }
 0x308   :  { %9784 = vst [vmem:[#allocation45_spill] sm:$0xff] %v8284_v30 }
 0x309   :  { %3323 = vmatmul.f32.gmra.mxu3 %v6940_v26  ;;  %3455 = vmatmul.f32.vlgmr.msra.gmra.mxu1 %v6780_v11 }
 0x30a   :  { %v2759_v6 = vpop.f32.mrf.mxu2  ;;  %6645 = vmatpush.msk.msra.mxu1 %vm187_vm0, %v8302_v25 }
 0x30b   :  { %v2760_v21 = vadd.f32 %v2759_v6, %v2699_v34  ;;  %v3827_v34 = vand.u32 4294901760, %v8310_v28 }
 0x30c   :  { %v2819_v29 = vpop.f32.mrf.mxu3  ;;  %v8293_v41 = vpop.f32.mrf.mxu0  ;;  %6646 = vmatpush.msk.msra.mxu1 %vm59_vm15, %v9731_v1 }
 0x30d   :  { %9785 = vst [vmem:[#allocation46_spill] sm:$0xff] %v8293_v41  ;;  %v8295_v5 = vadd.f32 %v2819_v29, %v2755_v54  ;;  %v2703_v54 = vadd.f32 %v2702_v3, %v2634_v32  ;;  %v3828_v56 = vsub.f32 %v8310_v28, %v3827_v34  ;;  %v9791_v3 = vld [vmem:[#allocation21_spill] sm:$0xff] }
 0x30e   :  { %v8299_v48 = vpop.f32.mrf.mxu1  ;;  %6647 = vmatpush.msk.msra.mxu1 %vm46_vm1, %v9731_v1 }
 0x30f   :  { %9786 = vst [vmem:[#allocation47_spill] sm:$0xff] %v8295_v5  ;;  %3279 = vmatmul.f32.gmra.mxu2 %v6782_v12  ;;  %3379 = vmatmul.f32.gmra.mxu0 %v6935_v14  ;;  %v3829_v32 = vand.u32 4294901760, %v3828_v56 }
 0x310   :  { %9787 = vst [vmem:[#allocation48_spill] sm:$0xff] %v8299_v48  ;;  %v2707_v48 = vadd.f32 %v2706_v61, %v2642_v38  ;;  %v6544_v38 = vsel %vm59_vm15, 1.0, %v9684_v2 }
 0x311   :  { %3327 = vmatmul.f32.gmra.mxu3 %v6982_v42  ;;  %3459 = vmatmul.f32.gmra.mxu1 %v6784_v13  ;;  %v3832_v61 = vsub.f32 %v6544_v38, %v6544_v38 }
 0x312   :  { %v2764_v4 = vpop.f32.mrf.mxu2  ;;  %3830 = vmatpush.msra.mxu3 %v3829_v32 }
 0x313   :  { %v2765_v6 = vadd.f32 %v2764_v4, %v2703_v54  ;;  %3894 = vmatpush.msra.mxu0 %v3832_v61 }
 0x314   :  { %v2825_v29 = vpop.f32.mrf.mxu3  ;;  %v8318_v33 = vpop.f32.mrf.mxu0 }
 0x315   :  { %9788 = vst [vmem:[#allocation49_spill] sm:$0xff] %v8318_v33  ;;  %v8321_v41 = vadd.f32 %v2825_v29, %v2760_v21 }
 0x316   :  { %v8323_v8 = vpop.f32.mrf.mxu1 }
 0x317   :  { %9789 = vst [vmem:[#allocation50_spill] sm:$0xff] %v8321_v41  ;;  %3283 = vmatmul.f32.gmra.mxu2 %v6798_v18  ;;  %3387 = vmatmul.f32.gmra.mxu0 %v9791_v3 }
 0x318   :  { %9790 = vst [vmem:[#allocation51_spill] sm:$0xff] %v8323_v8 }
 0x319   :  { %3331 = vmatmul.f32.gmra.mxu3 %v6782_v12  ;;  %3463 = vmatmul.f32.gmra.mxu1 %v6877_v50 }
 0x31a   :  { %v2769_v54 = vpop.f32.mrf.mxu2 }
 0x31b   :  { %v2770_v4 = vadd.f32 %v2769_v54, %v2707_v48  ;;  %v3833_v48 = vand.u32 4294901760, %v3832_v61 }
 0x31c   :  { %v2831_v33 = vpop.f32.mrf.mxu3  ;;  %v8329_v55 = vpop.f32.mrf.mxu0 }
 0x31d   :  { %9792 = vst [vmem:[#allocation52_spill] sm:$0xff] %v8329_v55  ;;  %v8331_v21 = vadd.f32 %v2831_v33, %v2765_v6  ;;  %v3834_v32 = vsub.f32 %v3832_v61, %v3833_v48 }
 0x31e   :  { %v8335_v28 = vpop.f32.mrf.mxu1 }
 0x31f   :  { %9793 = vst [vmem:[#allocation53_spill] sm:$0xff] %v8331_v21  ;;  %3395 = vmatmul.f32.gmra.mxu0 %v9718_v24  ;;  %3511 = vmatmul.f32.vlgmr.msrb.gmra.mxu2 %v9719_v63  ;;  %v3835_v38 = vand.u32 4294901760, %v3834_v32 }
 0x320   :  { %9794 = vst [vmem:[#allocation54_spill] sm:$0xff] %v8335_v28  ;;  %4023 = vmatpush.msrb.mxu2 %v3827_v34 }
 0x321   :  { %3335 = vmatmul.f32.gmra.mxu3 %v6798_v18  ;;  %3467 = vmatmul.f32.gmra.mxu1 %v6903_v0 }
 0x322   :  { %v2975_v33 = vpop.f32.mrf.mxu2  ;;  %3836 = vmatpush.msra.mxu3 %v3835_v38  ;;  %4027 = vmatpush.msrb.mxu2 %v3833_v48 }
 0x324   :  { %v2837_v6 = vpop.f32.mrf.mxu3  ;;  %v8353_v29 = vpop.f32.mrf.mxu0 }
 0x325   :  { %9795 = vst [vmem:[#allocation55_spill] sm:$0xff] %v8353_v29  ;;  %v8355_v56 = vadd.f32 %v2837_v6, %v2770_v4 }
 0x326   :  { %v8357_v54 = vpop.f32.mrf.mxu1 }
 0x327   :  { %9796 = vst [vmem:[#allocation56_spill] sm:$0xff] %v8355_v56  ;;  %3403 = vmatmul.f32.gmra.mxu0 %v9691_v10  ;;  %3516 = vmatmul.f32.gmra.mxu2 %v9723_v31 }
 0x328   :  { %9797 = vst [vmem:[#allocation57_spill] sm:$0xff] %v8357_v54 }
 0x329   :  { %3471 = vmatmul.f32.gmra.mxu1 %v6940_v26  ;;  %3572 = vmatmul.f32.vlgmr.msrb.gmra.mxu3 %v9724_v7 }
 0x32a   :  { %v2983_v28 = vpop.f32.mrf.mxu2 }
 0x32c   :  { %v3067_v8 = vpop.f32.mrf.mxu3  ;;  %v8363_v21 = vpop.f32.mrf.mxu0 }
 0x32d   :  { %9798 = vst [vmem:[#allocation58_spill] sm:$0xff] %v8363_v21  ;;  %v8365_v60 = vadd.f32 %v3067_v8, %v2975_v33  ;;  %v6531_v8 = vsel %vm46_vm1, 1.0, %v9684_v2 }
 0x32e   :  { %v8367_v4 = vpop.f32.mrf.mxu1  ;;  %v3838_v33 = vsub.f32 %v6531_v8, %v6531_v8 }
 0x32f   :  { %9799 = vst [vmem:[#allocation59_spill] sm:$0xff] %v8367_v4  ;;  %3411 = vmatmul.f32.gmra.mxu0 %v9725_v59  ;;  %3521 = vmatmul.f32.gmra.mxu2 %v9726_v36 }
 0x330   :  { %v3839_v56 = vand.u32 4294901760, %v3838_v33  ;;  %3897 = vmatpush.msra.mxu0 %v3838_v33 }
 0x331   :  { %3475 = vmatmul.f32.gmra.mxu1 %v6982_v42  ;;  %3578 = vmatmul.f32.gmra.mxu3 %v9727_v46 }
 0x332   :  { %v2991_v61 = vpop.f32.mrf.mxu2  ;;  %v3840_v4 = vsub.f32 %v3838_v33, %v3839_v56  ;;  %4031 = vmatpush.msrb.mxu2 %v3839_v56 }
 0x334   :  { %v3071_v6 = vpop.f32.mrf.mxu3  ;;  %v8387_v32 = vpop.f32.mrf.mxu0  ;;  %v3841_v34 = vand.u32 4294901760, %v3840_v4 }
 0x335   :  { %9800 = vst [vmem:[#allocation60_spill] sm:$0xff] %v8387_v32  ;;  %v8389_v38 = vadd.f32 %v3071_v6, %v2983_v28 }
 0x336   :  { %v8391_v21 = vpop.f32.mrf.mxu1  ;;  %3842 = vmatpush.msra.mxu3 %v3841_v34 }
 0x337   :  { %9801 = vst [vmem:[#allocation61_spill] sm:$0xff] %v8391_v21  ;;  %3419 = vmatmul.f32.gmra.mxu0 %v6898_v62  ;;  %3526 = vmatmul.f32.gmra.mxu2 %v9728_v9 }
 0x338   :  { %6648 = vmatpush.msk.msrb.mxu3 %vm187_vm0, %v8302_v25 }
 0x339   :  { %3479 = vmatmul.f32.gmra.mxu1 %v6782_v12  ;;  %3584 = vmatmul.f32.gmra.mxu3 %v9729_v51 }
 0x33a   :  { %v2999_v8 = vpop.f32.mrf.mxu2  ;;  %6649 = vmatpush.msk.msrb.mxu3 %vm59_vm15, %v9731_v1  ;;  %vm6468_vm15 = vcmask 1040384  }
 0x33c   :  { %v3075_v28 = vpop.f32.mrf.mxu3  ;;  %v3123_v6 = vpop.f32.mrf.mxu0  ;;  %6650 = vmatpush.msk.msrb.mxu3 %vm46_vm1, %v9731_v1 }
 0x33d   :  { %v8399_v48 = vadd.f32 %v3075_v28, %v2991_v61  ;;  %v3124_v55 = vadd.f32 %v3123_v6, %v8365_v60 }
 0x33e   :  { %v8401_v32 = vpop.f32.mrf.mxu1 }
 0x33f   :  { %9802 = vst [vmem:[#allocation62_spill] sm:$0xff] %v8401_v32  ;;  %3531 = vmatmul.f32.gmra.mxu2 %v9733_v57  ;;  %3644 = vmatmul.f32.vlgmr.msrb.gmra.mxu0 %v6780_v11 }
 0x341   :  { %3483 = vmatmul.f32.gmra.mxu1 %v6798_v18  ;;  %3590 = vmatmul.f32.gmra.mxu3 %v9734_v19 }
 0x342   :  { %v3007_v25 = vpop.f32.mrf.mxu2 }
 0x344   :  { %v3079_v56 = vpop.f32.mrf.mxu3  ;;  %v3128_v4 = vpop.f32.mrf.mxu0 }
 0x345   :  { %v8415_v61 = vadd.f32 %v3079_v56, %v2999_v8 }
 0x346   :  { %v3184_v33 = vpop.f32.mrf.mxu1 }
 0x347   :  { %3536 = vmatmul.f32.gmra.mxu2 %v9736_v16  ;;  %3648 = vmatmul.f32.gmra.mxu0 %v6784_v13 }
 0x349   :  { %3596 = vmatmul.f32.gmra.mxu3 %v9737_v45  ;;  %3696 = vmatmul.f32.vlgmr.msrb.gmra.mxu1 %v6780_v11 }
 0x34a   :  { %v3015_v52 = vpop.f32.mrf.mxu2 }
 0x34c   :  { %v3083_v34 = vpop.f32.mrf.mxu3  ;;  %v3133_v28 = vpop.f32.mrf.mxu0 }
 0x34d   :  { %v8421_v32 = vadd.f32 %v3083_v34, %v3007_v25 }
 0x34e   :  { %v3190_v21 = vpop.f32.mrf.mxu1 }
 0x34f   :  { %3541 = vmatmul.f32.gmra.mxu2 %v9739_v37  ;;  %3652 = vmatmul.f32.gmra.mxu0 %v6877_v50 }
 0x351   :  { %3602 = vmatmul.f32.gmra.mxu3 %v9740_v47  ;;  %3700 = vmatmul.f32.gmra.mxu1 %v6784_v13 }
 0x352   :  { %v3023_v8 = vpop.f32.mrf.mxu2 }
 0x354   :  { %v3087_v56 = vpop.f32.mrf.mxu3  ;;  %v3138_v29 = vpop.f32.mrf.mxu0 }
 0x355   :  { %v8427_v41 = vadd.f32 %v3087_v56, %v3015_v52  ;;  %v3185_v52 = vadd.f32 %v3184_v33, %v3124_v55 }
 0x356   :  { %v3196_v30 = vpop.f32.mrf.mxu1 }
 0x357   :  { %3546 = vmatmul.f32.gmra.mxu2 %v9742_v22  ;;  %3656 = vmatmul.f32.gmra.mxu0 %v6903_v0 }
 0x359   :  { %3608 = vmatmul.f32.gmra.mxu3 %v9743_v27  ;;  %3704 = vmatmul.f32.gmra.mxu1 %v6877_v50 }
 0x35a   :  { %v3031_v25 = vpop.f32.mrf.mxu2 }
 0x35c   :  { %v3091_v34 = vpop.f32.mrf.mxu3  ;;  %v8433_v54 = vpop.f32.mrf.mxu0 }
 0x35d   :  { %v8435_v40 = vadd.f32 %v3091_v34, %v3023_v8  ;;  %v3129_v34 = vadd.f32 %v3128_v4, %v8389_v38 }
 0x35e   :  { %v3202_v43 = vpop.f32.mrf.mxu1 }
 0x35f   :  { %3660 = vmatmul.f32.gmra.mxu0 %v6940_v26  ;;  %3752 = vmatmul.f32.vlgmr.msra.gmra.mxu2 %v6862_v44  ;;  %v3191_v60 = vadd.f32 %v3190_v21, %v3129_v34  ;;  %v8461_v21 = vperm.slane %v8129_v20, 2 }
 0x361   :  { %3614 = vmatmul.f32.gmra.mxu3 %v6853_v39  ;;  %3708 = vmatmul.f32.gmra.mxu1 %v6903_v0  ;;  %vm73_vm2 = vcmp.eq.s32.totalorder %v6788_v15, %v8461_v21  ;;  %vm60_vm3 = vcmp.eq.s32.totalorder %v9730_v58, %v8461_v21  ;;  %vm47_vm4 = vcmp.eq.s32.totalorder %v9732_v17, %v8461_v21 }
 0x362   :  { %v3256_v56 = vpop.f32.mrf.mxu2 }
 0x363   :  { %v3257_v5 = vadd.f32 %v3256_v56, %v3185_v52 }
 0x364   :  { %v3095_v53 = vpop.f32.mrf.mxu3  ;;  %v8442_v23 = vpop.f32.mrf.mxu0 }
 0x365   :  { %v8444_v35 = vadd.f32 %v3095_v53, %v3031_v25  ;;  %v3134_v25 = vadd.f32 %v3133_v28, %v8399_v48  ;;  %v8468_v48 = vsel %vm73_vm2, 1.0, %v9684_v2 }
 0x366   :  { %v3208_v8 = vpop.f32.mrf.mxu1  ;;  %6651 = vmatpush.msk.msrb.mxu0 %vm187_vm0, %v8468_v48 }
 0x367   :  { %3664 = vmatmul.f32.gmra.mxu0 %v6982_v42  ;;  %3760 = vmatmul.f32.gmra.mxu2 %v9750_v49  ;;  %v3197_v38 = vadd.f32 %v3196_v30, %v3134_v25  ;;  %v219_v30 = vsel %vm187_vm0, %v8468_v48, 0  ;;  %v3139_v25 = vadd.f32 %v3138_v29, %v8415_v61 }
 0x368   :  { %6652 = vmatpush.msk.msrb.mxu0 %vm60_vm3, %v9731_v1 }
 0x369   :  { %3712 = vmatmul.f32.gmra.mxu1 %v6940_v26  ;;  %3844 = vmatmul.f32.vlgmr.msra.gmra.mxu3 %v6780_v11 }
 0x36a   :  { %v3260_v55 = vpop.f32.mrf.mxu2  ;;  %6654 = vmatpush.msk.msra.mxu3 %vm187_vm0, %v8468_v48  ;;  %6653 = vmatpush.msk.msrb.mxu0 %vm47_vm4, %v9731_v1 }
 0x36b   :  { %v3261_v6 = vadd.f32 %v3260_v55, %v3191_v60 }
 0x36c   :  { %v3308_v33 = vpop.f32.mrf.mxu3  ;;  %v8451_v52 = vpop.f32.mrf.mxu0  ;;  %6655 = vmatpush.msk.msra.mxu3 %vm60_vm3, %v9731_v1 }
 0x36d   :  { %v8453_v56 = vadd.f32 %v3308_v33, %v3257_v5  ;;  %v8478_v33 = vsub.f32 %v219_v30, %v219_v30 }
 0x36e   :  { %v3214_v53 = vpop.f32.mrf.mxu1  ;;  %6656 = vmatpush.msk.msra.mxu3 %vm47_vm4, %v9731_v1 }
 0x36f   :  { %9803 = vst [vmem:[#allocation63_spill] sm:$0xff] %v8453_v56  ;;  %3668 = vmatmul.f32.gmra.mxu0 %v6782_v12  ;;  %3768 = vmatmul.f32.gmra.mxu2 %v6935_v14 }
 0x370   :  { %4280 = vmatpush.msra.mxu2 %v8478_v33 }
 0x371   :  { %3716 = vmatmul.f32.gmra.mxu1 %v6982_v42  ;;  %3848 = vmatmul.f32.gmra.mxu3 %v6784_v13 }
 0x372   :  { %v3264_v4 = vpop.f32.mrf.mxu2 }
 0x373   :  { %v3265_v34 = vadd.f32 %v3264_v4, %v3197_v38  ;;  %v3203_v38 = vadd.f32 %v3202_v43, %v3139_v25  ;;  %v3144_v43 = vadd.f32 %v8433_v54, %v8421_v32  ;;  %v3149_v54 = vadd.f32 %v8442_v23, %v8427_v41 }
 0x374   :  { %v3312_v5 = vpop.f32.mrf.mxu3  ;;  %v8465_v60 = vpop.f32.mrf.mxu0 }
 0x375   :  { %v8470_v28 = vadd.f32 %v3312_v5, %v3261_v6  ;;  %v9645_v6 = vand.u32 4294901760, %v8478_v33  ;;  %v3209_v25 = vadd.f32 %v3208_v8, %v3144_v43  ;;  %v3215_v32 = vadd.f32 %v3214_v53, %v3149_v54 }
 0x376   :  { %v3220_v55 = vpop.f32.mrf.mxu1 }
 0x377   :  { %9804 = vst [vmem:[#allocation64_spill] sm:$0xff] %v8470_v28  ;;  %3672 = vmatmul.f32.gmra.mxu0 %v6798_v18  ;;  %3776 = vmatmul.f32.gmra.mxu2 %v9791_v3  ;;  %v4217_v5 = vsub.f32 %v8478_v33, %v9645_v6 }
 0x379   :  { %3720 = vmatmul.f32.gmra.mxu1 %v6782_v12  ;;  %3852 = vmatmul.f32.gmra.mxu3 %v6877_v50  ;;  %v4218_v28 = vand.u32 4294901760, %v4217_v5 }
 0x37a   :  { %v3268_v4 = vpop.f32.mrf.mxu2 }
 0x37b   :  { %v3269_v30 = vadd.f32 %v3268_v4, %v3203_v38  ;;  %4219 = vmatpush.msrb.mxu1 %v4218_v28 }
 0x37c   :  { %v3316_v29 = vpop.f32.mrf.mxu3  ;;  %v8490_v61 = vpop.f32.mrf.mxu0 }
 0x37d   :  { %v8492_v56 = vadd.f32 %v3316_v29, %v3265_v34 }
 0x37e   :  { %v3226_v3 = vpop.f32.mrf.mxu1 }
 0x37f   :  { %9805 = vst [vmem:[#allocation65_spill] sm:$0xff] %v8492_v56  ;;  %3784 = vmatmul.f32.gmra.mxu2 %v9718_v24  ;;  %3900 = vmatmul.f32.vlgmr.msra.gmra.mxu0 %v9719_v63 }
 0x381   :  { %3724 = vmatmul.f32.gmra.mxu1 %v6798_v18  ;;  %3856 = vmatmul.f32.gmra.mxu3 %v6903_v0 }
 0x382   :  { %v3272_v38 = vpop.f32.mrf.mxu2 }
 0x383   :  { %v3273_v4 = vadd.f32 %v3272_v38, %v3209_v25  ;;  %v3154_v38 = vadd.f32 %v8451_v52, %v8435_v40  ;;  %v3159_v52 = vadd.f32 %v8465_v60, %v8444_v35 }
 0x384   :  { %v3320_v6 = vpop.f32.mrf.mxu3  ;;  %v8500_v5 = vpop.f32.mrf.mxu0 }
 0x385   :  { %v8502_v34 = vadd.f32 %v3320_v6, %v3269_v30  ;;  %v6545_v6 = vsel %vm60_vm3, 1.0, %v9684_v2 }
 0x386   :  { %v3456_v28 = vpop.f32.mrf.mxu1  ;;  %v4221_v41 = vsub.f32 %v6545_v6, %v6545_v6 }
 0x387   :  { %9806 = vst [vmem:[#allocation66_spill] sm:$0xff] %v8502_v34  ;;  %3792 = vmatmul.f32.gmra.mxu2 %v9691_v10  ;;  %3905 = vmatmul.f32.gmra.mxu0 %v9723_v31  ;;  %v3221_v34 = vadd.f32 %v3220_v55, %v3154_v38  ;;  %v3227_v55 = vadd.f32 %v3226_v3, %v3159_v52  ;;  %v6532_v3 = vsel %vm47_vm4, 1.0, %v9684_v2 }
 0x388   :  { %v4222_v43 = vand.u32 4294901760, %v4221_v41  ;;  %4283 = vmatpush.msra.mxu2 %v4221_v41  ;;  %v4227_v60 = vsub.f32 %v6532_v3, %v6532_v3 }
 0x389   :  { %3860 = vmatmul.f32.gmra.mxu3 %v6940_v26  ;;  %3961 = vmatmul.f32.vlgmr.msra.gmra.mxu1 %v9724_v7 }
 0x38a   :  { %v3276_v8 = vpop.f32.mrf.mxu2  ;;  %v4223_v54 = vsub.f32 %v4221_v41, %v4222_v43  ;;  %4286 = vmatpush.msra.mxu2 %v4227_v60 }
 0x38b   :  { %v3277_v23 = vadd.f32 %v3276_v8, %v3215_v32 }
 0x38c   :  { %v3324_v53 = vpop.f32.mrf.mxu3  ;;  %v8524_v30 = vpop.f32.mrf.mxu0  ;;  %v4224_v32 = vand.u32 4294901760, %v4223_v54 }
 0x38d   :  { %v8526_v29 = vadd.f32 %v3324_v53, %v3273_v4 }
 0x38e   :  { %v3460_v25 = vpop.f32.mrf.mxu1  ;;  %4225 = vmatpush.msrb.mxu1 %v4224_v32  ;;  %v9810_v32 = vand.u32 4294901760, %v8478_v33 }
 0x38f   :  { %9807 = vst [vmem:[#allocation67_spill] sm:$0xff] %v8526_v29  ;;  %3800 = vmatmul.f32.gmra.mxu2 %v9725_v59  ;;  %3910 = vmatmul.f32.gmra.mxu0 %v9726_v36 }
 0x390   :  { %4412 = vmatpush.msra.mxu0 %v9810_v32 }
 0x391   :  { %3864 = vmatmul.f32.gmra.mxu3 %v6982_v42  ;;  %3967 = vmatmul.f32.gmra.mxu1 %v9727_v46 }
 0x392   :  { %v3280_v8 = vpop.f32.mrf.mxu2  ;;  %4416 = vmatpush.msra.mxu0 %v4222_v43 }
 0x393   :  { %v3281_v4 = vadd.f32 %v3280_v8, %v3221_v34  ;;  %v3457_v8 = vadd.f32 %v3456_v28, %v8490_v61  ;;  %v3461_v61 = vadd.f32 %v3460_v25, %v8500_v5 }
 0x394   :  { %v3328_v6 = vpop.f32.mrf.mxu3  ;;  %v8534_v53 = vpop.f32.mrf.mxu0 }
 0x395   :  { %v8536_v56 = vadd.f32 %v3328_v6, %v3277_v23 }
 0x396   :  { %v3464_v40 = vpop.f32.mrf.mxu1 }
 0x397   :  { %9808 = vst [vmem:[#allocation68_spill] sm:$0xff] %v8536_v56  ;;  %3808 = vmatmul.f32.gmra.mxu2 %v6898_v62  ;;  %3915 = vmatmul.f32.gmra.mxu0 %v9728_v9 }
 0x399   :  { %3868 = vmatmul.f32.gmra.mxu3 %v6782_v12  ;;  %3973 = vmatmul.f32.gmra.mxu1 %v9729_v51 }
 0x39a   :  { %v3284_v34 = vpop.f32.mrf.mxu2 }
 0x39b   :  { %v3285_v41 = vadd.f32 %v3284_v34, %v3227_v55 }
 0x39c   :  { %v3332_v38 = vpop.f32.mrf.mxu3  ;;  %v8544_v54 = vpop.f32.mrf.mxu0 }
 0x39d   :  { %v8546_v23 = vadd.f32 %v3332_v38, %v3281_v4  ;;  %v4228_v4 = vand.u32 4294901760, %v4227_v60 }
 0x39e   :  { %v3468_v35 = vpop.f32.mrf.mxu1 }
 0x39f   :  { %9809 = vst [vmem:[#allocation69_spill] sm:$0xff] %v8546_v23  ;;  %3920 = vmatmul.f32.gmra.mxu0 %v9733_v57  ;;  %4033 = vmatmul.f32.vlgmr.msrb.gmra.mxu2 %v6780_v11  ;;  %v4229_v55 = vsub.f32 %v4227_v60, %v4228_v4  ;;  %v3469_v21 = vadd.f32 %v3468_v35, %v8534_v53 }
 0x3a0   :  { %4420 = vmatpush.msra.mxu0 %v4228_v4 }
 0x3a1   :  { %3872 = vmatmul.f32.gmra.mxu3 %v6798_v18  ;;  %3979 = vmatmul.f32.gmra.mxu1 %v9734_v19  ;;  %v4230_v3 = vand.u32 4294901760, %v4229_v55 }
 0x3a2   :  { %v3512_v6 = vpop.f32.mrf.mxu2 }
 0x3a3   :  { %v3513_v52 = vadd.f32 %v3512_v6, %v3457_v8  ;;  %4231 = vmatpush.msrb.mxu1 %v4230_v3 }
 0x3a4   :  { %v3336_v34 = vpop.f32.mrf.mxu3  ;;  %v3404_v38 = vpop.f32.mrf.mxu0 }
 0x3a5   :  { %v8569_v23 = vadd.f32 %v3336_v34, %v3285_v41  ;;  %6657 = vmatpush.msk.msra.mxu1 %vm187_vm0, %v8468_v48  ;;  %v3465_v48 = vadd.f32 %v3464_v40, %v8524_v30 }
 0x3a6   :  { %v3472_v33 = vpop.f32.mrf.mxu1 }
 0x3a7   :  { %9811 = vst [vmem:[#allocation70_spill] sm:$0xff] %v8569_v23  ;;  %3925 = vmatmul.f32.gmra.mxu0 %v9736_v16  ;;  %4037 = vmatmul.f32.gmra.mxu2 %v6784_v13 }
 0x3a8   :  { %6658 = vmatpush.msk.msra.mxu1 %vm60_vm3, %v9731_v1 }
 0x3a9   :  { %3985 = vmatmul.f32.gmra.mxu1 %v9737_v45  ;;  %4085 = vmatmul.f32.vlgmr.msrb.gmra.mxu3 %v6780_v11 }
 0x3aa   :  { %v3517_v28 = vpop.f32.mrf.mxu2  ;;  %6659 = vmatpush.msk.msra.mxu1 %vm47_vm4, %v9731_v1 }
 0x3ab   :  { %v3518_v43 = vadd.f32 %v3517_v28, %v3461_v61 }
 0x3ac   :  { %v3573_v41 = vpop.f32.mrf.mxu3  ;;  %v3412_v60 = vpop.f32.mrf.mxu0 }
 0x3ad   :  { %v8582_v32 = vadd.f32 %v3573_v41, %v3513_v52 }
 0x3ae   :  { %v3476_v8 = vpop.f32.mrf.mxu1 }
 0x3af   :  { %9812 = vst [vmem:[#allocation71_spill] sm:$0xff] %v8582_v32  ;;  %3930 = vmatmul.f32.gmra.mxu0 %v9739_v37  ;;  %4041 = vmatmul.f32.gmra.mxu2 %v6877_v50 }
 0x3b1   :  { %3991 = vmatmul.f32.gmra.mxu1 %v9740_v47  ;;  %4089 = vmatmul.f32.gmra.mxu3 %v6784_v13 }
 0x3b2   :  { %v3522_v5 = vpop.f32.mrf.mxu2 }
 0x3b3   :  { %v3523_v25 = vadd.f32 %v3522_v5, %v3465_v48 }
 0x3b4   :  { %v3579_v4 = vpop.f32.mrf.mxu3  ;;  %v3420_v6 = vpop.f32.mrf.mxu0 }
 0x3b5   :  { %v8593_v52 = vadd.f32 %v3579_v4, %v3518_v43  ;;  %v3473_v43 = vadd.f32 %v3472_v33, %v8544_v54  ;;  %v3477_v4 = vadd.f32 %v3476_v8, %v3404_v38 }
 0x3b6   :  { %v3480_v55 = vpop.f32.mrf.mxu1 }
 0x3b7   :  { %9813 = vst [vmem:[#allocation72_spill] sm:$0xff] %v8593_v52  ;;  %3935 = vmatmul.f32.gmra.mxu0 %v9742_v22  ;;  %4045 = vmatmul.f32.gmra.mxu2 %v6903_v0 }
 0x3b9   :  { %3997 = vmatmul.f32.gmra.mxu1 %v9743_v27  ;;  %4093 = vmatmul.f32.gmra.mxu3 %v6877_v50 }
 0x3ba   :  { %v3527_v30 = vpop.f32.mrf.mxu2 }
 0x3bb   :  { %v3528_v40 = vadd.f32 %v3527_v30, %v3469_v21  ;;  %v8620_v21 = vperm.slane %v8129_v20, 3 }
 0x3bc   :  { %v3585_v34 = vpop.f32.mrf.mxu3  ;;  %v8600_v3 = vpop.f32.mrf.mxu0 }
 0x3bd   :  { %9814 = vst [vmem:[#allocation73_spill] sm:$0xff] %v8600_v3  ;;  %v8602_v61 = vadd.f32 %v3585_v34, %v3523_v25  ;;  %vm74_vm5 = vcmp.eq.s32.totalorder %v6788_v15, %v8620_v21  ;;  %vm61_vm6 = vcmp.eq.s32.totalorder %v9730_v58, %v8620_v21  ;;  %vm48_vm7 = vcmp.eq.s32.totalorder %v9732_v17, %v8620_v21 }
 0x3be   :  { %v3484_v28 = vpop.f32.mrf.mxu1  ;;  %v8631_v38 = vsel %vm74_vm5, 1.0, %v9684_v2 }
 0x3bf   :  { %9815 = vst [vmem:[#allocation74_spill] sm:$0xff] %v8602_v61  ;;  %4049 = vmatmul.f32.gmra.mxu2 %v6940_v26  ;;  %4141 = vmatmul.f32.vlgmr.msrb.gmra.mxu0 %v6862_v44  ;;  %v222_v20 = vsel %vm187_vm0, %v8631_v38, 0  ;;  %v3485_v61 = vadd.f32 %v3484_v28, %v3420_v6  ;;  %v6546_v6 = vsel %vm61_vm6, 1.0, %v9684_v2 }
 0x3c0   :  { %6660 = vmatpush.msk.msrb.mxu2 %vm187_vm0, %v8631_v38  ;;  %v8639_v8 = vsub.f32 %v222_v20, %v222_v20 }
 0x3c1   :  { %4003 = vmatmul.f32.gmra.mxu1 %v6853_v39  ;;  %4097 = vmatmul.f32.gmra.mxu3 %v6903_v0 }
 0x3c2   :  { %v3532_v53 = vpop.f32.mrf.mxu2  ;;  %4669 = vmatpush.msrb.mxu0 %v8639_v8  ;;  %6661 = vmatpush.msk.msrb.mxu2 %vm61_vm6, %v9731_v1 }
 0x3c3   :  { %v3533_v35 = vadd.f32 %v3532_v53, %v3473_v43  ;;  %v3481_v53 = vadd.f32 %v3480_v55, %v3412_v60  ;;  %v9825_v55 = vld [vmem:[#allocation21_spill] sm:$0xff] }
 0x3c4   :  { %v3591_v41 = vpop.f32.mrf.mxu3  ;;  %v8609_v48 = vpop.f32.mrf.mxu0  ;;  %6662 = vmatpush.msk.msrb.mxu2 %vm48_vm7, %v9731_v1 }
 0x3c5   :  { %9816 = vst [vmem:[#allocation75_spill] sm:$0xff] %v8609_v48  ;;  %v8611_v5 = vadd.f32 %v3591_v41, %v3528_v40  ;;  %v4605_v41 = vand.u32 4294901760, %v8639_v8 }
 0x3c6   :  { %v8613_v25 = vpop.f32.mrf.mxu1 }
 0x3c7   :  { %9817 = vst [vmem:[#allocation76_spill] sm:$0xff] %v8611_v5  ;;  %4053 = vmatmul.f32.gmra.mxu2 %v6982_v42  ;;  %4149 = vmatmul.f32.gmra.mxu0 %v9750_v49  ;;  %v4606_v20 = vsub.f32 %v8639_v8, %v4605_v41 }
 0x3c8   :  { %9818 = vst [vmem:[#allocation77_spill] sm:$0xff] %v8613_v25 }
 0x3c9   :  { %4101 = vmatmul.f32.gmra.mxu3 %v6940_v26  ;;  %4233 = vmatmul.f32.vlgmr.msrb.gmra.mxu1 %v6780_v11  ;;  %v4607_v60 = vand.u32 4294901760, %v4606_v20 }
 0x3ca   :  { %v3537_v54 = vpop.f32.mrf.mxu2  ;;  %6663 = vmatpush.msk.msrb.mxu1 %vm187_vm0, %v8631_v38 }
 0x3cb   :  { %v3538_v33 = vadd.f32 %v3537_v54, %v3477_v4  ;;  %4608 = vmatpush.msrb.mxu3 %v4607_v60 }
 0x3cc   :  { %v3597_v30 = vpop.f32.mrf.mxu3  ;;  %v8622_v34 = vpop.f32.mrf.mxu0  ;;  %6664 = vmatpush.msk.msrb.mxu1 %vm61_vm6, %v9731_v1 }
 0x3cd   :  { %9819 = vst [vmem:[#allocation78_spill] sm:$0xff] %v8622_v34  ;;  %v8624_v40 = vadd.f32 %v3597_v30, %v3533_v35 }
 0x3ce   :  { %v8628_v43 = vpop.f32.mrf.mxu1  ;;  %6665 = vmatpush.msk.msrb.mxu1 %vm48_vm7, %v9731_v1 }
 0x3cf   :  { %9820 = vst [vmem:[#allocation79_spill] sm:$0xff] %v8624_v40  ;;  %4057 = vmatmul.f32.gmra.mxu2 %v6782_v12  ;;  %4157 = vmatmul.f32.gmra.mxu0 %v6935_v14 }
 0x3d0   :  { %9821 = vst [vmem:[#allocation80_spill] sm:$0xff] %v8628_v43 }
 0x3d1   :  { %4105 = vmatmul.f32.gmra.mxu3 %v6982_v42  ;;  %4237 = vmatmul.f32.gmra.mxu1 %v6784_v13 }
 0x3d2   :  { %v3542_v35 = vpop.f32.mrf.mxu2 }
 0x3d3   :  { %v3543_v4 = vadd.f32 %v3542_v35, %v3481_v53 }
 0x3d4   :  { %v3603_v54 = vpop.f32.mrf.mxu3  ;;  %v8647_v30 = vpop.f32.mrf.mxu0 }
 0x3d5   :  { %9822 = vst [vmem:[#allocation81_spill] sm:$0xff] %v8647_v30  ;;  %v8650_v5 = vadd.f32 %v3603_v54, %v3538_v33 }
 0x3d6   :  { %v8652_v34 = vpop.f32.mrf.mxu1 }
 0x3d7   :  { %9823 = vst [vmem:[#allocation82_spill] sm:$0xff] %v8650_v5  ;;  %4061 = vmatmul.f32.gmra.mxu2 %v6798_v18  ;;  %4165 = vmatmul.f32.gmra.mxu0 %v9825_v55 }
 0x3d8   :  { %9824 = vst [vmem:[#allocation83_spill] sm:$0xff] %v8652_v34 }
 0x3d9   :  { %4109 = vmatmul.f32.gmra.mxu3 %v6782_v12  ;;  %4241 = vmatmul.f32.gmra.mxu1 %v6877_v50 }
 0x3da   :  { %v3547_v53 = vpop.f32.mrf.mxu2 }
 0x3db   :  { %v3548_v35 = vadd.f32 %v3547_v53, %v3485_v61  ;;  %v4610_v61 = vsub.f32 %v6546_v6, %v6546_v6 }
 0x3dc   :  { %v3609_v30 = vpop.f32.mrf.mxu3  ;;  %v8658_v43 = vpop.f32.mrf.mxu0 }
 0x3dd   :  { %9826 = vst [vmem:[#allocation21_spill] sm:$0xff] %v8658_v43  ;;  %v8660_v33 = vadd.f32 %v3609_v30, %v3543_v4  ;;  %4672 = vmatpush.msrb.mxu0 %v4610_v61  ;;  %v4611_v4 = vand.u32 4294901760, %v4610_v61 }
 0x3de   :  { %v8664_v8 = vpop.f32.mrf.mxu1 }
 0x3df   :  { %9827 = vst [vmem:[#allocation84_spill] sm:$0xff] %v8660_v33  ;;  %4173 = vmatmul.f32.gmra.mxu0 %v9718_v24  ;;  %4289 = vmatmul.f32.vlgmr.msra.gmra.mxu2 %v9719_v63  ;;  %v4612_v60 = vsub.f32 %v4610_v61, %v4611_v4 }
 0x3e0   :  { %9828 = vst [vmem:[#allocation85_spill] sm:$0xff] %v8664_v8  ;;  %4801 = vmatpush.msra.mxu2 %v4605_v41 }
 0x3e1   :  { %4113 = vmatmul.f32.gmra.mxu3 %v6798_v18  ;;  %4245 = vmatmul.f32.gmra.mxu1 %v6903_v0  ;;  %v4613_v6 = vand.u32 4294901760, %v4612_v60 }
 0x3e2   :  { %v3753_v28 = vpop.f32.mrf.mxu2  ;;  %4805 = vmatpush.msra.mxu2 %v4611_v4 }
 0x3e3   :  { %4614 = vmatpush.msrb.mxu3 %v4613_v6 }
 0x3e4   :  { %v3615_v54 = vpop.f32.mrf.mxu3  ;;  %v8682_v30 = vpop.f32.mrf.mxu0 }
 0x3e5   :  { %9829 = vst [vmem:[#allocation86_spill] sm:$0xff] %v8682_v30  ;;  %v8684_v20 = vadd.f32 %v3615_v54, %v3548_v35 }
 0x3e6   :  { %v8686_v53 = vpop.f32.mrf.mxu1 }
 0x3e7   :  { %9830 = vst [vmem:[#allocation87_spill] sm:$0xff] %v8684_v20  ;;  %4181 = vmatmul.f32.gmra.mxu0 %v9691_v10  ;;  %4294 = vmatmul.f32.gmra.mxu2 %v9723_v31 }
 0x3e8   :  { %9831 = vst [vmem:[#allocation88_spill] sm:$0xff] %v8686_v53 }
 0x3e9   :  { %4249 = vmatmul.f32.gmra.mxu1 %v6940_v26  ;;  %4350 = vmatmul.f32.vlgmr.msra.gmra.mxu3 %v9724_v7 }
 0x3ea   :  { %v3761_v8 = vpop.f32.mrf.mxu2 }
 0x3ec   :  { %v3845_v34 = vpop.f32.mrf.mxu3  ;;  %v8692_v33 = vpop.f32.mrf.mxu0 }
 0x3ed   :  { %9832 = vst [vmem:[#allocation89_spill] sm:$0xff] %v8692_v33  ;;  %v8694_v48 = vadd.f32 %v3845_v34, %v3753_v28  ;;  %v6533_v34 = vsel %vm48_vm7, 1.0, %v9684_v2 }
 0x3ee   :  { %v8696_v35 = vpop.f32.mrf.mxu1  ;;  %v4616_v28 = vsub.f32 %v6533_v34, %v6533_v34 }
 0x3ef   :  { %9833 = vst [vmem:[#allocation90_spill] sm:$0xff] %v8696_v35  ;;  %4189 = vmatmul.f32.gmra.mxu0 %v9725_v59  ;;  %4299 = vmatmul.f32.gmra.mxu2 %v9726_v36 }
 0x3f0   :  { %v4617_v20 = vand.u32 4294901760, %v4616_v28  ;;  %4675 = vmatpush.msrb.mxu0 %v4616_v28 }
 0x3f1   :  { %4253 = vmatmul.f32.gmra.mxu1 %v6982_v42  ;;  %4356 = vmatmul.f32.gmra.mxu3 %v9727_v46 }
 0x3f2   :  { %v3769_v61 = vpop.f32.mrf.mxu2  ;;  %v4618_v35 = vsub.f32 %v4616_v28, %v4617_v20  ;;  %4809 = vmatpush.msra.mxu2 %v4617_v20 }
 0x3f4   :  { %v3849_v54 = vpop.f32.mrf.mxu3  ;;  %v8716_v60 = vpop.f32.mrf.mxu0  ;;  %v4619_v41 = vand.u32 4294901760, %v4618_v35 }
 0x3f5   :  { %9834 = vst [vmem:[#allocation91_spill] sm:$0xff] %v8716_v60  ;;  %v8718_v6 = vadd.f32 %v3849_v54, %v3761_v8 }
 0x3f6   :  { %v8720_v33 = vpop.f32.mrf.mxu1  ;;  %4620 = vmatpush.msrb.mxu3 %v4619_v41 }
 0x3f7   :  { %9835 = vst [vmem:[#allocation92_spill] sm:$0xff] %v8720_v33  ;;  %4197 = vmatmul.f32.gmra.mxu0 %v6898_v62  ;;  %4304 = vmatmul.f32.gmra.mxu2 %v9728_v9 }
 0x3f8   :  { %6666 = vmatpush.msk.msra.mxu3 %vm187_vm0, %v8631_v38 }
 0x3f9   :  { %4257 = vmatmul.f32.gmra.mxu1 %v6782_v12  ;;  %4362 = vmatmul.f32.gmra.mxu3 %v9729_v51 }
 0x3fa   :  { %v3777_v34 = vpop.f32.mrf.mxu2  ;;  %6667 = vmatpush.msk.msra.mxu3 %vm61_vm6, %v9731_v1 }
 0x3fc   :  { %v3853_v8 = vpop.f32.mrf.mxu3  ;;  %v3901_v54 = vpop.f32.mrf.mxu0  ;;  %6668 = vmatpush.msk.msra.mxu3 %vm48_vm7, %v9731_v1 }
 0x3fd   :  { %v8728_v4 = vadd.f32 %v3853_v8, %v3769_v61  ;;  %v3902_v32 = vadd.f32 %v3901_v54, %v8694_v48 }
 0x3fe   :  { %v8730_v60 = vpop.f32.mrf.mxu1 }
 0x3ff   :  { %9836 = vst [vmem:[#allocation93_spill] sm:$0xff] %v8730_v60  ;;  %4309 = vmatmul.f32.gmra.mxu2 %v9733_v57  ;;  %4422 = vmatmul.f32.vlgmr.msra.gmra.mxu0 %v6780_v11 }
 0x401   :  { %4261 = vmatmul.f32.gmra.mxu1 %v6798_v18  ;;  %4368 = vmatmul.f32.gmra.mxu3 %v9734_v19 }
 0x402   :  { %v3785_v38 = vpop.f32.mrf.mxu2 }
 0x404   :  { %v3857_v20 = vpop.f32.mrf.mxu3  ;;  %v3906_v35 = vpop.f32.mrf.mxu0 }
 0x405   :  { %v8744_v61 = vadd.f32 %v3857_v20, %v3777_v34 }
 0x406   :  { %v3962_v28 = vpop.f32.mrf.mxu1 }
 0x407   :  { %4314 = vmatmul.f32.gmra.mxu2 %v9736_v16  ;;  %4426 = vmatmul.f32.gmra.mxu0 %v6784_v13 }
 0x409   :  { %4374 = vmatmul.f32.gmra.mxu3 %v9737_v45  ;;  %4474 = vmatmul.f32.vlgmr.msra.gmra.mxu1 %v6780_v11 }
 0x40a   :  { %v3793_v21 = vpop.f32.mrf.mxu2 }
 0x40c   :  { %v3861_v41 = vpop.f32.mrf.mxu3  ;;  %v3911_v8 = vpop.f32.mrf.mxu0 }
 0x40d   :  { %v8750_v60 = vadd.f32 %v3861_v41, %v3785_v38 }
 0x40e   :  { %v3968_v33 = vpop.f32.mrf.mxu1 }
 0x40f   :  { %4319 = vmatmul.f32.gmra.mxu2 %v9739_v37  ;;  %4430 = vmatmul.f32.gmra.mxu0 %v6877_v50 }
 0x411   :  { %4380 = vmatmul.f32.gmra.mxu3 %v9740_v47  ;;  %4478 = vmatmul.f32.gmra.mxu1 %v6784_v13 }
 0x412   :  { %v3801_v34 = vpop.f32.mrf.mxu2 }
 0x414   :  { %v3865_v20 = vpop.f32.mrf.mxu3  ;;  %v3916_v52 = vpop.f32.mrf.mxu0 }
 0x415   :  { %v8756_v30 = vadd.f32 %v3865_v20, %v3793_v21  ;;  %v3963_v21 = vadd.f32 %v3962_v28, %v3902_v32 }
 0x416   :  { %v3974_v5 = vpop.f32.mrf.mxu1 }
 0x417   :  { %4324 = vmatmul.f32.gmra.mxu2 %v9742_v22  ;;  %4434 = vmatmul.f32.gmra.mxu0 %v6903_v0 }
 0x419   :  { %4386 = vmatmul.f32.gmra.mxu3 %v9743_v27  ;;  %4482 = vmatmul.f32.gmra.mxu1 %v6877_v50 }
 0x41a   :  { %v3809_v38 = vpop.f32.mrf.mxu2 }
 0x41c   :  { %v3869_v41 = vpop.f32.mrf.mxu3  ;;  %v8762_v25 = vpop.f32.mrf.mxu0 }
 0x41d   :  { %v8764_v53 = vadd.f32 %v3869_v41, %v3801_v34  ;;  %v3907_v41 = vadd.f32 %v3906_v35, %v8718_v6 }
 0x41e   :  { %v3980_v3 = vpop.f32.mrf.mxu1 }
 0x41f   :  { %4438 = vmatmul.f32.gmra.mxu0 %v6940_v26  ;;  %4530 = vmatmul.f32.vlgmr.msrb.gmra.mxu2 %v6862_v44  ;;  %v3969_v48 = vadd.f32 %v3968_v33, %v3907_v41  ;;  %v6714_v33 = vld [vmem:[%s9567_s0 + $0x8] sm:$0x1f] }
 0x420   :  { %v8792_v35 = vperm.slane %v6714_v33, 4 }
 0x421   :  { %4392 = vmatmul.f32.gmra.mxu3 %v6853_v39  ;;  %4486 = vmatmul.f32.gmra.mxu1 %v6903_v0 }
 0x422   :  { %v4034_v20 = vpop.f32.mrf.mxu2  ;;  %vm75_vm8 = vcmp.eq.s32.totalorder %v6788_v15, %v8792_v35  ;;  %v3917_v15 = vadd.f32 %v3916_v52, %v8744_v61  ;;  %vm62_vm9 = vcmp.eq.s32.totalorder %v9730_v58, %v8792_v35  ;;  %vm49_vm10 = vcmp.eq.s32.totalorder %v9732_v17, %v8792_v35 }
 0x423   :  { %v4035_v43 = vadd.f32 %v4034_v20, %v3963_v21 }
 0x424   :  { %v3873_v40 = vpop.f32.mrf.mxu3  ;;  %v8771_v23 = vpop.f32.mrf.mxu0 }
 0x425   :  { %v8773_v56 = vadd.f32 %v3873_v40, %v3809_v38  ;;  %v3912_v38 = vadd.f32 %v3911_v8, %v8728_v4 }
 0x426   :  { %v3986_v34 = vpop.f32.mrf.mxu1 }
 0x427   :  { %4442 = vmatmul.f32.gmra.mxu0 %v6982_v42  ;;  %4538 = vmatmul.f32.gmra.mxu2 %v9750_v49  ;;  %v3975_v6 = vadd.f32 %v3974_v5, %v3912_v38  ;;  %v8799_v5 = vsel %vm75_vm8, 1.0, %v9684_v2 }
 0x428   :  { %6669 = vmatpush.msk.msra.mxu0 %vm187_vm0, %v8799_v5 }
 0x429   :  { %4490 = vmatmul.f32.gmra.mxu1 %v6940_v26  ;;  %4622 = vmatmul.f32.vlgmr.msrb.gmra.mxu3 %v6780_v11 }
 0x42a   :  { %v4038_v32 = vpop.f32.mrf.mxu2  ;;  %6672 = vmatpush.msk.msrb.mxu3 %vm187_vm0, %v8799_v5  ;;  %6670 = vmatpush.msk.msra.mxu0 %vm62_vm9, %v9731_v1 }
 0x42b   :  { %v4039_v54 = vadd.f32 %v4038_v32, %v3969_v48  ;;  %v225_v32 = vsel %vm187_vm0, %v8799_v5, 0 }
 0x42c   :  { %v4086_v28 = vpop.f32.mrf.mxu3  ;;  %v8780_v21 = vpop.f32.mrf.mxu0  ;;  %v8809_v38 = vsub.f32 %v225_v32, %v225_v32  ;;  %6673 = vmatpush.msk.msrb.mxu3 %vm62_vm9, %v9731_v1  ;;  %6671 = vmatpush.msk.msra.mxu0 %vm49_vm10, %v9731_v1 }
 0x42d   :  { %v8782_v20 = vadd.f32 %v4086_v28, %v4035_v43 }
 0x42e   :  { %v3992_v40 = vpop.f32.mrf.mxu1  ;;  %5058 = vmatpush.msrb.mxu2 %v8809_v38  ;;  %6674 = vmatpush.msk.msrb.mxu3 %vm49_vm10, %v9731_v1 }
 0x42f   :  { %9837 = vst [vmem:[#allocation94_spill] sm:$0xff] %v8782_v20  ;;  %4446 = vmatmul.f32.gmra.mxu0 %v6782_v12  ;;  %4546 = vmatmul.f32.gmra.mxu2 %v6935_v14 }
 0x431   :  { %4494 = vmatmul.f32.gmra.mxu1 %v6982_v42  ;;  %4626 = vmatmul.f32.gmra.mxu3 %v6784_v13 }
 0x432   :  { %v4042_v43 = vpop.f32.mrf.mxu2 }
 0x433   :  { %v4043_v41 = vadd.f32 %v4042_v43, %v3975_v6  ;;  %v3981_v6 = vadd.f32 %v3980_v3, %v3917_v15  ;;  %v3922_v3 = vadd.f32 %v8762_v25, %v8750_v60  ;;  %v3927_v25 = vadd.f32 %v8771_v23, %v8756_v30 }
 0x434   :  { %v4090_v4 = vpop.f32.mrf.mxu3  ;;  %v8796_v8 = vpop.f32.mrf.mxu0 }
 0x435   :  { %v8801_v48 = vadd.f32 %v4090_v4, %v4039_v54  ;;  %v9646_v54 = vand.u32 4294901760, %v8809_v38  ;;  %v3987_v15 = vadd.f32 %v3986_v34, %v3922_v3  ;;  %v3993_v60 = vadd.f32 %v3992_v40, %v3927_v25 }
 0x436   :  { %v3998_v28 = vpop.f32.mrf.mxu1 }
 0x437   :  { %9838 = vst [vmem:[#allocation95_spill] sm:$0xff] %v8801_v48  ;;  %4450 = vmatmul.f32.gmra.mxu0 %v6798_v18  ;;  %4554 = vmatmul.f32.gmra.mxu2 %v9825_v55  ;;  %v4995_v43 = vsub.f32 %v8809_v38, %v9646_v54 }
 0x439   :  { %4498 = vmatmul.f32.gmra.mxu1 %v6782_v12  ;;  %4630 = vmatmul.f32.gmra.mxu3 %v6877_v50  ;;  %v4996_v32 = vand.u32 4294901760, %v4995_v43 }
 0x43a   :  { %v4046_v33 = vpop.f32.mrf.mxu2 }
 0x43b   :  { %v4047_v4 = vadd.f32 %v4046_v33, %v3981_v6  ;;  %4997 = vmatpush.msra.mxu1 %v4996_v32 }
 0x43c   :  { %v4094_v52 = vpop.f32.mrf.mxu3  ;;  %v8821_v61 = vpop.f32.mrf.mxu0 }
 0x43d   :  { %v8823_v48 = vadd.f32 %v4094_v52, %v4043_v41 }
 0x43e   :  { %v4004_v20 = vpop.f32.mrf.mxu1 }
 0x43f   :  { %9839 = vst [vmem:[#allocation96_spill] sm:$0xff] %v8823_v48  ;;  %4562 = vmatmul.f32.gmra.mxu2 %v9718_v24  ;;  %4678 = vmatmul.f32.vlgmr.msrb.gmra.mxu0 %v9719_v63 }
 0x441   :  { %4502 = vmatmul.f32.gmra.mxu1 %v6798_v18  ;;  %4634 = vmatmul.f32.gmra.mxu3 %v6903_v0 }
 0x442   :  { %v4050_v6 = vpop.f32.mrf.mxu2 }
 0x443   :  { %v4051_v33 = vadd.f32 %v4050_v6, %v3987_v15  ;;  %v3932_v6 = vadd.f32 %v8780_v21, %v8764_v53  ;;  %v3937_v21 = vadd.f32 %v8796_v8, %v8773_v56 }
 0x444   :  { %v4098_v54 = vpop.f32.mrf.mxu3  ;;  %v8831_v43 = vpop.f32.mrf.mxu0 }
 0x445   :  { %v8833_v41 = vadd.f32 %v4098_v54, %v4047_v4  ;;  %v6547_v54 = vsel %vm62_vm9, 1.0, %v9684_v2 }
 0x446   :  { %v4234_v52 = vpop.f32.mrf.mxu1  ;;  %v4999_v30 = vsub.f32 %v6547_v54, %v6547_v54 }
 0x447   :  { %9840 = vst [vmem:[#allocation97_spill] sm:$0xff] %v8833_v41  ;;  %4570 = vmatmul.f32.gmra.mxu2 %v9691_v10  ;;  %4683 = vmatmul.f32.gmra.mxu0 %v9723_v31  ;;  %v3999_v41 = vadd.f32 %v3998_v28, %v3932_v6  ;;  %v4005_v28 = vadd.f32 %v4004_v20, %v3937_v21  ;;  %v6534_v20 = vsel %vm49_vm10, 1.0, %v9684_v2 }
 0x448   :  { %v5000_v3 = vand.u32 4294901760, %v4999_v30  ;;  %5061 = vmatpush.msrb.mxu2 %v4999_v30  ;;  %v5005_v8 = vsub.f32 %v6534_v20, %v6534_v20 }
 0x449   :  { %4638 = vmatmul.f32.gmra.mxu3 %v6940_v26  ;;  %4739 = vmatmul.f32.vlgmr.msrb.gmra.mxu1 %v9724_v7 }
 0x44a   :  { %v4054_v34 = vpop.f32.mrf.mxu2  ;;  %v5001_v25 = vsub.f32 %v4999_v30, %v5000_v3  ;;  %5064 = vmatpush.msrb.mxu2 %v5005_v8 }
 0x44b   :  { %v4055_v23 = vadd.f32 %v4054_v34, %v3993_v60 }
 0x44c   :  { %v4102_v40 = vpop.f32.mrf.mxu3  ;;  %v8855_v4 = vpop.f32.mrf.mxu0  ;;  %v5002_v60 = vand.u32 4294901760, %v5001_v25 }
 0x44d   :  { %v8857_v32 = vadd.f32 %v4102_v40, %v4051_v33 }
 0x44e   :  { %v4238_v15 = vpop.f32.mrf.mxu1  ;;  %5003 = vmatpush.msra.mxu1 %v5002_v60  ;;  %v9844_v60 = vand.u32 4294901760, %v8809_v38 }
 0x44f   :  { %9841 = vst [vmem:[#allocation98_spill] sm:$0xff] %v8857_v32  ;;  %4578 = vmatmul.f32.gmra.mxu2 %v9725_v59  ;;  %4688 = vmatmul.f32.gmra.mxu0 %v9726_v36 }
 0x450   :  { %5190 = vmatpush.msrb.mxu0 %v9844_v60 }
 0x451   :  { %4642 = vmatmul.f32.gmra.mxu3 %v6982_v42  ;;  %4745 = vmatmul.f32.gmra.mxu1 %v9727_v46 }
 0x452   :  { %v4058_v34 = vpop.f32.mrf.mxu2  ;;  %5194 = vmatpush.msrb.mxu0 %v5000_v3 }
 0x453   :  { %v4059_v33 = vadd.f32 %v4058_v34, %v3999_v41  ;;  %v4235_v34 = vadd.f32 %v4234_v52, %v8821_v61  ;;  %v4239_v61 = vadd.f32 %v4238_v15, %v8831_v43 }
 0x454   :  { %v4106_v54 = vpop.f32.mrf.mxu3  ;;  %v8865_v40 = vpop.f32.mrf.mxu0 }
 0x455   :  { %v8867_v48 = vadd.f32 %v4106_v54, %v4055_v23 }
 0x456   :  { %v4242_v53 = vpop.f32.mrf.mxu1 }
 0x457   :  { %9842 = vst [vmem:[#allocation99_spill] sm:$0xff] %v8867_v48  ;;  %4586 = vmatmul.f32.gmra.mxu2 %v6898_v62  ;;  %4693 = vmatmul.f32.gmra.mxu0 %v9728_v9 }
 0x459   :  { %4646 = vmatmul.f32.gmra.mxu3 %v6782_v12  ;;  %4751 = vmatmul.f32.gmra.mxu1 %v9729_v51 }
 0x45a   :  { %v4062_v41 = vpop.f32.mrf.mxu2 }
 0x45b   :  { %v4063_v30 = vadd.f32 %v4062_v41, %v4005_v28 }
 0x45c   :  { %v4110_v6 = vpop.f32.mrf.mxu3  ;;  %v8875_v25 = vpop.f32.mrf.mxu0 }
 0x45d   :  { %v8877_v23 = vadd.f32 %v4110_v6, %v4059_v33  ;;  %v5006_v33 = vand.u32 4294901760, %v5005_v8 }
 0x45e   :  { %v4246_v56 = vpop.f32.mrf.mxu1 }
 0x45f   :  { %9843 = vst [vmem:[#allocation100_spill] sm:$0xff] %v8877_v23  ;;  %4698 = vmatmul.f32.gmra.mxu0 %v9733_v57  ;;  %4811 = vmatmul.f32.vlgmr.msra.gmra.mxu2 %v6780_v11  ;;  %v5007_v28 = vsub.f32 %v5005_v8, %v5006_v33 }
 0x460   :  { %5198 = vmatpush.msrb.mxu0 %v5006_v33 }
 0x461   :  { %4650 = vmatmul.f32.gmra.mxu3 %v6798_v18  ;;  %4757 = vmatmul.f32.gmra.mxu1 %v9734_v19  ;;  %v5008_v20 = vand.u32 4294901760, %v5007_v28 }
 0x462   :  { %v4290_v54 = vpop.f32.mrf.mxu2 }
 0x463   :  { %v4291_v21 = vadd.f32 %v4290_v54, %v4235_v34  ;;  %5009 = vmatpush.msra.mxu1 %v5008_v20 }
 0x464   :  { %v4114_v41 = vpop.f32.mrf.mxu3  ;;  %v4182_v6 = vpop.f32.mrf.mxu0 }
 0x465   :  { %v8900_v23 = vadd.f32 %v4114_v41, %v4063_v30  ;;  %6675 = vmatpush.msk.msrb.mxu1 %vm187_vm0, %v8799_v5  ;;  %v4243_v5 = vadd.f32 %v4242_v53, %v8855_v4  ;;  %vm5314_vm0 = vcmask 1044480  }
 0x466   :  { %v4250_v38 = vpop.f32.mrf.mxu1 }
 0x467   :  { %9845 = vst [vmem:[#allocation101_spill] sm:$0xff] %v8900_v23  ;;  %4703 = vmatmul.f32.gmra.mxu0 %v9736_v16  ;;  %4815 = vmatmul.f32.gmra.mxu2 %v6784_v13 }
 0x468   :  { %6676 = vmatpush.msk.msrb.mxu1 %vm62_vm9, %v9731_v1 }
 0x469   :  { %4763 = vmatmul.f32.gmra.mxu1 %v9737_v45  ;;  %4863 = vmatmul.f32.vlgmr.msra.gmra.mxu3 %v6780_v11 }
 0x46a   :  { %v4295_v52 = vpop.f32.mrf.mxu2  ;;  %6677 = vmatpush.msk.msrb.mxu1 %vm49_vm10, %v9731_v1  ;;  %v4247_v1 = vadd.f32 %v4246_v56, %v8865_v40 }
 0x46b   :  { %v4296_v3 = vadd.f32 %v4295_v52, %v4239_v61  ;;  %v4251_v61 = vadd.f32 %v4250_v38, %v8875_v25 }
 0x46c   :  { %v4351_v30 = vpop.f32.mrf.mxu3  ;;  %v4190_v8 = vpop.f32.mrf.mxu0 }
 0x46d   :  { %v8913_v60 = vadd.f32 %v4351_v30, %v4291_v21 }
 0x46e   :  { %v4254_v34 = vpop.f32.mrf.mxu1 }
 0x46f   :  { %4708 = vmatmul.f32.gmra.mxu0 %v9739_v37  ;;  %4819 = vmatmul.f32.gmra.mxu2 %v6877_v50 }
 0x471   :  { %4769 = vmatmul.f32.gmra.mxu1 %v9740_v47  ;;  %4867 = vmatmul.f32.gmra.mxu3 %v6784_v13 }
 0x472   :  { %v4300_v58 = vpop.f32.mrf.mxu2 }
 0x473   :  { %v4301_v43 = vadd.f32 %v4300_v58, %v4243_v5  ;;  %v8953_v58 = vld [vmem:[%s9568_s1] sm:$0x7] }
 0x474   :  { %v4357_v15 = vpop.f32.mrf.mxu3  ;;  %v4198_v33 = vpop.f32.mrf.mxu0 }
 0x475   :  { %v8924_v54 = vadd.f32 %v4357_v15, %v4296_v3 }
 0x476   :  { %v4258_v21 = vpop.f32.mrf.mxu1 }
 0x477   :  { %4713 = vmatmul.f32.gmra.mxu0 %v9742_v22  ;;  %4823 = vmatmul.f32.gmra.mxu2 %v6903_v0 }
 0x479   :  { %4775 = vmatmul.f32.gmra.mxu1 %v9743_v27  ;;  %4871 = vmatmul.f32.gmra.mxu3 %v6877_v50 }
 0x47a   :  { %v4305_v35 = vpop.f32.mrf.mxu2 }
 0x47b   :  { %v4306_v4 = vadd.f32 %v4305_v35, %v4247_v1  ;;  %v5285_v1 = vperm.slane %v8953_v58, 0 }
 0x47c   :  { %v4363_v53 = vpop.f32.mrf.mxu3  ;;  %v8931_v28 = vpop.f32.mrf.mxu0 }
 0x47d   :  { %v8933_v41 = vadd.f32 %v4363_v53, %v4301_v43  ;;  %vm5288_vm11 = vcmp.eq.s32.totalorder %v9732_v17, %v5285_v1 }
 0x47e   :  { %v4262_v20 = vpop.f32.mrf.mxu1 }
 0x47f   :  { %4827 = vmatmul.f32.gmra.mxu2 %v6940_v26  ;;  %4919 = vmatmul.f32.vlgmr.msra.gmra.mxu0 %v6862_v44  ;;  %v4255_v44 = vadd.f32 %v4254_v34, %v4182_v6  ;;  %v6678_v6 = vsel %vm5288_vm11, 1.0, %v9684_v2 }
 0x480   :  { %v5316_v34 = vsel %vm5314_vm0, %v6678_v6, 0  ;;  %6681 = vmatpush.msk.msra.mxu2 %vm5314_vm0, %v6678_v6 }
 0x481   :  { %4781 = vmatmul.f32.gmra.mxu1 %v6853_v39  ;;  %4875 = vmatmul.f32.gmra.mxu3 %v6903_v0  ;;  %v5390_v53 = vsub.f32 %v5316_v34, %v5316_v34 }
 0x482   :  { %v4310_v40 = vpop.f32.mrf.mxu2 }
 0x483   :  { %v4311_v56 = vadd.f32 %v4310_v40, %v4251_v61 }
 0x484   :  { %v4369_v52 = vpop.f32.mrf.mxu3  ;;  %v8940_v3 = vpop.f32.mrf.mxu0 }
 0x485   :  { %v8942_v30 = vadd.f32 %v4369_v52, %v4306_v4  ;;  %v4259_v4 = vadd.f32 %v4258_v21, %v4190_v8  ;;  %v4263_v21 = vadd.f32 %v4262_v20, %v4198_v33 }
 0x486   :  { %v8944_v5 = vpop.f32.mrf.mxu1 }
 0x487   :  { %4831 = vmatmul.f32.gmra.mxu2 %v6982_v42  ;;  %4927 = vmatmul.f32.gmra.mxu0 %v9750_v49 }
 0x489   :  { %4879 = vmatmul.f32.gmra.mxu3 %v6940_v26  ;;  %5011 = vmatmul.f32.vlgmr.msra.gmra.mxu1 %v6780_v11 }
 0x48a   :  { %v4315_v25 = vpop.f32.mrf.mxu2  ;;  %6683 = vmatpush.msk.msra.mxu1 %vm5314_vm0, %v6678_v6 }
 0x48b   :  { %v4316_v38 = vadd.f32 %v4315_v25, %v4255_v44 }
 0x48c   :  { %v4375_v43 = vpop.f32.mrf.mxu3  ;;  %v8955_v15 = vpop.f32.mrf.mxu0 }
 0x48d   :  { %v4376_v35 = vadd.f32 %v4375_v43, %v4311_v56  ;;  %v5391_v56 = vand.u32 4294901760, %v5390_v53 }
 0x48e   :  { %v8958_v49 = vpop.f32.mrf.mxu1 }
 0x48f   :  { %4835 = vmatmul.f32.gmra.mxu2 %v6782_v12  ;;  %4935 = vmatmul.f32.gmra.mxu0 %v6935_v14  ;;  %v5392_v25 = vsub.f32 %v5390_v53, %v5391_v56 }
 0x490   :  { %5511 = vmatpush.msra.mxu0 %v5391_v56 }
 0x491   :  { %4883 = vmatmul.f32.gmra.mxu3 %v6982_v42  ;;  %5015 = vmatmul.f32.gmra.mxu1 %v6784_v13  ;;  %v5393_v8 = vand.u32 4294901760, %v5392_v25 }
 0x492   :  { %v4320_v61 = vpop.f32.mrf.mxu2 }
 0x493   :  { %v4321_v40 = vadd.f32 %v4320_v61, %v4259_v4  ;;  %5394 = vmatpush.msra.mxu3 %v5393_v8 }
 0x494   :  { %v4381_v52 = vpop.f32.mrf.mxu3  ;;  %v8969_v44 = vpop.f32.mrf.mxu0 }
 0x495   :  { %v4382_v14 = vadd.f32 %v4381_v52, %v4316_v38 }
 0x496   :  { %v4483_v43 = vpop.f32.mrf.mxu1 }
 0x497   :  { %4839 = vmatmul.f32.gmra.mxu2 %v6798_v18  ;;  %4943 = vmatmul.f32.gmra.mxu0 %v9825_v55 }
 0x499   :  { %4887 = vmatmul.f32.gmra.mxu3 %v6782_v12  ;;  %5019 = vmatmul.f32.gmra.mxu1 %v6877_v50 }
 0x49a   :  { %v4325_v1 = vpop.f32.mrf.mxu2 }
 0x49b   :  { %v4326_v34 = vadd.f32 %v4325_v1, %v4263_v21 }
 0x49c   :  { %v4387_v4 = vpop.f32.mrf.mxu3  ;;  %v4439_v61 = vpop.f32.mrf.mxu0 }
 0x49d   :  { %v4388_v23 = vadd.f32 %v4387_v4, %v4321_v40  ;;  %v4440_v56 = vadd.f32 %v4439_v61, %v4376_v35  ;;  %v4424_v40 = vadd.f32 %v8931_v28, %v8913_v60 }
 0x49e   :  { %v8975_v38 = vpop.f32.mrf.mxu1 }
 0x49f   :  { %4951 = vmatmul.f32.gmra.mxu0 %v9718_v24  ;;  %5067 = vmatmul.f32.vlgmr.msrb.gmra.mxu2 %v9719_v63  ;;  %v4476_v24 = vadd.f32 %v8944_v5, %v4424_v40  ;;  %v4428_v5 = vadd.f32 %v8940_v3, %v8924_v54 }
 0x4a0   :  { %5429 = vmatpush.msrb.mxu2 %v5390_v53 }
 0x4a1   :  { %4891 = vmatmul.f32.gmra.mxu3 %v6798_v18  ;;  %5023 = vmatmul.f32.gmra.mxu1 %v6903_v0 }
 0x4a2   :  { %v4531_v55 = vpop.f32.mrf.mxu2 }
 0x4a4   :  { %v4393_v33 = vpop.f32.mrf.mxu3  ;;  %v4443_v20 = vpop.f32.mrf.mxu0 }
 0x4a5   :  { %v4394_v52 = vadd.f32 %v4393_v33, %v4326_v34  ;;  %v4444_v1 = vadd.f32 %v4443_v20, %v4382_v14 }
 0x4a6   :  { %v4491_v25 = vpop.f32.mrf.mxu1 }
 0x4a7   :  { %v4492_v8 = vadd.f32 %v4491_v25, %v4440_v56  ;;  %4959 = vmatmul.f32.gmra.mxu0 %v9691_v10  ;;  %5072 = vmatmul.f32.gmra.mxu2 %v9723_v31 }
 0x4a9   :  { %v6316_v63 = vand.u32 2147483647, %v4492_v8  ;;  %5027 = vmatmul.f32.gmra.mxu1 %v6940_v26  ;;  %5128 = vmatmul.f32.vlgmr.msrb.gmra.mxu3 %v9724_v7  ;;  %v4480_v7 = vadd.f32 %v8958_v49, %v4428_v5 }
 0x4aa   :  { %v4539_v53 = vpop.f32.mrf.mxu2  ;;  %6682 = vmatpush.msk.msrb.mxu3 %vm5314_vm0, %v6678_v6 }
 0x4ab   :  { %v8989_v35 = vsub.f32 %v4476_v24, %v6316_v63  ;;  %v8991_v21 = vadd.f32 %v6316_v63, %v4476_v24 }
 0x4ac   :  { %v4623_v60 = vpop.f32.mrf.mxu3  ;;  %v4447_v28 = vpop.f32.mrf.mxu0 }
 0x4ad   :  { %v8993_v10 = vadd.f32 %v4623_v60, %v4531_v55  ;;  %v4448_v54 = vadd.f32 %v4447_v28, %v4388_v23 }
 0x4ae   :  { %v4495_v31 = vpop.f32.mrf.mxu1 }
 0x4af   :  { %v4496_v34 = vadd.f32 %v4495_v31, %v4444_v1  ;;  %4967 = vmatmul.f32.gmra.mxu0 %v9725_v59  ;;  %5077 = vmatmul.f32.gmra.mxu2 %v9726_v36  ;;  %v4432_v59 = vadd.f32 %v8955_v15, %v8933_v41 }
 0x4b1   :  { %v6317_v6 = vand.u32 2147483647, %v4496_v34  ;;  %5031 = vmatmul.f32.gmra.mxu1 %v6982_v42  ;;  %5134 = vmatmul.f32.gmra.mxu3 %v9727_v46  ;;  %v4484_v49 = vadd.f32 %v4483_v43, %v4432_v59 }
 0x4b2   :  { %v4547_v4 = vpop.f32.mrf.mxu2 }
 0x4b3   :  { %v9002_v14 = vsub.f32 %v4480_v7, %v6317_v6  ;;  %v9004_v61 = vadd.f32 %v6317_v6, %v4480_v7 }
 0x4b4   :  { %v4627_v55 = vpop.f32.mrf.mxu3  ;;  %v4451_v33 = vpop.f32.mrf.mxu0 }
 0x4b5   :  { %v4628_v3 = vadd.f32 %v4627_v55, %v4539_v53  ;;  %v4452_v41 = vadd.f32 %v4451_v33, %v4394_v52 }
 0x4b6   :  { %v4499_v20 = vpop.f32.mrf.mxu1 }
 0x4b7   :  { %v4500_v36 = vadd.f32 %v4499_v20, %v4448_v54  ;;  %4975 = vmatmul.f32.gmra.mxu0 %v6898_v62  ;;  %5082 = vmatmul.f32.gmra.mxu2 %v9728_v9  ;;  %v4436_v62 = vadd.f32 %v8969_v44, %v8942_v30 }
 0x4b9   :  { %v6318_v46 = vand.u32 2147483647, %v4500_v36  ;;  %5035 = vmatmul.f32.gmra.mxu1 %v6782_v12  ;;  %5140 = vmatmul.f32.gmra.mxu3 %v9729_v51  ;;  %v4488_v51 = vadd.f32 %v8975_v38, %v4436_v62  ;;  %v5299_v36 = vld [vmem:[%s9570_s3 + $0x10] sm:$0xff] }
 0x4ba   :  { %v4555_v56 = vpop.f32.mrf.mxu2 }
 0x4bb   :  { %v9012_v25 = vsub.f32 %v4484_v49, %v6318_v46  ;;  %v9014_v23 = vadd.f32 %v6318_v46, %v4484_v49 }
 0x4bc   :  { %v4631_v40 = vpop.f32.mrf.mxu3  ;;  %v9016_v8 = vpop.f32.mrf.mxu0 }
 0x4bd   :  { %v4632_v15 = vadd.f32 %v4631_v40, %v4547_v4 }
 0x4be   :  { %v4503_v24 = vpop.f32.mrf.mxu1 }
 0x4bf   :  { %v4504_v9 = vadd.f32 %v4503_v24, %v4452_v41  ;;  %5087 = vmatmul.f32.gmra.mxu2 %v9733_v57  ;;  %5200 = vmatmul.f32.vlgmr.msrb.gmra.mxu0 %v6780_v11  ;;  %v5297_v57 = vld [vmem:[%s9570_s3] sm:$0xff] }
 0x4c1   :  { %v6319_v43 = vand.u32 2147483647, %v4504_v9  ;;  %5039 = vmatmul.f32.gmra.mxu1 %v6798_v18  ;;  %5146 = vmatmul.f32.gmra.mxu3 %v9734_v19  ;;  %v5303_v19 = vsel %vm5301_vm12, %v5297_v57, 0  ;;  %v5300_v9 = vld [vmem:[%s9570_s3 + $0x18] sm:$0xff] }
 0x4c2   :  { %v4563_v63 = vpop.f32.mrf.mxu2  ;;  %v9041_v31 = vand.u32 4294901760, %v5303_v19 }
 0x4c3   :  { %v9025_v53 = vsub.f32 %v4488_v51, %v6319_v43  ;;  %v9027_v52 = vadd.f32 %v6319_v43, %v4488_v51  ;;  %v5312_v43 = vsel %vm5301_vm12, %v5300_v9, 0 }
 0x4c4   :  { %v4635_v60 = vpop.f32.mrf.mxu3  ;;  %v4684_v28 = vpop.f32.mrf.mxu0 }
 0x4c5   :  { %9846 = vst [vmem:[#allocation102_spill] sm:$0xff] %v9025_v53  ;;  %v9029_v30 = vadd.f32 %v4635_v60, %v4555_v56  ;;  %v4685_v44 = vadd.f32 %v4684_v28, %v4628_v3  ;;  %v5309_v56 = vsel %vm5301_vm12, %v5299_v36, 0 }
 0x4c6   :  { %9847 = vst [vmem:[#allocation103_spill] sm:$0xff] %v9027_v52  ;;  %v9034_v38 = vpop.f32.mrf.mxu1 }
 0x4c7   :  { %5092 = vmatmul.f32.gmra.mxu2 %v9736_v16  ;;  %5204 = vmatmul.f32.gmra.mxu0 %v6784_v13  ;;  %v5298_v16 = vld [vmem:[%s9570_s3 + $0x8] sm:$0xff] }
 0x4c9   :  { %5152 = vmatmul.f32.gmra.mxu3 %v9737_v45  ;;  %5252 = vmatmul.f32.vlgmr.msrb.gmra.mxu1 %v6780_v11  ;;  %v9053_v11 = vsub.f32 %v5303_v19, %v9041_v31  ;;  %v5306_v45 = vsel %vm5301_vm12, %v5298_v16, 0 }
 0x4ca   :  { %v4571_v1 = vpop.f32.mrf.mxu2  ;;  %v9063_v3 = vand.u32 4294901760, %v5306_v45 }
 0x4cb   :  { %v9061_v54 = vand.u32 4294901760, %v9053_v11 }
 0x4cc   :  { %v4639_v5 = vpop.f32.mrf.mxu3  ;;  %v4689_v34 = vpop.f32.mrf.mxu0  ;;  %v9079_v46 = vsub.f32 %v5306_v45, %v9063_v3 }
 0x4cd   :  { %v9043_v7 = vadd.f32 %v4639_v5, %v4563_v63  ;;  %v4690_v6 = vadd.f32 %v4689_v34, %v4632_v15  ;;  %v9091_v15 = vand.u32 4294901760, %v5309_v56  ;;  %v5286_v5 = vperm.slane %v8953_v58, 1 }
 0x4ce   :  { %v4746_v4 = vpop.f32.mrf.mxu1  ;;  %9848 = vst [vmem:[#allocation104_spill] sm:$0xff] %v9079_v46 }
 0x4cf   :  { %v9048_v55 = vadd.f32 %v4746_v4, %v4685_v44  ;;  %5097 = vmatmul.f32.gmra.mxu2 %v9739_v37  ;;  %5208 = vmatmul.f32.gmra.mxu0 %v6877_v50  ;;  %v9107_v51 = vsub.f32 %v5309_v56, %v9091_v15  ;;  %v9119_v44 = vand.u32 4294901760, %v5312_v43  ;;  %vm5289_vm13 = vcmp.eq.s32.totalorder %v9732_v17, %v5286_v5 }
 0x4d1   :  { %5158 = vmatmul.f32.gmra.mxu3 %v9740_v47  ;;  %5256 = vmatmul.f32.gmra.mxu1 %v6784_v13  ;;  %v5344_v13 = vsub.f32 %v9053_v11, %v9061_v54  ;;  %v9117_v28 = vand.u32 4294901760, %v9107_v51 }
 0x4d2   :  { %v9058_v33 = vpop.f32.mrf.mxu2 }
 0x4d3   :  { %v9086_v41 = vand.u32 4294901760, %v5344_v13 }
 0x4d4   :  { %v4643_v20 = vpop.f32.mrf.mxu3  ;;  %v9065_v37 = vpop.f32.mrf.mxu0 }
 0x4d5   :  { %v9067_v59 = vadd.f32 %v4643_v20, %v4571_v1 }
 0x4d6   :  { %v4752_v49 = vpop.f32.mrf.mxu1 }
 0x4d7   :  { %v9072_v47 = vadd.f32 %v4752_v49, %v4690_v6  ;;  %5102 = vmatmul.f32.gmra.mxu2 %v9742_v22  ;;  %5212 = vmatmul.f32.gmra.mxu0 %v6903_v0  ;;  %v9089_v22 = vand.u32 4294901760, %v9079_v46  ;;  %v6679_v6 = vsel %vm5289_vm13, 1.0, %v9684_v2 }
 0x4d8   :  { %v5319_v45 = vsel %vm5314_vm0, %v6679_v6, 0  ;;  %6685 = vmatpush.msk.msrb.mxu1 %vm5314_vm0, %v6679_v6 }
 0x4d9   :  { %5164 = vmatmul.f32.gmra.mxu3 %v9743_v27  ;;  %5260 = vmatmul.f32.gmra.mxu1 %v6877_v50  ;;  %v5352_v50 = vsub.f32 %v9079_v46, %v9089_v22  ;;  %v5629_v36 = vsub.f32 %v5319_v45, %v5319_v45 }
 0x4da   :  { %v9084_v40 = vpop.f32.mrf.mxu2 }
 0x4db   :  { %v9114_v60 = vand.u32 4294901760, %v5352_v50  ;;  %v5630_v13 = vand.u32 4294901760, %v5629_v36  ;;  %5668 = vmatpush.msrb.mxu0 %v5629_v36 }
 0x4dc   :  { %v9093_v24 = vpop.f32.mrf.mxu3  ;;  %v9095_v62 = vpop.f32.mrf.mxu0 }
 0x4dd   :  { %9849 = vst [vmem:[#allocation105_spill] sm:$0xff] %v9114_v60  ;;  %v5631_v9 = vsub.f32 %v5629_v36, %v5630_v13 }
 0x4de   :  { %v9100_v27 = vpop.f32.mrf.mxu1 }
 0x4df   :  { %5216 = vmatmul.f32.gmra.mxu0 %v6940_v26  ;;  %5346 = vmatmul.f32.vlgmr.msra.gmra.mxu2 %v9086_v41 }
 0x4e0   :  { %6684 = vmatpush.msk.msra.mxu2 %vm5314_vm0, %v6679_v6 }
 0x4e1   :  { %5170 = vmatmul.f32.gmra.mxu3 %v6853_v39  ;;  %5264 = vmatmul.f32.gmra.mxu1 %v6903_v0  ;;  %v5360_v39 = vsub.f32 %v9107_v51, %v9117_v28  ;;  %v9130_v0 = vsub.f32 %v5312_v43, %v9119_v44  ;;  %v5632_v43 = vand.u32 4294901760, %v5631_v9 }
 0x4e2   :  { %v9112_v63 = vpop.f32.mrf.mxu2 }
 0x4e3   :  { %v9139_v16 = vand.u32 4294901760, %v5360_v39  ;;  %v9142_v4 = vand.u32 4294901760, %v9130_v0 }
 0x4e4   :  { %v9121_v57 = vpop.f32.mrf.mxu3  ;;  %v9123_v19 = vpop.f32.mrf.mxu0 }
 0x4e5   :  { %9850 = vst [vmem:[#allocation106_spill] sm:$0xff] %v9139_v16  ;;  %v5368_v56 = vsub.f32 %v9130_v0, %v9142_v4 }
 0x4e6   :  { %v4764_v1 = vpop.f32.mrf.mxu1 }
 0x4e7   :  { %5220 = vmatmul.f32.gmra.mxu0 %v6982_v42  ;;  %5354 = vmatmul.f32.gmra.mxu2 %v9114_v60  ;;  %v9157_v39 = vand.u32 4294901760, %v5368_v56 }
 0x4e9   :  { %5268 = vmatmul.f32.gmra.mxu1 %v6940_v26  ;;  %5396 = vmatmul.f32.vlgmr.msra.gmra.mxu3 %v9041_v31  ;;  %9851 = vst [vmem:[#allocation107_spill] sm:$0xff] %v9157_v39 }
 0x4ea   :  { %v9136_v34 = vpop.f32.mrf.mxu2  ;;  %5633 = vmatpush.msra.mxu3 %v5632_v43 }
 0x4ec   :  { %v4864_v26 = vpop.f32.mrf.mxu3  ;;  %v9147_v20 = vpop.f32.mrf.mxu0 }
 0x4ee   :  { %v4770_v49 = vpop.f32.mrf.mxu1 }
 0x4ef   :  { %5224 = vmatmul.f32.gmra.mxu0 %v6782_v12  ;;  %5362 = vmatmul.f32.gmra.mxu2 %v9139_v16 }
 0x4f1   :  { %5272 = vmatmul.f32.gmra.mxu1 %v6982_v42  ;;  %5400 = vmatmul.f32.gmra.mxu3 %v9063_v3 }
 0x4f2   :  { %v9155_v50 = vpop.f32.mrf.mxu2 }
 0x4f4   :  { %v4868_v5 = vpop.f32.mrf.mxu3  ;;  %v9159_v45 = vpop.f32.mrf.mxu0 }
 0x4f6   :  { %v4776_v48 = vpop.f32.mrf.mxu1 }
 0x4f7   :  { %5228 = vmatmul.f32.gmra.mxu0 %v6798_v18  ;;  %5370 = vmatmul.f32.gmra.mxu2 %v9157_v39  ;;  %v4700_v39 = vadd.f32 %v9095_v62, %v9043_v7 }
 0x4f9   :  { %5276 = vmatmul.f32.gmra.mxu1 %v6782_v12  ;;  %5404 = vmatmul.f32.gmra.mxu3 %v9091_v15 }
 0x4fa   :  { %v9165_v42 = vpop.f32.mrf.mxu2 }
 0x4fc   :  { %v9167_v36 = vpop.f32.mrf.mxu3  ;;  %v9169_v9 = vpop.f32.mrf.mxu0 }
 0x4fe   :  { %v9171_v56 = vpop.f32.mrf.mxu1 }
 0x4ff   :  { %5432 = vmatmul.f32.vlgmr.msrb.gmra.mxu2 %v9053_v11  ;;  %5513 = vmatmul.f32.vlgmr.msra.gmra.mxu0 %v9041_v31 }
 0x500   :  { %5750 = vmatpush.msrb.mxu2 %v5630_v13  ;;  %v4680_v13 = vadd.f32 %v9016_v8, %v8993_v10  ;;  %v4705_v10 = vadd.f32 %v9123_v19, %v9067_v59 }
 0x501   :  { %5280 = vmatmul.f32.gmra.mxu1 %v6798_v18  ;;  %5408 = vmatmul.f32.gmra.mxu3 %v9119_v44  ;;  %v4765_v18 = vadd.f32 %v4764_v1, %v4700_v39 }
 0x502   :  { %v4828_v12 = vpop.f32.mrf.mxu2  ;;  %v4741_v52 = vadd.f32 %v9034_v38, %v4680_v13 }
 0x503   :  { %v4829_v53 = vadd.f32 %v4828_v12, %v4765_v18 }
 0x504   :  { %v9177_v43 = vpop.f32.mrf.mxu3  ;;  %v9179_v32 = vpop.f32.mrf.mxu0  ;;  %v4813_v62 = vadd.f32 %v9112_v63, %v4741_v52  ;;  %v4817_v63 = vadd.f32 %v9136_v34, %v9048_v55 }
 0x505   :  { %9852 = vst [vmem:[#allocation108_spill] sm:$0xff] %v9179_v32 }
 0x506   :  { %v9181_v29 = vpop.f32.mrf.mxu1  ;;  %v4865_v8 = vadd.f32 %v4864_v26, %v4813_v62 }
 0x507   :  { %5437 = vmatmul.f32.gmra.mxu2 %v9079_v46  ;;  %5517 = vmatmul.f32.gmra.mxu0 %v9063_v3 }
 0x509   :  { %5471 = vmatmul.f32.vlgmr.msrb.gmra.mxu3 %v9061_v54  ;;  %5547 = vmatmul.f32.vlgmr.msra.gmra.mxu1 %v9041_v31 }
 0x50a   :  { %v4832_v16 = vpop.f32.mrf.mxu2  ;;  %6686 = vmatpush.msk.msrb.mxu3 %vm5314_vm0, %v6679_v6  ;;  %v4771_v6 = vadd.f32 %v4770_v49, %v4705_v10 }
 0x50c   :  { %v4880_v32 = vpop.f32.mrf.mxu3  ;;  %v9193_v7 = vpop.f32.mrf.mxu0 }
 0x50d   :  { %v4881_v46 = vadd.f32 %v4880_v32, %v4829_v53  ;;  %v4833_v32 = vadd.f32 %v4832_v16, %v4771_v6 }
 0x50e   :  { %v9196_v60 = vpop.f32.mrf.mxu1 }
 0x50f   :  { %v6320_v1 = vand.u32 2147483647, %v4881_v46  ;;  %5442 = vmatmul.f32.gmra.mxu2 %v9107_v51  ;;  %5521 = vmatmul.f32.gmra.mxu0 %v9091_v15  ;;  %v4648_v46 = vadd.f32 %v9093_v24, %v9058_v33  ;;  %v4869_v24 = vadd.f32 %v4868_v5, %v4817_v63  ;;  %v4652_v5 = vadd.f32 %v9121_v57, %v9084_v40 }
 0x510   :  { %v4695_v63 = vadd.f32 %v9065_v37, %v9029_v30 }
 0x511   :  { %v6332_v38 = vsub.f32 %v4865_v8, %v6320_v1  ;;  %v6344_v39 = vadd.f32 %v6320_v1, %v4865_v8  ;;  %5477 = vmatmul.f32.gmra.mxu3 %v9089_v22  ;;  %5551 = vmatmul.f32.gmra.mxu1 %v9063_v3  ;;  %v4710_v33 = vadd.f32 %v9147_v20, %v4648_v46  ;;  %v5287_v46 = vperm.slane %v8953_v58, 2 }
 0x512   :  { %v4836_v52 = vpop.f32.mrf.mxu2  ;;  %v4715_v40 = vadd.f32 %v9159_v45, %v4652_v5  ;;  %v5013_v45 = vadd.f32 %v9181_v29, %v9169_v9 }
 0x513   :  { %v9205_v53 = vmax.f32 %v8989_v35, %v6332_v38  ;;  %v9208_v59 = vmin.f32 %v8991_v21, %v6344_v39  ;;  %v4777_v34 = vadd.f32 %v4776_v48, %v4710_v33  ;;  %v4821_v48 = vadd.f32 %v9155_v50, %v9072_v47 }
 0x514   :  { %v4884_v19 = vpop.f32.mrf.mxu3  ;;  %v9214_v26 = vpop.f32.mrf.mxu0  ;;  %vm5290_vm14 = vcmp.eq.s32.totalorder %v9732_v17, %v5287_v46 }
 0x515   :  { %v6417_v49 = vsub.f32 %v9205_v53, %v9208_v59  ;;  %v4885_v12 = vadd.f32 %v4884_v19, %v4833_v32  ;;  %v9220_v35 = vadd.f32 %v9208_v59, %v9205_v53  ;;  %v6352_v21 = vsub.f32 %v9208_v59, %v9205_v53 }
 0x516   :  { %v9224_v16 = vpop.f32.mrf.mxu1  ;;  %v4837_v10 = vadd.f32 %v4836_v52, %v4777_v34  ;;  %v4873_v47 = vadd.f32 %v9167_v36, %v4821_v48  ;;  %v4783_v19 = vadd.f32 %v9171_v56, %v4715_v40 }
 0x517   :  { %v6321_v55 = vand.u32 2147483647, %v4885_v12  ;;  %5447 = vmatmul.f32.gmra.mxu2 %v9130_v0  ;;  %5525 = vmatmul.f32.gmra.mxu0 %v9119_v44  ;;  %v6421_v1 = vmax.f32 %v6417_v49, 0.0 }
 0x519   :  { %v6333_v13 = vsub.f32 %v4869_v24, %v6321_v55  ;;  %v6345_v18 = vadd.f32 %v6321_v55, %v4869_v24  ;;  %5483 = vmatmul.f32.gmra.mxu3 %v9117_v28  ;;  %5555 = vmatmul.f32.gmra.mxu1 %v9091_v15  ;;  %v6425_v49 = vmul.f32 %v6421_v1, %v6421_v1  ;;  %v9853_v1 = vld [vmem:[#allocation105_spill] sm:$0xff] }
 0x51a   :  { %v4840_v62 = vpop.f32.mrf.mxu2  ;;  %v4759_v24 = vadd.f32 %v9100_v27, %v4695_v63 }
 0x51b   :  { %v9232_v8 = vmax.f32 %v9002_v14, %v6333_v13  ;;  %v9235_v20 = vmin.f32 %v9004_v61, %v6345_v18  ;;  %v4841_v55 = vadd.f32 %v4840_v62, %v4783_v19  ;;  %v6680_v18 = vsel %vm5290_vm14, 1.0, %v9684_v2  ;;  %v9856_v19 = vld [vmem:[#allocation102_spill] sm:$0xff] }
 0x51c   :  { %v4888_v6 = vpop.f32.mrf.mxu3  ;;  %v9241_v38 = vpop.f32.mrf.mxu0  ;;  %v4825_v56 = vadd.f32 %v9165_v42, %v4759_v24  ;;  %v5322_v17 = vsel %vm5314_vm0, %v6680_v18, 0  ;;  %6687 = vmatpush.msk.msra.mxu0 %vm5314_vm0, %v6680_v18 }
 0x51d   :  { %v6418_v39 = vsub.f32 %v9232_v8, %v9235_v20  ;;  %v4889_v52 = vadd.f32 %v4888_v6, %v4837_v10  ;;  %v9247_v14 = vadd.f32 %v9235_v20, %v9232_v8  ;;  %v6353_v61 = vsub.f32 %v9235_v20, %v9232_v8  ;;  %v9854_v6 = vld [vmem:[#allocation104_spill] sm:$0xff] }
 0x51e   :  { %v9252_v57 = vpop.f32.mrf.mxu1  ;;  %v5868_v42 = vsub.f32 %v5322_v17, %v5322_v17  ;;  %v4877_v2 = vadd.f32 %v9177_v43, %v4825_v56  ;;  %v5021_v17 = vadd.f32 %v9224_v16, %v9193_v7 }
 0x51f   :  { %v6422_v50 = vmax.f32 %v6418_v39, 0.0  ;;  %v6322_v32 = vand.u32 2147483647, %v4889_v52  ;;  %5585 = vmatmul.f32.vlgmr.msra.gmra.mxu2 %v9086_v41  ;;  %5671 = vmatmul.f32.vlgmr.msrb.gmra.mxu0 %v9053_v11  ;;  %v9855_v39 = vld [vmem:[#allocation108_spill] sm:$0xff]  ;;  %v5025_v7 = vadd.f32 %v9252_v57, %v9214_v26 }
 0x520   :  { %v5017_v52 = vadd.f32 %v9196_v60, %v9855_v39  ;;  %v5869_v40 = vand.u32 4294901760, %v5868_v42  ;;  %5907 = vmatpush.msra.mxu2 %v5868_v42 }
 0x521   :  { %v6426_v12 = vmul.f32 %v6422_v50, %v6422_v50  ;;  %v6334_v33 = vsub.f32 %v4873_v47, %v6322_v32  ;;  %v6346_v36 = vadd.f32 %v6322_v32, %v4873_v47  ;;  %5489 = vmatmul.f32.gmra.mxu3 %v9142_v4  ;;  %5559 = vmatmul.f32.gmra.mxu1 %v9119_v44 }
 0x522   :  { %v5068_v58 = vpop.f32.mrf.mxu2  ;;  %v5870_v43 = vsub.f32 %v5868_v42, %v5869_v40  ;;  %5989 = vmatpush.msrb.mxu0 %v5869_v40 }
 0x523   :  { %v6429_v30 = vadd.f32 %v6426_v12, %v6425_v49  ;;  %v9268_v37 = vmax.f32 %v9012_v25, %v6334_v33  ;;  %v9271_v29 = vmin.f32 %v9014_v23, %v6346_v36  ;;  %v5069_v9 = vadd.f32 %v5068_v58, %v5013_v45  ;;  %v9857_v49 = vld [vmem:[#allocation103_spill] sm:$0xff] }
 0x524   :  { %v4892_v34 = vpop.f32.mrf.mxu3  ;;  %v9274_v13 = vpop.f32.mrf.mxu0  ;;  %v5871_v24 = vand.u32 4294901760, %v5870_v43 }
 0x525   :  { %v6419_v27 = vsub.f32 %v9268_v37, %v9271_v29  ;;  %v4893_v62 = vadd.f32 %v4892_v34, %v4841_v55  ;;  %v9283_v25 = vadd.f32 %v9271_v29, %v9268_v37  ;;  %v6354_v10 = vsub.f32 %v9271_v29, %v9268_v37 }
 0x526   :  { %v9285_v23 = vpop.f32.mrf.mxu1  ;;  %5872 = vmatpush.msra.mxu1 %v5871_v24 }
 0x527   :  { %v6423_v5 = vmax.f32 %v6419_v27, 0.0  ;;  %v6323_v48 = vand.u32 2147483647, %v4893_v62  ;;  %5593 = vmatmul.f32.gmra.mxu2 %v9853_v1  ;;  %5676 = vmatmul.f32.gmra.mxu0 %v9854_v6  ;;  %v9858_v62 = vld [vmem:[#allocation106_spill] sm:$0xff]  ;;  %v5029_v26 = vadd.f32 %v9285_v23, %v9241_v38  ;;  %v9345_v38 = vmul.f32 0.5, %v6352_v21 }
 0x529   :  { %v6427_v47 = vmul.f32 %v6423_v5, %v6423_v5  ;;  %v6335_v50 = vsub.f32 %v4877_v2, %v6323_v48  ;;  %v6347_v32 = vadd.f32 %v6323_v48, %v4877_v2  ;;  %5635 = vmatmul.f32.vlgmr.msra.gmra.mxu3 %v9041_v31  ;;  %5710 = vmatmul.f32.vlgmr.msrb.gmra.mxu1 %v9061_v54 }
 0x52a   :  { %v5073_v46 = vpop.f32.mrf.mxu2  ;;  %6688 = vmatpush.msk.msra.mxu3 %vm5314_vm0, %v6680_v18  ;;  %6689 = vmatpush.msk.msrb.mxu1 %vm5314_vm0, %v6680_v18 }
 0x52b   :  { %v6430_v63 = vadd.f32 %v6429_v30, %v6427_v47  ;;  %v9298_v45 = vmax.f32 %v9856_v19, %v6335_v50  ;;  %v9301_v60 = vmin.f32 %v9857_v49, %v6347_v32  ;;  %v5074_v12 = vadd.f32 %v5073_v46, %v5017_v52  ;;  %v9859_v32 = vld [vmem:[#allocation107_spill] sm:$0xff] }
 0x52c   :  { %v5129_v33 = vpop.f32.mrf.mxu3  ;;  %v9303_v36 = vpop.f32.mrf.mxu0 }
 0x52d   :  { %v6420_v55 = vsub.f32 %v9298_v45, %v9301_v60  ;;  %v5130_v58 = vadd.f32 %v5129_v33, %v5069_v9  ;;  %v9309_v56 = vadd.f32 %v9301_v60, %v9298_v45  ;;  %v6355_v30 = vsub.f32 %v9301_v60, %v9298_v45 }
 0x52e   :  { %v5032_v34 = vpop.f32.mrf.mxu1 }
 0x52f   :  { %v6424_v27 = vmax.f32 %v6420_v55, 0.0  ;;  %5601 = vmatmul.f32.gmra.mxu2 %v9858_v62  ;;  %5681 = vmatmul.f32.gmra.mxu0 %v9107_v51 }
 0x531   :  { %v6428_v9 = vmul.f32 %v6424_v27, %v6424_v27  ;;  %5639 = vmatmul.f32.gmra.mxu3 %v9063_v3  ;;  %5716 = vmatmul.f32.gmra.mxu1 %v9089_v22 }
 0x532   :  { %v5078_v42 = vpop.f32.mrf.mxu2 }
 0x533   :  { %v6431_v2 = vadd.f32 %v6430_v63, %v6428_v9  ;;  %v5079_v5 = vadd.f32 %v5078_v42, %v5021_v17 }
 0x534   :  { %v5135_v48 = vpop.f32.mrf.mxu3  ;;  %v9320_v39 = vpop.f32.mrf.mxu0 }
 0x535   :  { %v6432_v52 = vrot.slane %v6431_v2, 4  ;;  %v5136_v40 = vadd.f32 %v5135_v48, %v5074_v12 }
 0x536   :  { %v5036_v47 = vpop.f32.mrf.mxu1 }
 0x537   :  { %v6433_v50 = vadd.f32 %v6432_v52, %v6431_v2  ;;  %5609 = vmatmul.f32.gmra.mxu2 %v9859_v32  ;;  %5686 = vmatmul.f32.gmra.mxu0 %v9130_v0  ;;  %v5033_v52 = vadd.f32 %v5032_v34, %v9274_v13 }
 0x539   :  { %v6434_v16 = vrot.slane %v6433_v50, 2  ;;  %5643 = vmatmul.f32.gmra.mxu3 %v9091_v15  ;;  %5722 = vmatmul.f32.gmra.mxu1 %v9117_v28 }
 0x53a   :  { %v5083_v18 = vpop.f32.mrf.mxu2 }
 0x53b   :  { %v6435_v46 = vadd.f32 %v6434_v16, %v6433_v50  ;;  %v5084_v43 = vadd.f32 %v5083_v18, %v5025_v7 }
 0x53c   :  { %v5141_v63 = vpop.f32.mrf.mxu3  ;;  %v5201_v19 = vpop.f32.mrf.mxu0 }
 0x53d   :  { %v6436_v49 = vrot.slane %v6435_v46, 1  ;;  %v5142_v12 = vadd.f32 %v5141_v63, %v5079_v5  ;;  %v5202_v33 = vadd.f32 %v5201_v19, %v5130_v58  ;;  %v9359_v63 = vmul.f32 0.5, %v6353_v61 }
 0x53e   :  { %v9328_v24 = vpop.f32.mrf.mxu1 }
 0x53f   :  { %v9330_v55 = vadd.f32 %v6436_v49, %v6435_v46  ;;  %5752 = vmatmul.f32.vlgmr.msrb.gmra.mxu2 %v9041_v31  ;;  %5824 = vmatmul.f32.vlgmr.msra.gmra.mxu0 %v9086_v41  ;;  %v6372_v41 = vmul.f32 0.5, %v9220_v35  ;;  %v6373_v49 = vmul.f32 0.5, %v9247_v14  ;;  %v6361_v20 = vmax.f32 %v9359_v63, 0.0 }
 0x541   :  { %5647 = vmatmul.f32.gmra.mxu3 %v9119_v44  ;;  %5728 = vmatmul.f32.gmra.mxu1 %v9142_v4  ;;  %6706 = vrsqrt.f32 %v9330_v55  ;;  %vm6457_vm1 = vcmp.eq.f32.partialorder %v9330_v55, inf  ;;  %vm6459_vm2 = vcmp.eq.f32.partialorder %v9330_v55, 0.0 }
 0x542   :  { %v5088_v57 = vpop.f32.mrf.mxu2 }
 0x543   :  { %v5089_v27 = vadd.f32 %v5088_v57, %v5029_v26 }
 0x544   :  { %v5147_v58 = vpop.f32.mrf.mxu3  ;;  %v5205_v17 = vpop.f32.mrf.mxu0 }
 0x545   :  { %v5148_v9 = vadd.f32 %v5147_v58, %v5084_v43  ;;  %v5206_v42 = vadd.f32 %v5205_v17, %v5136_v40 }
 0x546   :  { %v5253_v2 = vpop.f32.mrf.mxu1 }
 0x547   :  { %v6707_v5 = vpop.eup %6706  ;;  %v5254_v48 = vadd.f32 %v5253_v2, %v5202_v33  ;;  %5756 = vmatmul.f32.gmra.mxu2 %v9063_v3  ;;  %5832 = vmatmul.f32.gmra.mxu0 %v9853_v1  ;;  %v6360_v1 = vmax.f32 %v9345_v38, 0.0 }
 0x548   :  { %v6451_v23 = vmul.f32 %v6707_v5, %v9330_v55 }
 0x549   :  { %v6376_v50 = vsub.f32 %v6372_v41, %v5254_v48  ;;  %5786 = vmatmul.f32.vlgmr.msrb.gmra.mxu3 %v9041_v31  ;;  %5874 = vmatmul.f32.vlgmr.msra.gmra.mxu1 %v9041_v31 }
 0x54a   :  { %v5093_v40 = vpop.f32.mrf.mxu2  ;;  %v6452_v35 = vmul.f32 %v6707_v5, %v6451_v23  ;;  %v6374_v23 = vmul.f32 0.5, %v9283_v25 }
 0x54b   :  { %v6380_v7 = vand.u32 2147483647, %v6376_v50  ;;  %v5094_v16 = vadd.f32 %v5093_v40, %v5033_v52  ;;  %v9383_v52 = vmul.f32 0.5, %v6354_v10 }
 0x54c   :  { %v5153_v18 = vpop.f32.mrf.mxu3  ;;  %v5209_v46 = vpop.f32.mrf.mxu0  ;;  %v6453_v53 = vmul.f32 0.5, %v6452_v35 }
 0x54d   :  { %v5154_v59 = vadd.f32 %v5153_v18, %v5089_v27  ;;  %v5210_v21 = vadd.f32 %v5209_v46, %v5142_v12  ;;  %v9354_v43 = vadd.f32 %v6380_v7, %v6360_v1  ;;  %v5037_v12 = vadd.f32 %v5036_v47, %v9303_v36 }
 0x54e   :  { %v5257_v13 = vpop.f32.mrf.mxu1  ;;  %v6454_v34 = vsub.f32 1.5, %v6453_v53  ;;  %v6362_v7 = vmax.f32 %v9383_v52, 0.0 }
 0x54f   :  { %v5258_v19 = vadd.f32 %v5257_v13, %v5206_v42  ;;  %5760 = vmatmul.f32.gmra.mxu2 %v9091_v15  ;;  %5840 = vmatmul.f32.gmra.mxu0 %v9858_v62  ;;  %v6460_v62 = vand.u32 2147483648, %v9330_v55 }
 0x550   :  { %v6455_v33 = vmul.f32 %v6707_v5, %v6454_v34 }
 0x551   :  { %v6377_v26 = vsub.f32 %v6373_v49, %v5258_v19  ;;  %5790 = vmatmul.f32.gmra.mxu3 %v9063_v3  ;;  %5878 = vmatmul.f32.gmra.mxu1 %v9063_v3 }
 0x552   :  { %v5098_v57 = vpop.f32.mrf.mxu2  ;;  %v6456_v8 = vmul.f32 %v6455_v33, %v9330_v55 }
 0x553   :  { %v6381_v61 = vand.u32 2147483647, %v6377_v26  ;;  %v5099_v14 = vadd.f32 %v5098_v57, %v5037_v12 }
 0x554   :  { %v5159_v27 = vpop.f32.mrf.mxu3  ;;  %v5213_v58 = vpop.f32.mrf.mxu0  ;;  %v6458_v36 = vsel %vm6457_vm1, %v9330_v55, %v6456_v8  ;;  %v6364_v8 = vmul.f32 10000.0, %v6360_v1 }
 0x555   :  { %v5160_v47 = vadd.f32 %v5159_v27, %v5094_v16  ;;  %v5214_v17 = vadd.f32 %v5213_v58, %v5148_v9  ;;  %v6461_v42 = vsel %vm6459_vm2, %v6460_v62, %v6458_v36  ;;  %v9375_v2 = vadd.f32 %v6381_v61, %v6361_v20 }
 0x556   :  { %v5261_v5 = vpop.f32.mrf.mxu1  ;;  %v6489_v48 = vsel %vm6468_vm15, %v6461_v42, 0.0  ;;  %v5041_v9 = vadd.f32 %v9328_v24, %v9320_v39  ;;  %v6375_v39 = vmul.f32 0.5, %v9309_v56  ;;  %v9398_v24 = vmul.f32 0.5, %v6355_v30 }
 0x557   :  { %v5262_v41 = vadd.f32 %v5261_v5, %v5210_v21  ;;  %6490 = vadd.xlane.f32.xlu1 %v6489_v48  ;;  %5764 = vmatmul.f32.gmra.mxu2 %v9119_v44  ;;  %v6365_v36 = vmul.f32 10000.0, %v6361_v20 }
 0x558   :  { %5848 = vmatmul.f32.gmra.mxu0 %v9859_v32  ;;  %v6363_v13 = vmax.f32 %v9398_v24, 0.0 }
 0x559   :  { %v6378_v50 = vsub.f32 %v6374_v23, %v5262_v41  ;;  %5794 = vmatmul.f32.gmra.mxu3 %v9091_v15  ;;  %5882 = vmatmul.f32.gmra.mxu1 %v9091_v15 }
 0x55a   :  { %v5103_v40 = vpop.f32.mrf.mxu2  ;;  %v6367_v52 = vmul.f32 10000.0, %v6363_v13 }
 0x55b   :  { %v6382_v25 = vand.u32 2147483647, %v6378_v50  ;;  %v5104_v35 = vadd.f32 %v5103_v40, %v5041_v9  ;;  %v6366_v50 = vmul.f32 10000.0, %v6362_v7 }
 0x55c   :  { %v5165_v16 = vpop.f32.mrf.mxu3  ;;  %v5217_v18 = vpop.f32.mrf.mxu0 }
 0x55d   :  { %v5166_v37 = vadd.f32 %v5165_v16, %v5099_v14  ;;  %v5218_v29 = vadd.f32 %v5217_v18, %v5154_v59  ;;  %v6386_v10 = vadd.f32 %v6382_v25, %v6362_v7 }
 0x55e   :  { %v5265_v32 = vpop.f32.mrf.mxu1 }
 0x55f   :  { %v5266_v46 = vadd.f32 %v5265_v32, %v5214_v17  ;;  %5910 = vmatmul.f32.vlgmr.msra.gmra.mxu2 %v9053_v11 }
 0x560   :  { %5991 = vmatmul.f32.vlgmr.msrb.gmra.mxu0 %v9041_v31 }
 0x561   :  { %v6379_v53 = vsub.f32 %v6375_v39, %v5266_v46  ;;  %5798 = vmatmul.f32.gmra.mxu3 %v9119_v44  ;;  %5886 = vmatmul.f32.gmra.mxu1 %v9119_v44 }
 0x562   :  { %v5347_v59 = vpop.f32.mrf.mxu2 }
 0x563   :  { %v6383_v21 = vand.u32 2147483647, %v6379_v53 }
 0x564   :  { %v5171_v34 = vpop.f32.mrf.mxu3  ;;  %v5221_v56 = vpop.f32.mrf.mxu0 }
 0x565   :  { %v5172_v19 = vadd.f32 %v5171_v34, %v5104_v35  ;;  %v5222_v11 = vadd.f32 %v5221_v56, %v5160_v47  ;;  %v6387_v45 = vadd.f32 %v6383_v21, %v6363_v13  ;;  %v9863_v13 = vld [vmem:[#allocation15_spill] sm:$0xff] }
 0x566   :  { %v5269_v60 = vpop.f32.mrf.mxu1 }
 0x567   :  { %v5270_v30 = vadd.f32 %v5269_v60, %v5218_v29  ;;  %5915 = vmatmul.f32.gmra.mxu2 %v9854_v6 }
 0x568   :  { %5995 = vmatmul.f32.gmra.mxu0 %v9063_v3 }
 0x569   :  { %v6324_v49 = vand.u32 2147483647, %v5270_v30  ;;  %5949 = vmatmul.f32.vlgmr.msra.gmra.mxu3 %v9061_v54  ;;  %6025 = vmatmul.f32.vlgmr.msrb.gmra.mxu1 %v9041_v31  ;;  %v9861_v30 = vld [vmem:[#allocation7_spill] sm:$0xff] }
 0x56a   :  { %v5355_v33 = vpop.f32.mrf.mxu2 }
 0x56b   :  { %v6388_v12 = vsub.f32 %v9354_v43, %v6324_v49 }
 0x56c   :  { %v5397_v26 = vpop.f32.mrf.mxu3  ;;  %v5225_v57 = vpop.f32.mrf.mxu0 }
 0x56d   :  { %v6396_v61 = vmax.f32 %v6388_v12, 0.0  ;;  %v5398_v14 = vadd.f32 %v5397_v26, %v5347_v59  ;;  %v5226_v62 = vadd.f32 %v5225_v57, %v5166_v37  ;;  %v9862_v12 = vld [vmem:[#allocation11_spill] sm:$0xff]  ;;  %v9864_v26 = vld [vmem:[#allocation5_spill] sm:$0xff] }
 0x56e   :  { %v5273_v27 = vpop.f32.mrf.mxu1  ;;  %v2106_v57 = vadd.f32 %v9864_v26, %v9863_v13 }
 0x56f   :  { %v6400_v6 = vmin.f32 %v6364_v8, %v6396_v61  ;;  %v5274_v58 = vadd.f32 %v5273_v27, %v5222_v11  ;;  %5920 = vmatmul.f32.gmra.mxu2 %v9107_v51 }
 0x570   :  { %5999 = vmatmul.f32.gmra.mxu0 %v9091_v15 }
 0x571   :  { %v6325_v54 = vand.u32 2147483647, %v5274_v58  ;;  %5955 = vmatmul.f32.gmra.mxu3 %v9089_v22  ;;  %6029 = vmatmul.f32.gmra.mxu1 %v9063_v3  ;;  %v6404_v22 = vmul.f32 %v6400_v6, %v6400_v6 }
 0x572   :  { %v5363_v31 = vpop.f32.mrf.mxu2 }
 0x573   :  { %v6389_v43 = vsub.f32 %v9375_v2, %v6325_v54 }
 0x574   :  { %v5401_v38 = vpop.f32.mrf.mxu3  ;;  %v5229_v1 = vpop.f32.mrf.mxu0 }
 0x575   :  { %v6397_v47 = vmax.f32 %v6389_v43, 0.0  ;;  %v5402_v17 = vadd.f32 %v5401_v38, %v5355_v33  ;;  %v5230_v42 = vadd.f32 %v5229_v1, %v5172_v19  ;;  %v9867_v38 = vld [vmem:[#allocation31_spill] sm:$0xff] }
 0x576   :  { %v5277_v5 = vpop.f32.mrf.mxu1 }
 0x577   :  { %v6401_v51 = vmin.f32 %v6365_v36, %v6397_v47  ;;  %v5278_v48 = vadd.f32 %v5277_v5, %v5226_v62  ;;  %5925 = vmatmul.f32.gmra.mxu2 %v9130_v0  ;;  %v9868_v47 = vld [vmem:[#allocation24_spill] sm:$0xff] }
 0x578   :  { %6003 = vmatmul.f32.gmra.mxu0 %v9119_v44 }
 0x579   :  { %v6405_v3 = vmul.f32 %v6401_v51, %v6401_v51  ;;  %v6326_v41 = vand.u32 2147483647, %v5278_v48  ;;  %5961 = vmatmul.f32.gmra.mxu3 %v9117_v28  ;;  %6033 = vmatmul.f32.gmra.mxu1 %v9091_v15 }
 0x57a   :  { %v5371_v2 = vpop.f32.mrf.mxu2 }
 0x57b   :  { %v6408_v63 = vadd.f32 %v6405_v3, %v6404_v22  ;;  %v6390_v20 = vsub.f32 %v6386_v10, %v6326_v41  ;;  %v9870_v3 = vld [vmem:[#allocation13_spill] sm:$0xff] }
 0x57c   :  { %v5405_v23 = vpop.f32.mrf.mxu3  ;;  %v5514_v9 = vpop.f32.mrf.mxu0 }
 0x57d   :  { %v6398_v40 = vmax.f32 %v6390_v20, 0.0  ;;  %v5406_v25 = vadd.f32 %v5405_v23, %v5363_v31  ;;  %v9866_v31 = vld [vmem:[#allocation35_spill] sm:$0xff] }
 0x57e   :  { %v5281_v0 = vpop.f32.mrf.mxu1  ;;  %v6159_v43 = vand.u32 2147483647, %v9866_v31 }
 0x57f   :  { %v6402_v35 = vmin.f32 %v6366_v50, %v6398_v40  ;;  %v5282_v16 = vadd.f32 %v5281_v0, %v5230_v42 }
 0x580   :  { %v6163_v23 = vmul.f32 -1.0, %v6159_v43  ;;  %v9884_v43 = vld [vmem:[#allocation9_spill] sm:$0xff] }
 0x581   :  { %v6406_v18 = vmul.f32 %v6402_v35, %v6402_v35  ;;  %v6327_v37 = vand.u32 2147483647, %v5282_v16  ;;  %5967 = vmatmul.f32.gmra.mxu3 %v9142_v4  ;;  %6037 = vmatmul.f32.gmra.mxu1 %v9119_v44 }
 0x582   :  { %v5433_v15 = vpop.f32.mrf.mxu2 }
 0x583   :  { %v6409_v28 = vadd.f32 %v6408_v63, %v6406_v18  ;;  %v6391_v29 = vsub.f32 %v6387_v45, %v6327_v37  ;;  %v5434_v10 = vadd.f32 %v5433_v15, %v5398_v14  ;;  %v9860_v45 = vld [vmem:[#allocation30_spill] sm:$0xff]  ;;  %v9872_v63 = vld [vmem:[#allocation27_spill] sm:$0xff] }
 0x584   :  { %v5409_v32 = vpop.f32.mrf.mxu3  ;;  %v5518_v46 = vpop.f32.mrf.mxu0  ;;  %v2090_v49 = vadd.f32 %v9861_v30, %v9860_v45  ;;  %v9865_v14 = vld [vmem:[#allocation22_spill] sm:$0xff] }
 0x585   :  { %v6399_v7 = vmax.f32 %v6391_v29, 0.0  ;;  %v5410_v39 = vadd.f32 %v5409_v32, %v5371_v2  ;;  %v2158_v62 = vadd.f32 %v9865_v14, %v2106_v57  ;;  %v9871_v2 = vld [vmem:[#allocation17_spill] sm:$0xff]  ;;  %v9880_v45 = vld [vmem:[#allocation6_spill] sm:$0xff] }
 0x586   :  { %v5548_v53 = vpop.f32.mrf.mxu1  ;;  %v2142_v24 = vadd.f32 %v9862_v12, %v2090_v49  ;;  %v2110_v20 = vadd.f32 %v9872_v63, %v9871_v2  ;;  %v9881_v12 = vld [vmem:[#allocation12_spill] sm:$0xff] }
 0x587   :  { %v6403_v59 = vmin.f32 %v6367_v52, %v6399_v7  ;;  %v6151_v51 = vand.u32 2147483647, %v2158_v62  ;;  %v9876_v7 = vld [vmem:[#allocation28_spill] sm:$0xff]  ;;  %v9882_v62 = vld [vmem:[#allocation37_spill] sm:$0xff] }
 0x589   :  { %v6407_v21 = vmul.f32 %v6403_v59, %v6403_v59 }
 0x58a   :  { %v5438_v34 = vpop.f32.mrf.mxu2 }
 0x58b   :  { %v9430_v56 = vadd.f32 %v6409_v28, %v6407_v21  ;;  %v5439_v4 = vadd.f32 %v5438_v34, %v5402_v17  ;;  %v9869_v17 = vld [vmem:[#allocation26_spill] sm:$0xff]  ;;  %v9874_v28 = vld [vmem:[#allocation36_spill] sm:$0xff] }
 0x58c   :  { %v5472_v19 = vpop.f32.mrf.mxu3  ;;  %v5522_v44 = vpop.f32.mrf.mxu0  ;;  %v2094_v42 = vadd.f32 %v9869_v17, %v9868_v47  ;;  %v6160_v29 = vand.u32 2147483647, %v9874_v28 }
 0x58d   :  { %v5473_v11 = vadd.f32 %v5472_v19, %v5434_v10  ;;  %v9875_v10 = vld [vmem:[#allocation32_spill] sm:$0xff] }
 0x58e   :  { %v5552_v60 = vpop.f32.mrf.mxu1  ;;  %v2146_v41 = vadd.f32 %v9870_v3, %v2094_v42  ;;  %v9878_v19 = vld [vmem:[#allocation20_spill] sm:$0xff]  ;;  %v9887_v3 = vld [vmem:[#allocation23_spill] sm:$0xff] }
 0x58f   :  { %v5515_v33 = vadd.f32 %v5514_v9, %v5473_v11  ;;  %v9879_v11 = vld [vmem:[#allocation8_spill] sm:$0xff] }
 0x591   :  { %v5549_v8 = vadd.f32 %v5548_v53, %v5515_v33  ;;  %v9877_v53 = vld [vmem:[#allocation14_spill] sm:$0xff] }
 0x592   :  { %v5443_v61 = vpop.f32.mrf.mxu2  ;;  %v2098_v59 = vadd.f32 %v9877_v53, %v9876_v7 }
 0x593   :  { %v6139_v27 = vadd.f32 %v5549_v8, %v2142_v24  ;;  %v5444_v6 = vadd.f32 %v5443_v61, %v5406_v25  ;;  %v9873_v25 = vld [vmem:[#allocation25_spill] sm:$0xff] }
 0x594   :  { %v5478_v58 = vpop.f32.mrf.mxu3  ;;  %v5526_v54 = vpop.f32.mrf.mxu0  ;;  %v2162_v0 = vadd.f32 %v9873_v25, %v2110_v20  ;;  %v2150_v30 = vadd.f32 %v9880_v45, %v2098_v59 }
 0x595   :  { %v6143_v1 = vsub.f32 %v6139_v27, %v9867_v38  ;;  %v5479_v36 = vadd.f32 %v5478_v58, %v5439_v4  ;;  %v6161_v27 = vand.u32 2147483647, %v9882_v62  ;;  %v9885_v38 = vld [vmem:[#allocation18_spill] sm:$0xff] }
 0x596   :  { %v5556_v5 = vpop.f32.mrf.mxu1  ;;  %v6152_v21 = vand.u32 2147483647, %v2162_v0 }
 0x597   :  { %v6147_v48 = vand.u32 2147483647, %v6143_v1  ;;  %v5519_v22 = vadd.f32 %v5518_v46, %v5479_v36  ;;  %v2102_v1 = vadd.f32 %v9885_v38, %v9884_v43  ;;  %v6165_v63 = vmul.f32 -1.0, %v6161_v27 }
 0x599   :  { %v6155_v9 = vadd.f32 %v6151_v51, %v6147_v48  ;;  %v5553_v50 = vadd.f32 %v5552_v60, %v5519_v22  ;;  %v2114_v60 = vadd.f32 %v9879_v11, %v9878_v19  ;;  %v9886_v48 = vld [vmem:[#allocation19_spill] sm:$0xff] }
 0x59a   :  { %v5448_v40 = vpop.f32.mrf.mxu2  ;;  %v2154_v22 = vadd.f32 %v9886_v48, %v2102_v1 }
 0x59b   :  { %v6167_v35 = vadd.f32 %v6163_v23, %v6155_v9  ;;  %v6140_v16 = vadd.f32 %v5553_v50, %v2146_v41  ;;  %v5449_v18 = vadd.f32 %v5448_v40, %v5410_v39  ;;  %v6164_v39 = vmul.f32 -1.0, %v6160_v29  ;;  %v9888_v41 = vld [vmem:[#allocation10_spill] sm:$0xff]  ;;  %v9889_v40 = vld [vmem:[#allocation16_spill] sm:$0xff] }
 0x59c   :  { %v5484_v37 = vpop.f32.mrf.mxu3  ;;  %v5672_v15 = vpop.f32.mrf.mxu0  ;;  %v2166_v24 = vadd.f32 %v9881_v12, %v2114_v60  ;;  %v2118_v2 = vadd.f32 %v9888_v41, %v9887_v3  ;;  %v9893_v3 = vld [vmem:[#allocation47_spill] sm:$0xff]  ;;  %v9894_v41 = vld [vmem:[#allocation52_spill] sm:$0xff] }
 0x59d   :  { %v6144_v32 = vsub.f32 %v6140_v16, %v9875_v10  ;;  %v5485_v46 = vadd.f32 %v5484_v37, %v5444_v6  ;;  %v6175_v26 = vmax.f32 %v6167_v35, 0.0  ;;  %v9890_v37 = vld [vmem:[#allocation38_spill] sm:$0xff] }
 0x59e   :  { %v5560_v52 = vpop.f32.mrf.mxu1  ;;  %v6153_v36 = vand.u32 2147483647, %v2166_v24  ;;  %v2170_v25 = vadd.f32 %v9889_v40, %v2118_v2  ;;  %v6162_v28 = vand.u32 2147483647, %v9890_v37  ;;  %v2884_v2 = vadd.f32 %v9894_v41, %v9893_v3  ;;  %v9897_v40 = vld [vmem:[#allocation57_spill] sm:$0xff] }
 0x59f   :  { %v6148_v34 = vand.u32 2147483647, %v6144_v32  ;;  %v5523_v4 = vadd.f32 %v5522_v44, %v5485_v46  ;;  %v9883_v44 = vld [vmem:[#allocation33_spill] sm:$0xff]  ;;  %v6179_v17 = vmul.f32 %v6175_v26, %v6175_v26 }
 0x5a0   :  { %v6154_v7 = vand.u32 2147483647, %v2170_v25  ;;  %v2936_v25 = vadd.f32 %v9897_v40, %v2884_v2 }
 0x5a1   :  { %v6156_v49 = vadd.f32 %v6152_v21, %v6148_v34  ;;  %v5557_v33 = vadd.f32 %v5556_v5, %v5523_v4  ;;  %v6166_v34 = vmul.f32 -1.0, %v6162_v28 }
 0x5a2   :  { %v5586_v13 = vpop.f32.mrf.mxu2 }
 0x5a3   :  { %v6168_v57 = vadd.f32 %v6164_v39, %v6156_v49  ;;  %v6141_v8 = vadd.f32 %v5557_v33, %v2150_v30 }
 0x5a4   :  { %v5490_v61 = vpop.f32.mrf.mxu3  ;;  %v5677_v14 = vpop.f32.mrf.mxu0 }
 0x5a5   :  { %v6176_v6 = vmax.f32 %v6168_v57, 0.0  ;;  %v6145_v58 = vsub.f32 %v6141_v8, %v9883_v44  ;;  %v5491_v31 = vadd.f32 %v5490_v61, %v5449_v18 }
 0x5a6   :  { %v5711_v47 = vpop.f32.mrf.mxu1 }
 0x5a7   :  { %v6180_v42 = vmul.f32 %v6176_v6, %v6176_v6  ;;  %v6149_v5 = vand.u32 2147483647, %v6145_v58  ;;  %v5527_v51 = vadd.f32 %v5526_v54, %v5491_v31  ;;  %v9891_v54 = vld [vmem:[#allocation34_spill] sm:$0xff] }
 0x5a9   :  { %v6183_v20 = vadd.f32 %v6180_v42, %v6179_v17  ;;  %v6157_v23 = vadd.f32 %v6153_v36, %v6149_v5  ;;  %v5561_v9 = vadd.f32 %v5560_v52, %v5527_v51  ;;  %v9892_v51 = vld [vmem:[#allocation29_spill] sm:$0xff] }
 0x5aa   :  { %v5594_v50 = vpop.f32.mrf.mxu2 }
 0x5ab   :  { %v6169_v0 = vadd.f32 %v6165_v63, %v6157_v23  ;;  %v6142_v35 = vadd.f32 %v5561_v9, %v2154_v22  ;;  %v9895_v23 = vld [vmem:[#allocation39_spill] sm:$0xff]  ;;  %v9896_v9 = vld [vmem:[#allocation41_spill] sm:$0xff] }
 0x5ac   :  { %v5636_v16 = vpop.f32.mrf.mxu3  ;;  %v5682_v18 = vpop.f32.mrf.mxu0 }
 0x5ad   :  { %v6177_v29 = vmax.f32 %v6169_v0, 0.0  ;;  %v6146_v10 = vsub.f32 %v6142_v35, %v9891_v54  ;;  %v5637_v32 = vadd.f32 %v5636_v16, %v5586_v13  ;;  %v9898_v16 = vld [vmem:[#allocation45_spill] sm:$0xff] }
 0x5ae   :  { %v5717_v46 = vpop.f32.mrf.mxu1 }
 0x5af   :  { %v6181_v53 = vmul.f32 %v6177_v29, %v6177_v29  ;;  %v6150_v59 = vand.u32 2147483647, %v6146_v10  ;;  %v5673_v21 = vadd.f32 %v5672_v15, %v5637_v32  ;;  %v6204_v29 = vand.u32 2147483647, %v2936_v25  ;;  %v9899_v10 = vld [vmem:[#allocation50_spill] sm:$0xff]  ;;  %v9900_v32 = vld [vmem:[#allocation55_spill] sm:$0xff] }
 0x5b1   :  { %v6184_v52 = vadd.f32 %v6183_v20, %v6181_v53  ;;  %v6158_v4 = vadd.f32 %v6154_v7, %v6150_v59  ;;  %v5712_v19 = vadd.f32 %v5711_v47, %v5673_v21  ;;  %v9901_v7 = vld [vmem:[#allocation67_spill] sm:$0xff] }
 0x5b2   :  { %v5602_v11 = vpop.f32.mrf.mxu2  ;;  %v6216_v53 = vand.u32 2147483647, %v9901_v7  ;;  %v9902_v59 = vld [vmem:[#allocation63_spill] sm:$0xff] }
 0x5b3   :  { %v6170_v60 = vadd.f32 %v6166_v34, %v6158_v4  ;;  %v9903_v34 = vld [vmem:[#allocation40_spill] sm:$0xff] }
 0x5b4   :  { %v5640_v45 = vpop.f32.mrf.mxu3  ;;  %v5687_v30 = vpop.f32.mrf.mxu0 }
 0x5b5   :  { %v6178_v39 = vmax.f32 %v6170_v60, 0.0  ;;  %v5641_v49 = vadd.f32 %v5640_v45, %v5594_v50  ;;  %v2868_v50 = vadd.f32 %v9896_v9, %v9895_v23  ;;  %v6208_v60 = vmul.f32 -1.0, %v6204_v29  ;;  %v9905_v45 = vld [vmem:[#allocation59_spill] sm:$0xff]  ;;  %v9916_v29 = vld [vmem:[#allocation60_spill] sm:$0xff] }
 0x5b6   :  { %v5723_v33 = vpop.f32.mrf.mxu1  ;;  %v9914_v23 = vld [vmem:[#allocation51_spill] sm:$0xff] }
 0x5b7   :  { %v6182_v12 = vmul.f32 %v6178_v39, %v6178_v39  ;;  %v5678_v24 = vadd.f32 %v5677_v14, %v5641_v49 }
 0x5b9   :  { %v6185_v26 = vadd.f32 %v6184_v52, %v6182_v12  ;;  %v5718_v13 = vadd.f32 %v5717_v46, %v5678_v24  ;;  %v2888_v46 = vadd.f32 %v9900_v32, %v9899_v10  ;;  %v9904_v52 = vld [vmem:[#allocation43_spill] sm:$0xff]  ;;  %v9906_v12 = vld [vmem:[#allocation48_spill] sm:$0xff]  ;;  %v9917_v32 = vld [vmem:[#allocation69_spill] sm:$0xff] }
 0x5ba   :  { %v5610_v57 = vpop.f32.mrf.mxu2  ;;  %v2872_v4 = vadd.f32 %v9904_v52, %v9903_v34  ;;  %v9920_v34 = vld [vmem:[#allocation49_spill] sm:$0xff] }
 0x5bb   :  { %v6186_v8 = vrot.slane %v6185_v26, 4 }
 0x5bc   :  { %v5644_v61 = vpop.f32.mrf.mxu3  ;;  %v9464_v6 = vpop.f32.mrf.mxu0  ;;  %v2924_v24 = vadd.f32 %v9906_v12, %v2872_v4  ;;  %v9922_v12 = vld [vmem:[#allocation54_spill] sm:$0xff] }
 0x5bd   :  { %v6187_v62 = vadd.f32 %v6186_v8, %v6185_v26  ;;  %v5645_v15 = vadd.f32 %v5644_v61, %v5602_v11  ;;  %v6220_v26 = vmul.f32 -1.0, %v6216_v53  ;;  %v9918_v53 = vld [vmem:[#allocation65_spill] sm:$0xff] }
 0x5be   :  { %v5729_v27 = vpop.f32.mrf.mxu1 }
 0x5bf   :  { %v5683_v44 = vadd.f32 %v5682_v18, %v5645_v15  ;;  %v6188_v58 = vrot.slane %v6187_v62, 2  ;;  %v2920_v18 = vadd.f32 %v9898_v16, %v2868_v50 }
 0x5c1   :  { %v5724_v31 = vadd.f32 %v5723_v33, %v5683_v44  ;;  %v6189_v43 = vadd.f32 %v6188_v58, %v6187_v62  ;;  %v9908_v44 = vld [vmem:[#allocation58_spill] sm:$0xff] }
 0x5c2   :  { %v5753_v38 = vpop.f32.mrf.mxu2 }
 0x5c3   :  { %v5754_v1 = vadd.f32 %v5753_v38, %v5712_v19  ;;  %v6190_v36 = vrot.slane %v6189_v43, 1 }
 0x5c4   :  { %v5648_v47 = vpop.f32.mrf.mxu3  ;;  %v9471_v22 = vpop.f32.mrf.mxu0 }
 0x5c5   :  { %v5649_v17 = vadd.f32 %v5648_v47, %v5610_v57  ;;  %v6191_v14 = vadd.f32 %v6190_v36, %v6189_v43  ;;  %v9909_v43 = vld [vmem:[#allocation68_spill] sm:$0xff]  ;;  %v9911_v47 = vld [vmem:[#allocation61_spill] sm:$0xff] }
 0x5c6   :  { %v9466_v42 = vpop.f32.mrf.mxu1  ;;  %v6217_v38 = vand.u32 2147483647, %v9909_v43  ;;  %v9923_v43 = vld [vmem:[#allocation70_spill] sm:$0xff] }
 0x5c7   :  { %v5688_v5 = vadd.f32 %v5687_v30, %v5649_v17  ;;  %v9469_v48 = vadd.f32 %v9892_v51, %v6191_v14  ;;  %v2940_v30 = vadd.f32 %v9905_v45, %v2888_v46  ;;  %v9912_v14 = vld [vmem:[#allocation42_spill] sm:$0xff]  ;;  %v6218_v46 = vand.u32 2147483647, %v9917_v32  ;;  %v9930_v32 = vld [vmem:[#allocation77_spill] sm:$0xff] }
 0x5c8   :  { %v6221_v50 = vmul.f32 -1.0, %v6217_v38  ;;  %v6219_v38 = vand.u32 2147483647, %v9923_v43 }
 0x5c9   :  { %v5730_v63 = vadd.f32 %v5729_v27, %v5688_v5  ;;  %v6205_v61 = vand.u32 2147483647, %v2940_v30  ;;  %v9907_v27 = vld [vmem:[#allocation53_spill] sm:$0xff]  ;;  %v9913_v5 = vld [vmem:[#allocation46_spill] sm:$0xff] }
 0x5ca   :  { %v5757_v20 = vpop.f32.mrf.mxu2  ;;  %v2892_v58 = vadd.f32 %v9908_v44, %v9907_v27  ;;  %v2876_v51 = vadd.f32 %v9913_v5, %v9912_v14 }
 0x5cb   :  { %v5758_v0 = vadd.f32 %v5757_v20, %v5718_v13  ;;  %v6209_v3 = vmul.f32 -1.0, %v6205_v61 }
 0x5cc   :  { %v5787_v35 = vpop.f32.mrf.mxu3  ;;  %v9487_v11 = vpop.f32.mrf.mxu0  ;;  %v2928_v9 = vadd.f32 %v9914_v23, %v2876_v51  ;;  %v9925_v23 = vld [vmem:[#allocation79_spill] sm:$0xff] }
 0x5cd   :  { %v5788_v37 = vadd.f32 %v5787_v35, %v5754_v1  ;;  %v9910_v1 = vld [vmem:[#allocation64_spill] sm:$0xff] }
 0x5ce   :  { %v9479_v28 = vpop.f32.mrf.mxu1 }
 0x5cf   :  { %v6192_v54 = vsub.f32 %v2920_v18, %v5788_v37  ;;  %v9915_v37 = vld [vmem:[#allocation56_spill] sm:$0xff] }
 0x5d1   :  { %v6196_v21 = vsub.f32 %v6192_v54, %v9902_v59  ;;  %v2896_v54 = vadd.f32 %v9916_v29, %v9915_v37 }
 0x5d2   :  { %v5761_v19 = vpop.f32.mrf.mxu2 }
 0x5d3   :  { %v6200_v39 = vand.u32 2147483647, %v6196_v21  ;;  %v5762_v49 = vadd.f32 %v5761_v19, %v5724_v31  ;;  %v2944_v31 = vadd.f32 %v9911_v47, %v2892_v58  ;;  %v9919_v21 = vld [vmem:[#allocation44_spill] sm:$0xff]  ;;  %v9921_v19 = vld [vmem:[#allocation62_spill] sm:$0xff] }
 0x5d4   :  { %v5791_v33 = vpop.f32.mrf.mxu3  ;;  %v2880_v52 = vadd.f32 %v9920_v34, %v9919_v21 }
 0x5d5   :  { %v6212_v13 = vadd.f32 %v6208_v60, %v6200_v39  ;;  %v5792_v57 = vadd.f32 %v5791_v33, %v5758_v0  ;;  %v9500_v20 = vpop.f32.mrf.mxu0  ;;  %v6206_v0 = vand.u32 2147483647, %v2944_v31  ;;  %v2948_v60 = vadd.f32 %v9921_v19, %v2896_v54 }
 0x5d6   :  { %v9491_v8 = vpop.f32.mrf.mxu1 }
 0x5d7   :  { %v6224_v62 = vadd.f32 %v6220_v26, %v6212_v13  ;;  %v6193_v15 = vsub.f32 %v2924_v24, %v5792_v57  ;;  %v6210_v4 = vmul.f32 -1.0, %v6206_v0  ;;  %v2932_v24 = vadd.f32 %v9922_v12, %v2880_v52 }
 0x5d8   :  { %v6222_v13 = vmul.f32 -1.0, %v6218_v46  ;;  %v6207_v27 = vand.u32 2147483647, %v2948_v60  ;;  %v9931_v60 = vld [vmem:[#allocation82_spill] sm:$0xff] }
 0x5d9   :  { %v6197_v36 = vsub.f32 %v6193_v15, %v9910_v1  ;;  %v6232_v35 = vmax.f32 %v6224_v62, 0.0 }
 0x5da   :  { %v5765_v17 = vpop.f32.mrf.mxu2 }
 0x5db   :  { %v6201_v41 = vand.u32 2147483647, %v6197_v36  ;;  %v6236_v30 = vmul.f32 %v6232_v35, %v6232_v35  ;;  %v5876_v36 = vadd.f32 %v9466_v42, %v9464_v6  ;;  %v9927_v35 = vld [vmem:[#allocation71_spill] sm:$0xff]  ;;  %v9929_v6 = vld [vmem:[#allocation88_spill] sm:$0xff] }
 0x5dc   :  { %v5795_v2 = vpop.f32.mrf.mxu3 }
 0x5dd   :  { %v6213_v40 = vadd.f32 %v6209_v3, %v6201_v41  ;;  %v5796_v25 = vadd.f32 %v5795_v2, %v5762_v49  ;;  %v5766_v49 = vadd.f32 %v5765_v17, %v5730_v63  ;;  %v5992_v15 = vpop.f32.mrf.mxu0  ;;  %v9924_v63 = vld [vmem:[#allocation66_spill] sm:$0xff]  ;;  %v6211_v17 = vmul.f32 -1.0, %v6207_v27 }
 0x5de   :  { %v9505_v10 = vpop.f32.mrf.mxu1  ;;  %v6223_v41 = vmul.f32 -1.0, %v6219_v38  ;;  %v9938_v38 = vld [vmem:[#allocation80_spill] sm:$0xff] }
 0x5df   :  { %v6225_v16 = vadd.f32 %v6221_v50, %v6213_v40  ;;  %v6194_v18 = vsub.f32 %v2928_v9, %v5796_v25  ;;  %v9926_v9 = vld [vmem:[#allocation21_spill] sm:$0xff] }
 0x5e0   :  { %v3662_v50 = vadd.f32 %v9926_v9, %v9925_v23  ;;  %v9939_v23 = vld [vmem:[#allocation84_spill] sm:$0xff]  ;;  %v9940_v9 = vld [vmem:[#allocation89_spill] sm:$0xff] }
 0x5e1   :  { %v6233_v7 = vmax.f32 %v6225_v16, 0.0  ;;  %v6198_v59 = vsub.f32 %v6194_v18, %v9918_v53  ;;  %v9928_v16 = vld [vmem:[#allocation73_spill] sm:$0xff] }
 0x5e2   :  { %v5911_v45 = vpop.f32.mrf.mxu2  ;;  %v3646_v18 = vadd.f32 %v9928_v16, %v9927_v35  ;;  %v3714_v42 = vadd.f32 %v9929_v6, %v3662_v50  ;;  %v3670_v50 = vadd.f32 %v9940_v9, %v9939_v23  ;;  %v9942_v16 = vld [vmem:[#allocation95_spill] sm:$0xff] }
 0x5e3   :  { %v6237_v39 = vmul.f32 %v6233_v7, %v6233_v7  ;;  %v6202_v33 = vand.u32 2147483647, %v6198_v59  ;;  %v5912_v5 = vadd.f32 %v5911_v45, %v5876_v36  ;;  %v5880_v7 = vadd.f32 %v9479_v28, %v9471_v22  ;;  %v9932_v45 = vld [vmem:[#allocation86_spill] sm:$0xff]  ;;  %v9936_v22 = vld [vmem:[#allocation75_spill] sm:$0xff] }
 0x5e4   :  { %v5799_v26 = vpop.f32.mrf.mxu3  ;;  %v3698_v46 = vadd.f32 %v9930_v32, %v3646_v18  ;;  %v6261_v34 = vand.u32 2147483647, %v3714_v42  ;;  %v9944_v42 = vld [vmem:[#allocation78_spill] sm:$0xff] }
 0x5e5   :  { %v6240_v57 = vadd.f32 %v6237_v39, %v6236_v30  ;;  %v6214_v61 = vadd.f32 %v6210_v4, %v6202_v33  ;;  %v5800_v62 = vadd.f32 %v5799_v26, %v5766_v49  ;;  %v5996_v54 = vpop.f32.mrf.mxu0  ;;  %v3666_v30 = vadd.f32 %v9932_v45, %v9931_v60  ;;  %v9933_v39 = vld [vmem:[#allocation98_spill] sm:$0xff] }
 0x5e6   :  { %v6026_v1 = vpop.f32.mrf.mxu1  ;;  %v6273_v49 = vand.u32 2147483647, %v9933_v39  ;;  %v6265_v27 = vmul.f32 -1.0, %v6261_v34 }
 0x5e7   :  { %v6226_v44 = vadd.f32 %v6222_v13, %v6214_v61  ;;  %v6195_v58 = vsub.f32 %v2932_v24, %v5800_v62  ;;  %v9934_v24 = vld [vmem:[#allocation94_spill] sm:$0xff]  ;;  %v9935_v61 = vld [vmem:[#allocation72_spill] sm:$0xff] }
 0x5e8   :  { %v3650_v28 = vadd.f32 %v9936_v22, %v9935_v61  ;;  %v9937_v62 = vld [vmem:[#allocation90_spill] sm:$0xff]  ;;  %v6277_v36 = vmul.f32 -1.0, %v6273_v49 }
 0x5e9   :  { %v6234_v47 = vmax.f32 %v6226_v44, 0.0  ;;  %v6199_v31 = vsub.f32 %v6195_v58, %v9924_v63 }
 0x5ea   :  { %v5916_v3 = vpop.f32.mrf.mxu2 }
 0x5eb   :  { %v6238_v14 = vmul.f32 %v6234_v47, %v6234_v47  ;;  %v6203_v51 = vand.u32 2147483647, %v6199_v31  ;;  %v5917_v4 = vadd.f32 %v5916_v3, %v5880_v7  ;;  %v5884_v47 = vadd.f32 %v9491_v8, %v9487_v11  ;;  %v9943_v8 = vld [vmem:[#allocation74_spill] sm:$0xff] }
 0x5ec   :  { %v5950_v2 = vpop.f32.mrf.mxu3 }
 0x5ed   :  { %v6241_v40 = vadd.f32 %v6240_v57, %v6238_v14  ;;  %v6215_v25 = vadd.f32 %v6211_v17, %v6203_v51  ;;  %v5951_v0 = vadd.f32 %v5950_v2, %v5912_v5  ;;  %v6000_v5 = vpop.f32.mrf.mxu0 }
 0x5ee   :  { %v6030_v21 = vpop.f32.mrf.mxu1 }
 0x5ef   :  { %v6227_v37 = vadd.f32 %v6223_v41, %v6215_v25  ;;  %v5993_v29 = vadd.f32 %v5992_v15, %v5951_v0  ;;  %v3718_v15 = vadd.f32 %v9937_v62, %v3666_v30  ;;  %v9941_v0 = vld [vmem:[#allocation99_spill] sm:$0xff] }
 0x5f0   :  { %v6274_v35 = vand.u32 2147483647, %v9941_v0 }
 0x5f1   :  { %v6235_v53 = vmax.f32 %v6227_v37, 0.0  ;;  %v6027_v59 = vadd.f32 %v6026_v1, %v5993_v29  ;;  %v3702_v1 = vadd.f32 %v9938_v38, %v3650_v28  ;;  %v6262_v14 = vand.u32 2147483647, %v3718_v15  ;;  %v9945_v29 = vld [vmem:[#allocation92_spill] sm:$0xff] }
 0x5f2   :  { %v5921_v13 = vpop.f32.mrf.mxu2  ;;  %v3654_v37 = vadd.f32 %v9944_v42, %v9943_v8  ;;  %v9949_v28 = vld [vmem:[#allocation100_spill] sm:$0xff] }
 0x5f3   :  { %v6239_v52 = vmul.f32 %v6235_v53, %v6235_v53  ;;  %v6249_v19 = vadd.f32 %v6027_v59, %v3698_v46  ;;  %v5922_v3 = vadd.f32 %v5921_v13, %v5884_v47  ;;  %v6266_v32 = vmul.f32 -1.0, %v6262_v14  ;;  %v9948_v13 = vld [vmem:[#allocation91_spill] sm:$0xff]  ;;  %v9954_v14 = vld [vmem:[#allocation85_spill] sm:$0xff] }
 0x5f4   :  { %v5956_v33 = vpop.f32.mrf.mxu3  ;;  %v6275_v62 = vand.u32 2147483647, %v9949_v28 }
 0x5f5   :  { %v6242_v12 = vadd.f32 %v6241_v40, %v6239_v52  ;;  %v6253_v26 = vsub.f32 %v6249_v19, %v9934_v24  ;;  %v5957_v57 = vadd.f32 %v5956_v33, %v5917_v4  ;;  %v5888_v52 = vadd.f32 %v9505_v10, %v9500_v20  ;;  %v6004_v22 = vpop.f32.mrf.mxu0  ;;  %v9950_v10 = vld [vmem:[#allocation96_spill] sm:$0xff] }
 0x5f6   :  { %v6034_v25 = vpop.f32.mrf.mxu1  ;;  %v6278_v4 = vmul.f32 -1.0, %v6274_v35  ;;  %v9956_v35 = vld [vmem:[#allocation97_spill] sm:$0xff] }
 0x5f7   :  { %v6243_v44 = vrot.slane %v6242_v12, 4  ;;  %v6257_v58 = vand.u32 2147483647, %v6253_v26  ;;  %v5997_v43 = vadd.f32 %v5996_v54, %v5957_v57  ;;  %v3722_v54 = vadd.f32 %v9945_v29, %v3670_v50  ;;  %v9947_v26 = vld [vmem:[#allocation87_spill] sm:$0xff] }
 0x5f8   :  { %v3674_v57 = vadd.f32 %v9948_v13, %v9947_v26 }
 0x5f9   :  { %v6269_v63 = vadd.f32 %v6265_v27, %v6257_v58  ;;  %v6031_v31 = vadd.f32 %v6030_v21, %v5997_v43  ;;  %v6244_v17 = vadd.f32 %v6243_v44, %v6242_v12  ;;  %v9946_v21 = vld [vmem:[#allocation83_spill] sm:$0xff]  ;;  %v6263_v30 = vand.u32 2147483647, %v3722_v54  ;;  %v9951_v44 = vld [vmem:[#allocation76_spill] sm:$0xff]  ;;  %v9952_v58 = vld [vmem:[#allocation81_spill] sm:$0xff] }
 0x5fa   :  { %v5926_v7 = vpop.f32.mrf.mxu2  ;;  %v3706_v34 = vadd.f32 %v9946_v21, %v3654_v37  ;;  %v3658_v43 = vadd.f32 %v9952_v58, %v9951_v44 }
 0x5fb   :  { %v6281_v51 = vadd.f32 %v6277_v36, %v6269_v63  ;;  %v6250_v41 = vadd.f32 %v6031_v31, %v3702_v1  ;;  %v6245_v2 = vrot.slane %v6244_v17, 2  ;;  %v5927_v39 = vadd.f32 %v5926_v7, %v5888_v52  ;;  %v9953_v1 = vld [vmem:[#allocation93_spill] sm:$0xff] }
 0x5fc   :  { %v5962_v40 = vpop.f32.mrf.mxu3  ;;  %v6267_v38 = vmul.f32 -1.0, %v6263_v30  ;;  %v3726_v36 = vadd.f32 %v9953_v1, %v3674_v57 }
 0x5fd   :  { %v6254_v18 = vsub.f32 %v6250_v41, %v9942_v16  ;;  %v5963_v6 = vadd.f32 %v5962_v40, %v5922_v3  ;;  %v6246_v11 = vadd.f32 %v6245_v2, %v6244_v17  ;;  %v6285_v49 = vmax.f32 %v6281_v51, 0.0  ;;  %v9955_v40 = vld [vmem:[#allocation101_spill] sm:$0xff] }
 0x5fe   :  { %v6038_v47 = vpop.f32.mrf.mxu1  ;;  %v6279_v51 = vmul.f32 -1.0, %v6275_v62  ;;  %v6264_v23 = vand.u32 2147483647, %v3726_v36 }
 0x5ff   :  { %v6258_v46 = vand.u32 2147483647, %v6254_v18  ;;  %v6001_v53 = vadd.f32 %v6000_v5, %v5963_v6  ;;  %v6247_v59 = vrot.slane %v6246_v11, 1  ;;  %v3710_v5 = vadd.f32 %v9954_v14, %v3658_v43 }
 0x600   :  { %v6411_v18 = vrot.slane %v9430_v56, 4  ;;  %v6268_v6 = vmul.f32 -1.0, %v6264_v23 }
 0x601   :  { %v6270_v19 = vadd.f32 %v6266_v32, %v6258_v46  ;;  %v6035_v60 = vadd.f32 %v6034_v25, %v6001_v53  ;;  %v6248_v45 = vadd.f32 %v6247_v59, %v6246_v11  ;;  %v6276_v25 = vand.u32 2147483647, %v9955_v40 }
 0x602   :  { %v6412_v54 = vadd.f32 %v6411_v18, %v9430_v56 }
 0x603   :  { %v6282_v33 = vadd.f32 %v6278_v4, %v6270_v19  ;;  %v6251_v12 = vadd.f32 %v6035_v60, %v3706_v34  ;;  %v9546_v24 = vadd.f32 %v9469_v48, %v6248_v45  ;;  %v6289_v48 = vmul.f32 %v6285_v49, %v6285_v49 }
 0x604   :  { %v5968_v61 = vpop.f32.mrf.mxu3  ;;  %v6280_v42 = vmul.f32 -1.0, %v6276_v25  ;;  %v6413_v7 = vrot.slane %v6412_v54, 2 }
 0x605   :  { %v6286_v20 = vmax.f32 %v6282_v33, 0.0  ;;  %v6255_v15 = vsub.f32 %v6251_v12, %v9950_v10  ;;  %v5969_v27 = vadd.f32 %v5968_v61, %v5927_v39 }
 0x606   :  { %v6414_v21 = vadd.f32 %v6413_v7, %v6412_v54 }
 0x607   :  { %v6290_v63 = vmul.f32 %v6286_v20, %v6286_v20  ;;  %v6259_v31 = vand.u32 2147483647, %v6255_v15  ;;  %v6005_v17 = vadd.f32 %v6004_v22, %v5969_v27 }
 0x608   :  { %v6415_v4 = vrot.slane %v6414_v21, 1 }
 0x609   :  { %v6293_v3 = vadd.f32 %v6290_v63, %v6289_v48  ;;  %v6271_v41 = vadd.f32 %v6267_v38, %v6259_v31  ;;  %v6039_v2 = vadd.f32 %v6038_v47, %v6005_v17 }
 0x60a   :  { %v6416_v45 = vadd.f32 %v6415_v4, %v6414_v21 }
 0x60b   :  { %v6283_v9 = vadd.f32 %v6279_v51, %v6271_v41  ;;  %v6252_v50 = vadd.f32 %v6039_v2, %v3710_v5  ;;  %v6491_v5 = vpop.xlane.xlu1 %6490 }
 0x60c   :  { %6708 = vrsqrt.f32 %v6416_v45  ;;  %vm6445_vm5 = vcmp.eq.f32.partialorder %v6416_v45, inf  ;;  %v6448_v31 = vand.u32 2147483648, %v6416_v45  ;;  %vm6447_vm6 = vcmp.eq.f32.partialorder %v6416_v45, 0.0 }
 0x60d   :  { %v6287_v0 = vmax.f32 %v6283_v9, 0.0  ;;  %v6256_v16 = vsub.f32 %v6252_v50, %v9956_v35  ;;  %v6492_v51 = vrot.slane %v6491_v5, 4 }
 0x60f   :  { %v6291_v11 = vmul.f32 %v6287_v0, %v6287_v0  ;;  %v6260_v8 = vand.u32 2147483647, %v6256_v16  ;;  %v6493_v2 = vadd.f32 %v6492_v51, %v6491_v5 }
 0x611   :  { %v6294_v37 = vadd.f32 %v6293_v3, %v6291_v11  ;;  %v6272_v29 = vadd.f32 %v6268_v6, %v6260_v8  ;;  %v6494_v9 = vrot.slane %v6493_v2, 2 }
 0x612   :  { %v6709_v49 = vpop.eup %6708 }
 0x613   :  { %v6284_v32 = vadd.f32 %v6280_v42, %v6272_v29  ;;  %v6439_v26 = vmul.f32 %v6709_v49, %v6416_v45  ;;  %v6495_v16 = vadd.f32 %v6494_v9, %v6493_v2 }
 0x615   :  { %v6288_v46 = vmax.f32 %v6284_v32, 0.0  ;;  %v6440_v61 = vmul.f32 %v6709_v49, %v6439_v26  ;;  %v6496_v11 = vrot.slane %v6495_v16, 1 }
 0x617   :  { %v6292_v53 = vmul.f32 %v6288_v46, %v6288_v46  ;;  %v6441_v62 = vmul.f32 0.5, %v6440_v61 }
 0x619   :  { %v6295_v59 = vadd.f32 %v6294_v37, %v6292_v53  ;;  %v6442_v44 = vsub.f32 1.5, %v6441_v62  ;;  %v6497_v37 = vadd.f32 %v6496_v11, %v6495_v16 }
 0x61b   :  { %v6296_v34 = vrot.slane %v6295_v59, 4  ;;  %v6443_v38 = vmul.f32 %v6709_v49, %v6442_v44 }
 0x61d   :  { %v6297_v52 = vadd.f32 %v6296_v34, %v6295_v59  ;;  %v6444_v47 = vmul.f32 %v6443_v38, %v6416_v45 }
 0x61f   :  { %v6298_v19 = vrot.slane %v6297_v52, 2  ;;  %v6446_v63 = vsel %vm6445_vm5, %v6416_v45, %v6444_v47 }
 0x620   :  { %v6449_v17 = vsel %vm6447_vm6, %v6448_v31, %v6446_v63 }
 0x621   :  { %v6299_v60 = vadd.f32 %v6298_v19, %v6297_v52  ;;  %v6479_v14 = vsel %vm6468_vm15, %v6449_v17, 0.0 }
 0x623   :  { %v6300_v30 = vrot.slane %v6299_v60, 1 }
 0x625   :  { %v6301_v39 = vadd.f32 %v6300_v30, %v6299_v60 }
 0x627   :  { %6710 = vrsqrt.f32 %v6301_v39  ;;  %vm6309_vm3 = vcmp.eq.f32.partialorder %v6301_v39, inf  ;;  %v6312_v20 = vand.u32 2147483648, %v6301_v39  ;;  %vm6311_vm4 = vcmp.eq.f32.partialorder %v6301_v39, 0.0 }
 0x62d   :  { %v6711_v33 = vpop.eup %6710 }
 0x62e   :  { %v6303_v12 = vmul.f32 %v6711_v33, %v6301_v39 }
 0x630   :  { %v6304_v56 = vmul.f32 %v6711_v33, %v6303_v12 }
 0x632   :  { %v6305_v13 = vmul.f32 0.5, %v6304_v56 }
 0x634   :  { %v6306_v57 = vsub.f32 1.5, %v6305_v13 }
 0x636   :  { %v6307_v22 = vmul.f32 %v6711_v33, %v6306_v57 }
 0x638   :  { %v6308_v28 = vmul.f32 %v6307_v22, %v6301_v39 }
 0x63a   :  { %v6310_v10 = vsel %vm6309_vm3, %v6301_v39, %v6308_v28 }
 0x63b   :  { %v6313_v15 = vsel %vm6311_vm4, %v6312_v20, %v6310_v10 }
 0x63c   :  { %v6690_v27 = vadd.f32 -2.0, %v6313_v15 }
 0x63e   :  { %v6315_v58 = vmul.f32 %v6690_v27, %v6690_v27 }
 0x640   :  { %v6465_v43 = vadd.f32 %v9546_v24, %v6315_v58 }
 0x642   :  { %v6466_v1 = vadd.f32 %v6465_v43, %v6416_v45 }
 0x644   :  { %v6467_v36 = vadd.f32 %v6466_v1, %v9330_v55 }
 0x646   :  { %v6469_v48 = vsel %vm6468_vm15, %v6467_v36, 0.0 }
 0x647   :  { %6470 = vadd.xlane.f32.xlu0 %v6469_v48 }
 0x64f   :  { %6480 = vadd.xlane.f32.xlu0 %v6479_v14 }
 0x6ba   :  { %v6471_v3 = vpop.xlane.xlu0 %6470 }
 0x6bb   :  { %v6472_v24 = vrot.slane %v6471_v3, 4 }
 0x6bd   :  { %v6473_v41 = vadd.f32 %v6472_v24, %v6471_v3 }
 0x6bf   :  { %v6474_v23 = vrot.slane %v6473_v41, 2 }
 0x6c1   :  { %v6475_v55 = vadd.f32 %v6474_v23, %v6473_v41 }
 0x6c2   :  { %v6481_v50 = vpop.xlane.xlu0 %6480 }
 0x6c3   :  { %v6482_v40 = vrot.slane %v6481_v50, 4  ;;  %v6476_v25 = vrot.slane %v6475_v55, 1 }
 0x6c5   :  { %v6483_v0 = vadd.f32 %v6482_v40, %v6481_v50  ;;  %v6477_v35 = vadd.f32 %v6476_v25, %v6475_v55 }
 0x6c7   :  { %v6484_v18 = vrot.slane %v6483_v0, 2  ;;  %6697 = vpush %v6477_v35 }
 0x6c9   :  { %v6485_v6 = vadd.f32 %v6484_v18, %v6483_v0 }
 0x6cb   :  { %v6486_v8 = vrot.slane %v6485_v6, 1 }
 0x6cd   :  { %v6487_v42 = vadd.f32 %v6486_v8, %v6485_v6 }
 0x6cf   :  { %6699 = vpush %v6487_v42 }
 0x6d0   :  { %6701 = vpush %v6497_v37 }
 0x6f8   :  { %s6698_s3 = spop %6697 }
 0x6f9   :  { %s6499_s27 = smul.f32 0.0078125, %s6698_s3 }
 0x700   :  { %s6700_s22 = spop %6699 }
 0x701   :  { %s6500_s23 = smul.f32 0.0078125, %s6700_s22  ;;  %s6702_s24 = spop %6701 }
 0x702   :  { %s6502_s25 = smul.f32 0.0078125, %s6702_s24 }
 0x703   :  { %s6501_s26 = smul.f32 2.0, %s6500_s23 }
 0x705   :  { %s6503_s5 = smul.f32 %s6502_s25, %s6501_s26 }
 0x707   :  { %s6504_s6 = sadd.f32 %s6503_s5, %s6499_s27 }
 0x709   :  { %6506 = sst [smem:[#allocation2]] %s6504_s6 }
 0x70a   :  { %6515 = dma.smem_to_hbm %s6731_s2, 16, %s6513_s30, [#allocation3]  }
 0x70b   :  { %6727 = dma.done.wait [#allocation3], 16  }
 0x70c   :  { %6728 = vsyncadd [#allocation3], 4294967280 }
 0x70d   :  { %6520 = sfence }
 0x70e   :  { %6521 = vsyncpa [#allocation3], 1 }

</bundles_post_ra>
